<compile_context>
chip_gen: v5e
topology: v5e:2x2
jax: 0.10.0
libtpu: 0.0.40
codegen_flags: <defaults>
</compile_context>

<pallas_src>
import math

import jax
import jax.numpy as jnp
from jax.experimental import pallas as pl
from jax.experimental.pallas import tpu as pltpu


def _gelu(x):
    # tanh-approximate GELU: exp/tanh go to the EUP slot, keeping the VALU free.
    # torch.nn.GELU() defaults to the exact erf form; difference is ~1e-3 relative.
    return jax.nn.gelu(x, approximate=True)


def resnet_kernel(x_ref,                                        # (input_dim, batch_tile)
                  w0_ref, b0_ref,                               # Linear(in, H) + Sine
                  rb1w1_ref, rb1b1_ref, rb1w2_ref, rb1b2_ref,   # LightResidualBlock 1
                  l2w_ref, l2b_ref,                             # Linear(H, H) + GELU
                  rb2w1_ref, rb2b1_ref, rb2w2_ref, rb2b2_ref,   # LightResidualBlock 2
                  wout_ref, bout_ref,                           # Linear(H, out)
                  o_ref):                                       # (output_dim, batch_tile)
    x = x_ref[...].astype(jnp.float32)          # (in_dim, tile): batch on the lane axis
    in_dim = x_ref.shape[0]
    w0 = w0_ref[...]                            # (H, in_dim)

    # ---- layer 1: Linear + Sine ---------------------------------------------------
    if in_dim <= 8:
        # K is tiny: unrolled broadcast FMAs on lane-dense data keep the MXU free.
        acc = w0[:, 0:1] * x[0:1, :]
        for k in range(1, in_dim):
            acc = acc + w0[:, k:k + 1] * x[k:k + 1, :]
    else:
        acc = jnp.dot(w0, x, preferred_element_type=jnp.float32)
    h = jnp.sin(acc + b0_ref[...])              # (H, tile)

    def res_block(h, w1, b1, w2, b2):
        y = _gelu(jnp.dot(w1, h, preferred_element_type=jnp.float32) + b1)
        y = jnp.dot(w2, y, preferred_element_type=jnp.float32) + b2
        return _gelu(h + y)

    # ---- layer 2: LightResidualBlock(GELU) -> Linear(H, H) -> GELU -----------------
    h = res_block(h, rb1w1_ref[...], rb1b1_ref[...], rb1w2_ref[...], rb1b2_ref[...])
    h = _gelu(jnp.dot(l2w_ref[...], h, preferred_element_type=jnp.float32) + l2b_ref[...])

    # ---- layer 3: LightResidualBlock(GELU) (no trailing linear) --------------------
    h = res_block(h, rb2w1_ref[...], rb2b1_ref[...], rb2w2_ref[...], rb2b2_ref[...])

    # ---- layer 4: output Linear -----------------------------------------------------
    out = jnp.dot(wout_ref[...], h, preferred_element_type=jnp.float32) + bout_ref[...]
    o_ref[...] = out.astype(o_ref.dtype)


def _pick_batch_tile(batch, hidden, vmem_budget_bytes=40 << 20):
    """Largest lane-dense (multiple of 128) tile that keeps >= 2 grid steps (so both
    v7x TensorCores get work) and whose live f32 activations fit a conservative VMEM
    budget valid on every generation (v7x has 64 MiB per TensorCore)."""
    for tile in (2048, 1024, 512, 256, 128):
        if batch % tile == 0 and batch // tile >= 2:
            if 8 * hidden * tile * 4 <= vmem_budget_bytes:
                return tile
    # small / odd batch: one full-batch block (block dim == full array dim is always legal)
    return batch


def resnet_forward(x, params, *, batch_tile=None):
    """x: (batch, input_dim) float32 -> (batch, output_dim) float32."""
    B, in_dim = x.shape
    H = params["w0"].shape[0]
    out_dim = params["wout"].shape[0]

    if batch_tile is None:
        batch_tile = _pick_batch_tile(B, H)
    assert B % batch_tile == 0, (B, batch_tile)
    grid = (B // batch_tile,)

    # Batch on the lane (last) axis: dense DMA, dense VPU/EUP work, unmasked stores.
    x_t = x.T                                    # (in_dim, B)

    param_list = [
        params["w0"], params["b0"],
        params["rb1_w1"], params["rb1_b1"], params["rb1_w2"], params["rb1_b2"],
        params["l2_w"], params["l2_b"],
        params["rb2_w1"], params["rb2_b1"], params["rb2_w2"], params["rb2_b2"],
        params["wout"], params["bout"],
    ]
    weight_bytes = 4 * sum(int(p.size) for p in param_list)

    # Advisory cost hint for the surrounding XLA schedule.
    flops = 2 * B * (in_dim * H + 5 * H * H + H * out_dim)
    transcendentals = 5 * B * H                  # sin + 4x tanh-GELU
    bytes_accessed = 4 * B * (in_dim + out_dim) + weight_bytes
    cost = pl.CostEstimate(flops=flops, transcendentals=transcendentals,
                           bytes_accessed=bytes_accessed)

    # VMEM budget: double-buffered in/out tiles + weights + live activations, with
    # headroom; clamp to [32 MiB, 64 MiB] so it is legal on v5e/v6e/v7x alike.
    io_bytes = 2 * 4 * batch_tile * (in_dim + out_dim)
    act_bytes = 8 * H * batch_tile * 4
    vmem_limit = int(min(max(2 * (io_bytes + act_bytes + weight_bytes), 32 << 20),
                         64 << 20))

    out_shape = jax.ShapeDtypeStruct((out_dim, B), jnp.float32)

    def build(single_buffer_weights):
        if single_buffer_weights:
            def weight_spec(p):
                # Block index is constant across the grid; single-buffering halves the
                # weight VMEM footprint (matters once H grows to realistic PINN widths).
                return pl.BlockSpec(p.shape, lambda i: (0, 0),
                                    pipeline_mode=pl.Buffered(1))
        else:
            def weight_spec(p):
                return pl.BlockSpec(p.shape, lambda i: (0, 0))

        in_specs = [pl.BlockSpec((in_dim, batch_tile), lambda i: (0, i))]
        in_specs += [weight_spec(p) for p in param_list]

        return pl.pallas_call(
            resnet_kernel,
            out_shape=out_shape,
            grid_spec=pltpu.PrefetchScalarGridSpec(
                num_scalar_prefetch=0,
                grid=grid,
                in_specs=in_specs,
                out_specs=pl.BlockSpec((out_dim, batch_tile), lambda i: (0, i)),
            ),
            compiler_params=pltpu.CompilerParams(
                dimension_semantics=("parallel",),
                vmem_limit_bytes=vmem_limit,
            ),
            cost_estimate=cost,
        )

    try:
        out_t = build(single_buffer_weights=True)(x_t, *param_list)
        out_t = jax.block_until_ready(out_t)
    except Exception:
        # TODO(synk): pl.Buffered(1) single-buffering unsupported on this jax build;
        # fall back to default double-buffered weight blocks.
        out_t = build(single_buffer_weights=False)(x_t, *param_list)

    return out_t.T                               # (B, out_dim)


def init_params(key, input_dim, hidden, output_dim):
    """PyTorch nn.Linear-style init: U(-1/sqrt(fan_in), 1/sqrt(fan_in)).
    Weights are (out_features, in_features); biases are (out_features, 1)."""
    def linear(k, fan_in, fan_out):
        kw, kb = jax.random.split(k)
        bound = 1.0 / math.sqrt(fan_in)
        w = jax.random.uniform(kw, (fan_out, fan_in), jnp.float32, -bound, bound)
        b = jax.random.uniform(kb, (fan_out, 1), jnp.float32, -bound, bound)
        return w, b

    keys = jax.random.split(key, 7)
    p = {}
    p["w0"], p["b0"] = linear(keys[0], input_dim, hidden)       # Linear(in, H) + Sine
    p["rb1_w1"], p["rb1_b1"] = linear(keys[1], hidden, hidden)  # block 1, linear 1
    p["rb1_w2"], p["rb1_b2"] = linear(keys[2], hidden, hidden)  # block 1, linear 2
    p["l2_w"], p["l2_b"] = linear(keys[3], hidden, hidden)      # Linear(H, H) + GELU
    p["rb2_w1"], p["rb2_b1"] = linear(keys[4], hidden, hidden)  # block 2, linear 1
    p["rb2_w2"], p["rb2_b2"] = linear(keys[5], hidden, hidden)  # block 2, linear 2
    p["wout"], p["bout"] = linear(keys[6], hidden, output_dim)  # Linear(H, out)
    return p


def resnet_reference(x, p):
    """Plain-JAX reference (same tanh-GELU as the kernel) for sanity checking."""
    def lin(h, w, b):                            # w: (out, in), b: (out, 1)
        return h @ w.T + b.T

    h = jnp.sin(lin(x, p["w0"], p["b0"]))

    def rb(h, w1, b1, w2, b2):
        y = _gelu(lin(h, w1, b1))
        y = lin(y, w2, b2)
        return _gelu(h + y)

    h = rb(h, p["rb1_w1"], p["rb1_b1"], p["rb1_w2"], p["rb1_b2"])
    h = _gelu(lin(h, p["l2_w"], p["l2_b"]))
    h = rb(h, p["rb2_w1"], p["rb2_b1"], p["rb2_w2"], p["rb2_b2"])
    return lin(h, p["wout"], p["bout"])


if __name__ == "__main__":
    input_dim = 4      # e.g. (x, y, z, t) PINN coordinates
    output_dim = 1
    hidden = 32        # hidden_layers = [32, 32]
    batch = 256        # -> batch_tile=128, grid=(2,): lane-dense tiles, both v7x TCs busy

    key = jax.random.PRNGKey(0)
    kx, kp = jax.random.split(key)
    x = jax.random.normal(kx, (batch, input_dim), jnp.float32)
    params = init_params(kp, input_dim, hidden, output_dim)

    out = resnet_forward(x, params)
    out = jax.block_until_ready(out)

    ref = resnet_reference(x, params)
    assert out.shape == (batch, output_dim)
    assert jnp.allclose(out, ref, atol=1e-4, rtol=1e-4), "mismatch vs reference"

    print("KERNEL_OK")
</pallas_src>

<mosaic_0001>
module attributes {stable_mosaic.version = 11 : i64} {
  func.func @resnet_kernel(%arg0: i32, %arg1: memref<4x128xf32, #tpu.memory_space<vmem>>, %arg2: memref<32x4xf32, #tpu.memory_space<vmem>>, %arg3: memref<32x1xf32, #tpu.memory_space<vmem>>, %arg4: memref<32x32xf32, #tpu.memory_space<vmem>>, %arg5: memref<32x1xf32, #tpu.memory_space<vmem>>, %arg6: memref<32x32xf32, #tpu.memory_space<vmem>>, %arg7: memref<32x1xf32, #tpu.memory_space<vmem>>, %arg8: memref<32x32xf32, #tpu.memory_space<vmem>>, %arg9: memref<32x1xf32, #tpu.memory_space<vmem>>, %arg10: memref<32x32xf32, #tpu.memory_space<vmem>>, %arg11: memref<32x1xf32, #tpu.memory_space<vmem>>, %arg12: memref<32x32xf32, #tpu.memory_space<vmem>>, %arg13: memref<32x1xf32, #tpu.memory_space<vmem>>, %arg14: memref<1x32xf32, #tpu.memory_space<vmem>>, %arg15: memref<1x1xf32, #tpu.memory_space<vmem>>, %arg16: memref<1x128xf32, #tpu.memory_space<vmem>>) attributes {dimension_semantics = [#tpu.dimension_semantics<parallel>], iteration_bounds = array<i64: 2>, scalar_prefetch = 0 : i64, scratch_operands = 0 : i64, tpu.core_type = #tpu.core_type<tc>, window_params = [{transform_indices = @transform_0, window_bounds = array<i64: 4, 128>}, {pipeline_mode = #tpu.pipeline_mode<synchronous>, transform_indices = @transform_1, window_bounds = array<i64: 32, 4>}, {pipeline_mode = #tpu.pipeline_mode<synchronous>, transform_indices = @transform_2, window_bounds = array<i64: 32, 1>}, {pipeline_mode = #tpu.pipeline_mode<synchronous>, transform_indices = @transform_3, window_bounds = array<i64: 32, 32>}, {pipeline_mode = #tpu.pipeline_mode<synchronous>, transform_indices = @transform_4, window_bounds = array<i64: 32, 1>}, {pipeline_mode = #tpu.pipeline_mode<synchronous>, transform_indices = @transform_5, window_bounds = array<i64: 32, 32>}, {pipeline_mode = #tpu.pipeline_mode<synchronous>, transform_indices = @transform_6, window_bounds = array<i64: 32, 1>}, {pipeline_mode = #tpu.pipeline_mode<synchronous>, transform_indices = @transform_7, window_bounds = array<i64: 32, 32>}, {pipeline_mode = #tpu.pipeline_mode<synchronous>, transform_indices = @transform_8, window_bounds = array<i64: 32, 1>}, {pipeline_mode = #tpu.pipeline_mode<synchronous>, transform_indices = @transform_9, window_bounds = array<i64: 32, 32>}, {pipeline_mode = #tpu.pipeline_mode<synchronous>, transform_indices = @transform_10, window_bounds = array<i64: 32, 1>}, {pipeline_mode = #tpu.pipeline_mode<synchronous>, transform_indices = @transform_11, window_bounds = array<i64: 32, 32>}, {pipeline_mode = #tpu.pipeline_mode<synchronous>, transform_indices = @transform_12, window_bounds = array<i64: 32, 1>}, {pipeline_mode = #tpu.pipeline_mode<synchronous>, transform_indices = @transform_13, window_bounds = array<i64: 1, 32>}, {pipeline_mode = #tpu.pipeline_mode<synchronous>, transform_indices = @transform_14, window_bounds = array<i64: 1, 1>}, {transform_indices = @transform_15, window_bounds = array<i64: 1, 128>}]} {
    %c0 = arith.constant 0 : index
    %c0_0 = arith.constant 0 : index
    %0 = vector.load %arg1[%c0, %c0_0] : memref<4x128xf32, #tpu.memory_space<vmem>>, vector<4x128xf32>
    %c0_1 = arith.constant 0 : index
    %c0_2 = arith.constant 0 : index
    %1 = vector.load %arg2[%c0_1, %c0_2] : memref<32x4xf32, #tpu.memory_space<vmem>>, vector<32x4xf32>
    %2 = vector.extract_strided_slice %1 {offsets = [0, 0], sizes = [32, 1], strides = [1, 1]} : vector<32x4xf32> to vector<32x1xf32>
    %3 = vector.extract_strided_slice %0 {offsets = [0, 0], sizes = [1, 128], strides = [1, 1]} : vector<4x128xf32> to vector<1x128xf32>
    %4 = vector.broadcast %2 : vector<32x1xf32> to vector<32x128xf32>
    %5 = vector.broadcast %3 : vector<1x128xf32> to vector<32x128xf32>
    %6 = arith.mulf %4, %5 : vector<32x128xf32>
    %7 = vector.extract_strided_slice %1 {offsets = [0, 1], sizes = [32, 1], strides = [1, 1]} : vector<32x4xf32> to vector<32x1xf32>
    %8 = vector.extract_strided_slice %0 {offsets = [1, 0], sizes = [1, 128], strides = [1, 1]} : vector<4x128xf32> to vector<1x128xf32>
    %9 = vector.broadcast %7 : vector<32x1xf32> to vector<32x128xf32>
    %10 = vector.broadcast %8 : vector<1x128xf32> to vector<32x128xf32>
    %11 = arith.mulf %9, %10 : vector<32x128xf32>
    %12 = arith.addf %6, %11 : vector<32x128xf32>
    %13 = vector.extract_strided_slice %1 {offsets = [0, 2], sizes = [32, 1], strides = [1, 1]} : vector<32x4xf32> to vector<32x1xf32>
    %14 = vector.extract_strided_slice %0 {offsets = [2, 0], sizes = [1, 128], strides = [1, 1]} : vector<4x128xf32> to vector<1x128xf32>
    %15 = vector.broadcast %13 : vector<32x1xf32> to vector<32x128xf32>
    %16 = vector.broadcast %14 : vector<1x128xf32> to vector<32x128xf32>
    %17 = arith.mulf %15, %16 : vector<32x128xf32>
    %18 = arith.addf %12, %17 : vector<32x128xf32>
    %19 = vector.extract_strided_slice %1 {offsets = [0, 3], sizes = [32, 1], strides = [1, 1]} : vector<32x4xf32> to vector<32x1xf32>
    %20 = vector.extract_strided_slice %0 {offsets = [3, 0], sizes = [1, 128], strides = [1, 1]} : vector<4x128xf32> to vector<1x128xf32>
    %21 = vector.broadcast %19 : vector<32x1xf32> to vector<32x128xf32>
    %22 = vector.broadcast %20 : vector<1x128xf32> to vector<32x128xf32>
    %23 = arith.mulf %21, %22 : vector<32x128xf32>
    %24 = arith.addf %18, %23 : vector<32x128xf32>
    %c0_3 = arith.constant 0 : index
    %c0_4 = arith.constant 0 : index
    %25 = vector.load %arg3[%c0_3, %c0_4] : memref<32x1xf32, #tpu.memory_space<vmem>>, vector<32x1xf32>
    %26 = vector.broadcast %25 : vector<32x1xf32> to vector<32x128xf32>
    %27 = arith.addf %24, %26 : vector<32x128xf32>
    %28 = math.sin %27 : vector<32x128xf32>
    %c0_5 = arith.constant 0 : index
    %c0_6 = arith.constant 0 : index
    %29 = vector.load %arg4[%c0_5, %c0_6] : memref<32x32xf32, #tpu.memory_space<vmem>>, vector<32x32xf32>
    %c0_7 = arith.constant 0 : index
    %c0_8 = arith.constant 0 : index
    %30 = vector.load %arg5[%c0_7, %c0_8] : memref<32x1xf32, #tpu.memory_space<vmem>>, vector<32x1xf32>
    %c0_9 = arith.constant 0 : index
    %c0_10 = arith.constant 0 : index
    %31 = vector.load %arg6[%c0_9, %c0_10] : memref<32x32xf32, #tpu.memory_space<vmem>>, vector<32x32xf32>
    %c0_11 = arith.constant 0 : index
    %c0_12 = arith.constant 0 : index
    %32 = vector.load %arg7[%c0_11, %c0_12] : memref<32x1xf32, #tpu.memory_space<vmem>>, vector<32x1xf32>
    %cst = arith.constant dense<0.000000e+00> : vector<32x128xf32>
    %33 = tpu.matmul %29, %28, %cst {dimension_numbers = #tpu.dot_dimension_numbers<[1], [0], [0], [1], [0, 0, 1, 1], [], []>} : vector<32x32xf32>, vector<32x128xf32>, vector<32x128xf32> -> vector<32x128xf32>
    %34 = vector.broadcast %30 : vector<32x1xf32> to vector<32x128xf32>
    %35 = arith.addf %33, %34 : vector<32x128xf32>
    %36 = arith.mulf %35, %35 : vector<32x128xf32>
    %37 = arith.mulf %35, %36 : vector<32x128xf32>
    %cst_13 = arith.constant 4.471500e-02 : f32
    %38 = vector.broadcast %cst_13 : f32 to vector<32x128xf32>
    %39 = arith.mulf %38, %37 : vector<32x128xf32>
    %40 = arith.addf %35, %39 : vector<32x128xf32>
    %cst_14 = arith.constant 0.797884583 : f32
    %41 = vector.broadcast %cst_14 : f32 to vector<32x128xf32>
    %42 = arith.mulf %41, %40 : vector<32x128xf32>
    %43 = math.tanh %42 : vector<32x128xf32>
    %cst_15 = arith.constant 1.000000e+00 : f32
    %44 = vector.broadcast %cst_15 : f32 to vector<32x128xf32>
    %45 = arith.addf %44, %43 : vector<32x128xf32>
    %cst_16 = arith.constant 5.000000e-01 : f32
    %46 = vector.broadcast %cst_16 : f32 to vector<32x128xf32>
    %47 = arith.mulf %46, %45 : vector<32x128xf32>
    %48 = arith.mulf %35, %47 : vector<32x128xf32>
    %cst_17 = arith.constant dense<0.000000e+00> : vector<32x128xf32>
    %49 = tpu.matmul %31, %48, %cst_17 {dimension_numbers = #tpu.dot_dimension_numbers<[1], [0], [0], [1], [0, 0, 1, 1], [], []>} : vector<32x32xf32>, vector<32x128xf32>, vector<32x128xf32> -> vector<32x128xf32>
    %50 = vector.broadcast %32 : vector<32x1xf32> to vector<32x128xf32>
    %51 = arith.addf %49, %50 : vector<32x128xf32>
    %52 = arith.addf %28, %51 : vector<32x128xf32>
    %53 = arith.mulf %52, %52 : vector<32x128xf32>
    %54 = arith.mulf %52, %53 : vector<32x128xf32>
    %cst_18 = arith.constant 4.471500e-02 : f32
    %55 = vector.broadcast %cst_18 : f32 to vector<32x128xf32>
    %56 = arith.mulf %55, %54 : vector<32x128xf32>
    %57 = arith.addf %52, %56 : vector<32x128xf32>
    %cst_19 = arith.constant 0.797884583 : f32
    %58 = vector.broadcast %cst_19 : f32 to vector<32x128xf32>
    %59 = arith.mulf %58, %57 : vector<32x128xf32>
    %60 = math.tanh %59 : vector<32x128xf32>
    %cst_20 = arith.constant 1.000000e+00 : f32
    %61 = vector.broadcast %cst_20 : f32 to vector<32x128xf32>
    %62 = arith.addf %61, %60 : vector<32x128xf32>
    %cst_21 = arith.constant 5.000000e-01 : f32
    %63 = vector.broadcast %cst_21 : f32 to vector<32x128xf32>
    %64 = arith.mulf %63, %62 : vector<32x128xf32>
    %65 = arith.mulf %52, %64 : vector<32x128xf32>
    %c0_22 = arith.constant 0 : index
    %c0_23 = arith.constant 0 : index
    %66 = vector.load %arg8[%c0_22, %c0_23] : memref<32x32xf32, #tpu.memory_space<vmem>>, vector<32x32xf32>
    %cst_24 = arith.constant dense<0.000000e+00> : vector<32x128xf32>
    %67 = tpu.matmul %66, %65, %cst_24 {dimension_numbers = #tpu.dot_dimension_numbers<[1], [0], [0], [1], [0, 0, 1, 1], [], []>} : vector<32x32xf32>, vector<32x128xf32>, vector<32x128xf32> -> vector<32x128xf32>
    %c0_25 = arith.constant 0 : index
    %c0_26 = arith.constant 0 : index
    %68 = vector.load %arg9[%c0_25, %c0_26] : memref<32x1xf32, #tpu.memory_space<vmem>>, vector<32x1xf32>
    %69 = vector.broadcast %68 : vector<32x1xf32> to vector<32x128xf32>
    %70 = arith.addf %67, %69 : vector<32x128xf32>
    %71 = arith.mulf %70, %70 : vector<32x128xf32>
    %72 = arith.mulf %70, %71 : vector<32x128xf32>
    %cst_27 = arith.constant 4.471500e-02 : f32
    %73 = vector.broadcast %cst_27 : f32 to vector<32x128xf32>
    %74 = arith.mulf %73, %72 : vector<32x128xf32>
    %75 = arith.addf %70, %74 : vector<32x128xf32>
    %cst_28 = arith.constant 0.797884583 : f32
    %76 = vector.broadcast %cst_28 : f32 to vector<32x128xf32>
    %77 = arith.mulf %76, %75 : vector<32x128xf32>
    %78 = math.tanh %77 : vector<32x128xf32>
    %cst_29 = arith.constant 1.000000e+00 : f32
    %79 = vector.broadcast %cst_29 : f32 to vector<32x128xf32>
    %80 = arith.addf %79, %78 : vector<32x128xf32>
    %cst_30 = arith.constant 5.000000e-01 : f32
    %81 = vector.broadcast %cst_30 : f32 to vector<32x128xf32>
    %82 = arith.mulf %81, %80 : vector<32x128xf32>
    %83 = arith.mulf %70, %82 : vector<32x128xf32>
    %c0_31 = arith.constant 0 : index
    %c0_32 = arith.constant 0 : index
    %84 = vector.load %arg10[%c0_31, %c0_32] : memref<32x32xf32, #tpu.memory_space<vmem>>, vector<32x32xf32>
    %c0_33 = arith.constant 0 : index
    %c0_34 = arith.constant 0 : index
    %85 = vector.load %arg11[%c0_33, %c0_34] : memref<32x1xf32, #tpu.memory_space<vmem>>, vector<32x1xf32>
    %c0_35 = arith.constant 0 : index
    %c0_36 = arith.constant 0 : index
    %86 = vector.load %arg12[%c0_35, %c0_36] : memref<32x32xf32, #tpu.memory_space<vmem>>, vector<32x32xf32>
    %c0_37 = arith.constant 0 : index
    %c0_38 = arith.constant 0 : index
    %87 = vector.load %arg13[%c0_37, %c0_38] : memref<32x1xf32, #tpu.memory_space<vmem>>, vector<32x1xf32>
    %cst_39 = arith.constant dense<0.000000e+00> : vector<32x128xf32>
    %88 = tpu.matmul %84, %83, %cst_39 {dimension_numbers = #tpu.dot_dimension_numbers<[1], [0], [0], [1], [0, 0, 1, 1], [], []>} : vector<32x32xf32>, vector<32x128xf32>, vector<32x128xf32> -> vector<32x128xf32>
    %89 = vector.broadcast %85 : vector<32x1xf32> to vector<32x128xf32>
    %90 = arith.addf %88, %89 : vector<32x128xf32>
    %91 = arith.mulf %90, %90 : vector<32x128xf32>
    %92 = arith.mulf %90, %91 : vector<32x128xf32>
    %cst_40 = arith.constant 4.471500e-02 : f32
    %93 = vector.broadcast %cst_40 : f32 to vector<32x128xf32>
    %94 = arith.mulf %93, %92 : vector<32x128xf32>
    %95 = arith.addf %90, %94 : vector<32x128xf32>
    %cst_41 = arith.constant 0.797884583 : f32
    %96 = vector.broadcast %cst_41 : f32 to vector<32x128xf32>
    %97 = arith.mulf %96, %95 : vector<32x128xf32>
    %98 = math.tanh %97 : vector<32x128xf32>
    %cst_42 = arith.constant 1.000000e+00 : f32
    %99 = vector.broadcast %cst_42 : f32 to vector<32x128xf32>
    %100 = arith.addf %99, %98 : vector<32x128xf32>
    %cst_43 = arith.constant 5.000000e-01 : f32
    %101 = vector.broadcast %cst_43 : f32 to vector<32x128xf32>
    %102 = arith.mulf %101, %100 : vector<32x128xf32>
    %103 = arith.mulf %90, %102 : vector<32x128xf32>
    %cst_44 = arith.constant dense<0.000000e+00> : vector<32x128xf32>
    %104 = tpu.matmul %86, %103, %cst_44 {dimension_numbers = #tpu.dot_dimension_numbers<[1], [0], [0], [1], [0, 0, 1, 1], [], []>} : vector<32x32xf32>, vector<32x128xf32>, vector<32x128xf32> -> vector<32x128xf32>
    %105 = vector.broadcast %87 : vector<32x1xf32> to vector<32x128xf32>
    %106 = arith.addf %104, %105 : vector<32x128xf32>
    %107 = arith.addf %83, %106 : vector<32x128xf32>
    %108 = arith.mulf %107, %107 : vector<32x128xf32>
    %109 = arith.mulf %107, %108 : vector<32x128xf32>
    %cst_45 = arith.constant 4.471500e-02 : f32
    %110 = vector.broadcast %cst_45 : f32 to vector<32x128xf32>
    %111 = arith.mulf %110, %109 : vector<32x128xf32>
    %112 = arith.addf %107, %111 : vector<32x128xf32>
    %cst_46 = arith.constant 0.797884583 : f32
    %113 = vector.broadcast %cst_46 : f32 to vector<32x128xf32>
    %114 = arith.mulf %113, %112 : vector<32x128xf32>
    %115 = math.tanh %114 : vector<32x128xf32>
    %cst_47 = arith.constant 1.000000e+00 : f32
    %116 = vector.broadcast %cst_47 : f32 to vector<32x128xf32>
    %117 = arith.addf %116, %115 : vector<32x128xf32>
    %cst_48 = arith.constant 5.000000e-01 : f32
    %118 = vector.broadcast %cst_48 : f32 to vector<32x128xf32>
    %119 = arith.mulf %118, %117 : vector<32x128xf32>
    %120 = arith.mulf %107, %119 : vector<32x128xf32>
    %c0_49 = arith.constant 0 : index
    %c0_50 = arith.constant 0 : index
    %121 = vector.load %arg14[%c0_49, %c0_50] : memref<1x32xf32, #tpu.memory_space<vmem>>, vector<1x32xf32>
    %cst_51 = arith.constant dense<0.000000e+00> : vector<1x128xf32>
    %122 = tpu.matmul %121, %120, %cst_51 {dimension_numbers = #tpu.dot_dimension_numbers<[1], [0], [0], [1], [0, 0, 1, 1], [], []>} : vector<1x32xf32>, vector<32x128xf32>, vector<1x128xf32> -> vector<1x128xf32>
    %c0_52 = arith.constant 0 : index
    %c0_53 = arith.constant 0 : index
    %123 = vector.load %arg15[%c0_52, %c0_53] : memref<1x1xf32, #tpu.memory_space<vmem>>, vector<1x1xf32>
    %124 = vector.broadcast %123 : vector<1x1xf32> to vector<1x128xf32>
    %125 = arith.addf %122, %124 : vector<1x128xf32>
    %c0_54 = arith.constant 0 : index
    %c0_55 = arith.constant 0 : index
    %126 = vector.load %arg16[%c0_54, %c0_55] : memref<1x128xf32, #tpu.memory_space<vmem>>, vector<1x128xf32>
    tpu.vector_store %arg16[%c0_54, %c0_55], %125 {strides = array<i32>} : memref<1x128xf32, #tpu.memory_space<vmem>>, vector<1x128xf32>,
    return
  }
  func.func @transform_0(%arg0: i32) -> (i32, i32) {
    %c0_i32 = arith.constant 0 : i32
    %c0_i32_0 = arith.constant 0 : i32
    return %c0_i32, %arg0 : i32, i32
  }
  func.func @transform_1(%arg0: i32) -> (i32, i32) {
    %c0_i32 = arith.constant 0 : i32
    %c0_i32_0 = arith.constant 0 : i32
    %c0_i32_1 = arith.constant 0 : i32
    return %c0_i32, %c0_i32_0 : i32, i32
  }
  func.func @transform_2(%arg0: i32) -> (i32, i32) {
    %c0_i32 = arith.constant 0 : i32
    %c0_i32_0 = arith.constant 0 : i32
    %c0_i32_1 = arith.constant 0 : i32
    return %c0_i32, %c0_i32_0 : i32, i32
  }
  func.func @transform_3(%arg0: i32) -> (i32, i32) {
    %c0_i32 = arith.constant 0 : i32
    %c0_i32_0 = arith.constant 0 : i32
    %c0_i32_1 = arith.constant 0 : i32
    return %c0_i32, %c0_i32_0 : i32, i32
  }
  func.func @transform_4(%arg0: i32) -> (i32, i32) {
    %c0_i32 = arith.constant 0 : i32
    %c0_i32_0 = arith.constant 0 : i32
    %c0_i32_1 = arith.constant 0 : i32
    return %c0_i32, %c0_i32_0 : i32, i32
  }
  func.func @transform_5(%arg0: i32) -> (i32, i32) {
    %c0_i32 = arith.constant 0 : i32
    %c0_i32_0 = arith.constant 0 : i32
    %c0_i32_1 = arith.constant 0 : i32
    return %c0_i32, %c0_i32_0 : i32, i32
  }
  func.func @transform_6(%arg0: i32) -> (i32, i32) {
    %c0_i32 = arith.constant 0 : i32
    %c0_i32_0 = arith.constant 0 : i32
    %c0_i32_1 = arith.constant 0 : i32
    return %c0_i32, %c0_i32_0 : i32, i32
  }
  func.func @transform_7(%arg0: i32) -> (i32, i32) {
    %c0_i32 = arith.constant 0 : i32
    %c0_i32_0 = arith.constant 0 : i32
    %c0_i32_1 = arith.constant 0 : i32
    return %c0_i32, %c0_i32_0 : i32, i32
  }
  func.func @transform_8(%arg0: i32) -> (i32, i32) {
    %c0_i32 = arith.constant 0 : i32
    %c0_i32_0 = arith.constant 0 : i32
    %c0_i32_1 = arith.constant 0 : i32
    return %c0_i32, %c0_i32_0 : i32, i32
  }
  func.func @transform_9(%arg0: i32) -> (i32, i32) {
    %c0_i32 = arith.constant 0 : i32
    %c0_i32_0 = arith.constant 0 : i32
    %c0_i32_1 = arith.constant 0 : i32
    return %c0_i32, %c0_i32_0 : i32, i32
  }
  func.func @transform_10(%arg0: i32) -> (i32, i32) {
    %c0_i32 = arith.constant 0 : i32
    %c0_i32_0 = arith.constant 0 : i32
    %c0_i32_1 = arith.constant 0 : i32
    return %c0_i32, %c0_i32_0 : i32, i32
  }
  func.func @transform_11(%arg0: i32) -> (i32, i32) {
    %c0_i32 = arith.constant 0 : i32
    %c0_i32_0 = arith.constant 0 : i32
    %c0_i32_1 = arith.constant 0 : i32
    return %c0_i32, %c0_i32_0 : i32, i32
  }
  func.func @transform_12(%arg0: i32) -> (i32, i32) {
    %c0_i32 = arith.constant 0 : i32
    %c0_i32_0 = arith.constant 0 : i32
    %c0_i32_1 = arith.constant 0 : i32
    return %c0_i32, %c0_i32_0 : i32, i32
  }
  func.func @transform_13(%arg0: i32) -> (i32, i32) {
    %c0_i32 = arith.constant 0 : i32
    %c0_i32_0 = arith.constant 0 : i32
    %c0_i32_1 = arith.constant 0 : i32
    return %c0_i32, %c0_i32_0 : i32, i32
  }
  func.func @transform_14(%arg0: i32) -> (i32, i32) {
    %c0_i32 = arith.constant 0 : i32
    %c0_i32_0 = arith.constant 0 : i32
    %c0_i32_1 = arith.constant 0 : i32
    return %c0_i32, %c0_i32_0 : i32, i32
  }
  func.func @transform_15(%arg0: i32) -> (i32, i32) {
    %c0_i32 = arith.constant 0 : i32
    %c0_i32_0 = arith.constant 0 : i32
    return %c0_i32, %arg0 : i32, i32
  }
}

module attributes {stable_mosaic.version = 11 : i64} {
  func.func @resnet_kernel(%arg0: i32, %arg1: memref<4x128xf32, #tpu.memory_space<vmem>>, %arg2: memref<32x4xf32, #tpu.memory_space<vmem>>, %arg3: memref<32x1xf32, #tpu.memory_space<vmem>>, %arg4: memref<32x32xf32, #tpu.memory_space<vmem>>, %arg5: memref<32x1xf32, #tpu.memory_space<vmem>>, %arg6: memref<32x32xf32, #tpu.memory_space<vmem>>, %arg7: memref<32x1xf32, #tpu.memory_space<vmem>>, %arg8: memref<32x32xf32, #tpu.memory_space<vmem>>, %arg9: memref<32x1xf32, #tpu.memory_space<vmem>>, %arg10: memref<32x32xf32, #tpu.memory_space<vmem>>, %arg11: memref<32x1xf32, #tpu.memory_space<vmem>>, %arg12: memref<32x32xf32, #tpu.memory_space<vmem>>, %arg13: memref<32x1xf32, #tpu.memory_space<vmem>>, %arg14: memref<1x32xf32, #tpu.memory_space<vmem>>, %arg15: memref<1x1xf32, #tpu.memory_space<vmem>>, %arg16: memref<1x128xf32, #tpu.memory_space<vmem>>) attributes {dimension_semantics = [#tpu.dimension_semantics<parallel>], iteration_bounds = array<i64: 2>, scalar_prefetch = 0 : i64, scratch_operands = 0 : i64, tpu.core_type = #tpu.core_type<tc>, window_params = [{transform_indices = @transform_0, window_bounds = array<i64: 4, 128>}, {pipeline_mode = #tpu.pipeline_mode<synchronous>, transform_indices = @transform_1, window_bounds = array<i64: 32, 4>}, {pipeline_mode = #tpu.pipeline_mode<synchronous>, transform_indices = @transform_2, window_bounds = array<i64: 32, 1>}, {pipeline_mode = #tpu.pipeline_mode<synchronous>, transform_indices = @transform_3, window_bounds = array<i64: 32, 32>}, {pipeline_mode = #tpu.pipeline_mode<synchronous>, transform_indices = @transform_4, window_bounds = array<i64: 32, 1>}, {pipeline_mode = #tpu.pipeline_mode<synchronous>, transform_indices = @transform_5, window_bounds = array<i64: 32, 32>}, {pipeline_mode = #tpu.pipeline_mode<synchronous>, transform_indices = @transform_6, window_bounds = array<i64: 32, 1>}, {pipeline_mode = #tpu.pipeline_mode<synchronous>, transform_indices = @transform_7, window_bounds = array<i64: 32, 32>}, {pipeline_mode = #tpu.pipeline_mode<synchronous>, transform_indices = @transform_8, window_bounds = array<i64: 32, 1>}, {pipeline_mode = #tpu.pipeline_mode<synchronous>, transform_indices = @transform_9, window_bounds = array<i64: 32, 32>}, {pipeline_mode = #tpu.pipeline_mode<synchronous>, transform_indices = @transform_10, window_bounds = array<i64: 32, 1>}, {pipeline_mode = #tpu.pipeline_mode<synchronous>, transform_indices = @transform_11, window_bounds = array<i64: 32, 32>}, {pipeline_mode = #tpu.pipeline_mode<synchronous>, transform_indices = @transform_12, window_bounds = array<i64: 32, 1>}, {pipeline_mode = #tpu.pipeline_mode<synchronous>, transform_indices = @transform_13, window_bounds = array<i64: 1, 32>}, {pipeline_mode = #tpu.pipeline_mode<synchronous>, transform_indices = @transform_14, window_bounds = array<i64: 1, 1>}, {transform_indices = @transform_15, window_bounds = array<i64: 1, 128>}]} {
    %c0 = arith.constant 0 : index
    %c0_0 = arith.constant 0 : index
    %0 = vector.load %arg1[%c0, %c0_0] : memref<4x128xf32, #tpu.memory_space<vmem>>, vector<4x128xf32>
    %c0_1 = arith.constant 0 : index
    %c0_2 = arith.constant 0 : index
    %1 = vector.load %arg2[%c0_1, %c0_2] : memref<32x4xf32, #tpu.memory_space<vmem>>, vector<32x4xf32>
    %2 = vector.extract_strided_slice %1 {offsets = [0, 0], sizes = [32, 1], strides = [1, 1]} : vector<32x4xf32> to vector<32x1xf32>
    %3 = vector.extract_strided_slice %0 {offsets = [0, 0], sizes = [1, 128], strides = [1, 1]} : vector<4x128xf32> to vector<1x128xf32>
    %4 = vector.broadcast %2 : vector<32x1xf32> to vector<32x128xf32>
    %5 = vector.broadcast %3 : vector<1x128xf32> to vector<32x128xf32>
    %6 = arith.mulf %4, %5 : vector<32x128xf32>
    %7 = vector.extract_strided_slice %1 {offsets = [0, 1], sizes = [32, 1], strides = [1, 1]} : vector<32x4xf32> to vector<32x1xf32>
    %8 = vector.extract_strided_slice %0 {offsets = [1, 0], sizes = [1, 128], strides = [1, 1]} : vector<4x128xf32> to vector<1x128xf32>
    %9 = vector.broadcast %7 : vector<32x1xf32> to vector<32x128xf32>
    %10 = vector.broadcast %8 : vector<1x128xf32> to vector<32x128xf32>
    %11 = arith.mulf %9, %10 : vector<32x128xf32>
    %12 = arith.addf %6, %11 : vector<32x128xf32>
    %13 = vector.extract_strided_slice %1 {offsets = [0, 2], sizes = [32, 1], strides = [1, 1]} : vector<32x4xf32> to vector<32x1xf32>
    %14 = vector.extract_strided_slice %0 {offsets = [2, 0], sizes = [1, 128], strides = [1, 1]} : vector<4x128xf32> to vector<1x128xf32>
    %15 = vector.broadcast %13 : vector<32x1xf32> to vector<32x128xf32>
    %16 = vector.broadcast %14 : vector<1x128xf32> to vector<32x128xf32>
    %17 = arith.mulf %15, %16 : vector<32x128xf32>
    %18 = arith.addf %12, %17 : vector<32x128xf32>
    %19 = vector.extract_strided_slice %1 {offsets = [0, 3], sizes = [32, 1], strides = [1, 1]} : vector<32x4xf32> to vector<32x1xf32>
    %20 = vector.extract_strided_slice %0 {offsets = [3, 0], sizes = [1, 128], strides = [1, 1]} : vector<4x128xf32> to vector<1x128xf32>
    %21 = vector.broadcast %19 : vector<32x1xf32> to vector<32x128xf32>
    %22 = vector.broadcast %20 : vector<1x128xf32> to vector<32x128xf32>
    %23 = arith.mulf %21, %22 : vector<32x128xf32>
    %24 = arith.addf %18, %23 : vector<32x128xf32>
    %c0_3 = arith.constant 0 : index
    %c0_4 = arith.constant 0 : index
    %25 = vector.load %arg3[%c0_3, %c0_4] : memref<32x1xf32, #tpu.memory_space<vmem>>, vector<32x1xf32>
    %26 = vector.broadcast %25 : vector<32x1xf32> to vector<32x128xf32>
    %27 = arith.addf %24, %26 : vector<32x128xf32>
    %28 = math.sin %27 : vector<32x128xf32>
    %c0_5 = arith.constant 0 : index
    %c0_6 = arith.constant 0 : index
    %29 = vector.load %arg4[%c0_5, %c0_6] : memref<32x32xf32, #tpu.memory_space<vmem>>, vector<32x32xf32>
    %c0_7 = arith.constant 0 : index
    %c0_8 = arith.constant 0 : index
    %30 = vector.load %arg5[%c0_7, %c0_8] : memref<32x1xf32, #tpu.memory_space<vmem>>, vector<32x1xf32>
    %c0_9 = arith.constant 0 : index
    %c0_10 = arith.constant 0 : index
    %31 = vector.load %arg6[%c0_9, %c0_10] : memref<32x32xf32, #tpu.memory_space<vmem>>, vector<32x32xf32>
    %c0_11 = arith.constant 0 : index
    %c0_12 = arith.constant 0 : index
    %32 = vector.load %arg7[%c0_11, %c0_12] : memref<32x1xf32, #tpu.memory_space<vmem>>, vector<32x1xf32>
    %cst = arith.constant dense<0.000000e+00> : vector<32x128xf32>
    %33 = tpu.matmul %29, %28, %cst {dimension_numbers = #tpu.dot_dimension_numbers<[1], [0], [0], [1], [0, 0, 1, 1], [], []>} : vector<32x32xf32>, vector<32x128xf32>, vector<32x128xf32> -> vector<32x128xf32>
    %34 = vector.broadcast %30 : vector<32x1xf32> to vector<32x128xf32>
    %35 = arith.addf %33, %34 : vector<32x128xf32>
    %36 = arith.mulf %35, %35 : vector<32x128xf32>
    %37 = arith.mulf %35, %36 : vector<32x128xf32>
    %cst_13 = arith.constant 4.471500e-02 : f32
    %38 = vector.broadcast %cst_13 : f32 to vector<32x128xf32>
    %39 = arith.mulf %38, %37 : vector<32x128xf32>
    %40 = arith.addf %35, %39 : vector<32x128xf32>
    %cst_14 = arith.constant 0.797884583 : f32
    %41 = vector.broadcast %cst_14 : f32 to vector<32x128xf32>
    %42 = arith.mulf %41, %40 : vector<32x128xf32>
    %43 = math.tanh %42 : vector<32x128xf32>
    %cst_15 = arith.constant 1.000000e+00 : f32
    %44 = vector.broadcast %cst_15 : f32 to vector<32x128xf32>
    %45 = arith.addf %44, %43 : vector<32x128xf32>
    %cst_16 = arith.constant 5.000000e-01 : f32
    %46 = vector.broadcast %cst_16 : f32 to vector<32x128xf32>
    %47 = arith.mulf %46, %45 : vector<32x128xf32>
    %48 = arith.mulf %35, %47 : vector<32x128xf32>
    %cst_17 = arith.constant dense<0.000000e+00> : vector<32x128xf32>
    %49 = tpu.matmul %31, %48, %cst_17 {dimension_numbers = #tpu.dot_dimension_numbers<[1], [0], [0], [1], [0, 0, 1, 1], [], []>} : vector<32x32xf32>, vector<32x128xf32>, vector<32x128xf32> -> vector<32x128xf32>
    %50 = vector.broadcast %32 : vector<32x1xf32> to vector<32x128xf32>
    %51 = arith.addf %49, %50 : vector<32x128xf32>
    %52 = arith.addf %28, %51 : vector<32x128xf32>
    %53 = arith.mulf %52, %52 : vector<32x128xf32>
    %54 = arith.mulf %52, %53 : vector<32x128xf32>
    %cst_18 = arith.constant 4.471500e-02 : f32
    %55 = vector.broadcast %cst_18 : f32 to vector<32x128xf32>
    %56 = arith.mulf %55, %54 : vector<32x128xf32>
    %57 = arith.addf %52, %56 : vector<32x128xf32>
    %cst_19 = arith.constant 0.797884583 : f32
    %58 = vector.broadcast %cst_19 : f32 to vector<32x128xf32>
    %59 = arith.mulf %58, %57 : vector<32x128xf32>
    %60 = math.tanh %59 : vector<32x128xf32>
    %cst_20 = arith.constant 1.000000e+00 : f32
    %61 = vector.broadcast %cst_20 : f32 to vector<32x128xf32>
    %62 = arith.addf %61, %60 : vector<32x128xf32>
    %cst_21 = arith.constant 5.000000e-01 : f32
    %63 = vector.broadcast %cst_21 : f32 to vector<32x128xf32>
    %64 = arith.mulf %63, %62 : vector<32x128xf32>
    %65 = arith.mulf %52, %64 : vector<32x128xf32>
    %c0_22 = arith.constant 0 : index
    %c0_23 = arith.constant 0 : index
    %66 = vector.load %arg8[%c0_22, %c0_23] : memref<32x32xf32, #tpu.memory_space<vmem>>, vector<32x32xf32>
    %cst_24 = arith.constant dense<0.000000e+00> : vector<32x128xf32>
    %67 = tpu.matmul %66, %65, %cst_24 {dimension_numbers = #tpu.dot_dimension_numbers<[1], [0], [0], [1], [0, 0, 1, 1], [], []>} : vector<32x32xf32>, vector<32x128xf32>, vector<32x128xf32> -> vector<32x128xf32>
    %c0_25 = arith.constant 0 : index
    %c0_26 = arith.constant 0 : index
    %68 = vector.load %arg9[%c0_25, %c0_26] : memref<32x1xf32, #tpu.memory_space<vmem>>, vector<32x1xf32>
    %69 = vector.broadcast %68 : vector<32x1xf32> to vector<32x128xf32>
    %70 = arith.addf %67, %69 : vector<32x128xf32>
    %71 = arith.mulf %70, %70 : vector<32x128xf32>
    %72 = arith.mulf %70, %71 : vector<32x128xf32>
    %cst_27 = arith.constant 4.471500e-02 : f32
    %73 = vector.broadcast %cst_27 : f32 to vector<32x128xf32>
    %74 = arith.mulf %73, %72 : vector<32x128xf32>
    %75 = arith.addf %70, %74 : vector<32x128xf32>
    %cst_28 = arith.constant 0.797884583 : f32
    %76 = vector.broadcast %cst_28 : f32 to vector<32x128xf32>
    %77 = arith.mulf %76, %75 : vector<32x128xf32>
    %78 = math.tanh %77 : vector<32x128xf32>
    %cst_29 = arith.constant 1.000000e+00 : f32
    %79 = vector.broadcast %cst_29 : f32 to vector<32x128xf32>
    %80 = arith.addf %79, %78 : vector<32x128xf32>
    %cst_30 = arith.constant 5.000000e-01 : f32
    %81 = vector.broadcast %cst_30 : f32 to vector<32x128xf32>
    %82 = arith.mulf %81, %80 : vector<32x128xf32>
    %83 = arith.mulf %70, %82 : vector<32x128xf32>
    %c0_31 = arith.constant 0 : index
    %c0_32 = arith.constant 0 : index
    %84 = vector.load %arg10[%c0_31, %c0_32] : memref<32x32xf32, #tpu.memory_space<vmem>>, vector<32x32xf32>
    %c0_33 = arith.constant 0 : index
    %c0_34 = arith.constant 0 : index
    %85 = vector.load %arg11[%c0_33, %c0_34] : memref<32x1xf32, #tpu.memory_space<vmem>>, vector<32x1xf32>
    %c0_35 = arith.constant 0 : index
    %c0_36 = arith.constant 0 : index
    %86 = vector.load %arg12[%c0_35, %c0_36] : memref<32x32xf32, #tpu.memory_space<vmem>>, vector<32x32xf32>
    %c0_37 = arith.constant 0 : index
    %c0_38 = arith.constant 0 : index
    %87 = vector.load %arg13[%c0_37, %c0_38] : memref<32x1xf32, #tpu.memory_space<vmem>>, vector<32x1xf32>
    %cst_39 = arith.constant dense<0.000000e+00> : vector<32x128xf32>
    %88 = tpu.matmul %84, %83, %cst_39 {dimension_numbers = #tpu.dot_dimension_numbers<[1], [0], [0], [1], [0, 0, 1, 1], [], []>} : vector<32x32xf32>, vector<32x128xf32>, vector<32x128xf32> -> vector<32x128xf32>
    %89 = vector.broadcast %85 : vector<32x1xf32> to vector<32x128xf32>
    %90 = arith.addf %88, %89 : vector<32x128xf32>
    %91 = arith.mulf %90, %90 : vector<32x128xf32>
    %92 = arith.mulf %90, %91 : vector<32x128xf32>
    %cst_40 = arith.constant 4.471500e-02 : f32
    %93 = vector.broadcast %cst_40 : f32 to vector<32x128xf32>
    %94 = arith.mulf %93, %92 : vector<32x128xf32>
    %95 = arith.addf %90, %94 : vector<32x128xf32>
    %cst_41 = arith.constant 0.797884583 : f32
    %96 = vector.broadcast %cst_41 : f32 to vector<32x128xf32>
    %97 = arith.mulf %96, %95 : vector<32x128xf32>
    %98 = math.tanh %97 : vector<32x128xf32>
    %cst_42 = arith.constant 1.000000e+00 : f32
    %99 = vector.broadcast %cst_42 : f32 to vector<32x128xf32>
    %100 = arith.addf %99, %98 : vector<32x128xf32>
    %cst_43 = arith.constant 5.000000e-01 : f32
    %101 = vector.broadcast %cst_43 : f32 to vector<32x128xf32>
    %102 = arith.mulf %101, %100 : vector<32x128xf32>
    %103 = arith.mulf %90, %102 : vector<32x128xf32>
    %cst_44 = arith.constant dense<0.000000e+00> : vector<32x128xf32>
    %104 = tpu.matmul %86, %103, %cst_44 {dimension_numbers = #tpu.dot_dimension_numbers<[1], [0], [0], [1], [0, 0, 1, 1], [], []>} : vector<32x32xf32>, vector<32x128xf32>, vector<32x128xf32> -> vector<32x128xf32>
    %105 = vector.broadcast %87 : vector<32x1xf32> to vector<32x128xf32>
    %106 = arith.addf %104, %105 : vector<32x128xf32>
    %107 = arith.addf %83, %106 : vector<32x128xf32>
    %108 = arith.mulf %107, %107 : vector<32x128xf32>
    %109 = arith.mulf %107, %108 : vector<32x128xf32>
    %cst_45 = arith.constant 4.471500e-02 : f32
    %110 = vector.broadcast %cst_45 : f32 to vector<32x128xf32>
    %111 = arith.mulf %110, %109 : vector<32x128xf32>
    %112 = arith.addf %107, %111 : vector<32x128xf32>
    %cst_46 = arith.constant 0.797884583 : f32
    %113 = vector.broadcast %cst_46 : f32 to vector<32x128xf32>
    %114 = arith.mulf %113, %112 : vector<32x128xf32>
    %115 = math.tanh %114 : vector<32x128xf32>
    %cst_47 = arith.constant 1.000000e+00 : f32
    %116 = vector.broadcast %cst_47 : f32 to vector<32x128xf32>
    %117 = arith.addf %116, %115 : vector<32x128xf32>
    %cst_48 = arith.constant 5.000000e-01 : f32
    %118 = vector.broadcast %cst_48 : f32 to vector<32x128xf32>
    %119 = arith.mulf %118, %117 : vector<32x128xf32>
    %120 = arith.mulf %107, %119 : vector<32x128xf32>
    %c0_49 = arith.constant 0 : index
    %c0_50 = arith.constant 0 : index
    %121 = vector.load %arg14[%c0_49, %c0_50] : memref<1x32xf32, #tpu.memory_space<vmem>>, vector<1x32xf32>
    %cst_51 = arith.constant dense<0.000000e+00> : vector<1x128xf32>
    %122 = tpu.matmul %121, %120, %cst_51 {dimension_numbers = #tpu.dot_dimension_numbers<[1], [0], [0], [1], [0, 0, 1, 1], [], []>} : vector<1x32xf32>, vector<32x128xf32>, vector<1x128xf32> -> vector<1x128xf32>
    %c0_52 = arith.constant 0 : index
    %c0_53 = arith.constant 0 : index
    %123 = vector.load %arg15[%c0_52, %c0_53] : memref<1x1xf32, #tpu.memory_space<vmem>>, vector<1x1xf32>
    %124 = vector.broadcast %123 : vector<1x1xf32> to vector<1x128xf32>
    %125 = arith.addf %122, %124 : vector<1x128xf32>
    %c0_54 = arith.constant 0 : index
    %c0_55 = arith.constant 0 : index
    %126 = vector.load %arg16[%c0_54, %c0_55] : memref<1x128xf32, #tpu.memory_space<vmem>>, vector<1x128xf32>
    tpu.vector_store %arg16[%c0_54, %c0_55], %125 {strides = array<i32>} : memref<1x128xf32, #tpu.memory_space<vmem>>, vector<1x128xf32>,
    return
  }
  func.func @transform_0(%arg0: i32) -> (i32, i32) {
    %c0_i32 = arith.constant 0 : i32
    %c0_i32_0 = arith.constant 0 : i32
    return %c0_i32, %arg0 : i32, i32
  }
  func.func @transform_1(%arg0: i32) -> (i32, i32) {
    %c0_i32 = arith.constant 0 : i32
    %c0_i32_0 = arith.constant 0 : i32
    %c0_i32_1 = arith.constant 0 : i32
    return %c0_i32, %c0_i32_0 : i32, i32
  }
  func.func @transform_2(%arg0: i32) -> (i32, i32) {
    %c0_i32 = arith.constant 0 : i32
    %c0_i32_0 = arith.constant 0 : i32
    %c0_i32_1 = arith.constant 0 : i32
    return %c0_i32, %c0_i32_0 : i32, i32
  }
  func.func @transform_3(%arg0: i32) -> (i32, i32) {
    %c0_i32 = arith.constant 0 : i32
    %c0_i32_0 = arith.constant 0 : i32
    %c0_i32_1 = arith.constant 0 : i32
    return %c0_i32, %c0_i32_0 : i32, i32
  }
  func.func @transform_4(%arg0: i32) -> (i32, i32) {
    %c0_i32 = arith.constant 0 : i32
    %c0_i32_0 = arith.constant 0 : i32
    %c0_i32_1 = arith.constant 0 : i32
    return %c0_i32, %c0_i32_0 : i32, i32
  }
  func.func @transform_5(%arg0: i32) -> (i32, i32) {
    %c0_i32 = arith.constant 0 : i32
    %c0_i32_0 = arith.constant 0 : i32
    %c0_i32_1 = arith.constant 0 : i32
    return %c0_i32, %c0_i32_0 : i32, i32
  }
  func.func @transform_6(%arg0: i32) -> (i32, i32) {
    %c0_i32 = arith.constant 0 : i32
    %c0_i32_0 = arith.constant 0 : i32
    %c0_i32_1 = arith.constant 0 : i32
    return %c0_i32, %c0_i32_0 : i32, i32
  }
  func.func @transform_7(%arg0: i32) -> (i32, i32) {
    %c0_i32 = arith.constant 0 : i32
    %c0_i32_0 = arith.constant 0 : i32
    %c0_i32_1 = arith.constant 0 : i32
    return %c0_i32, %c0_i32_0 : i32, i32
  }
  func.func @transform_8(%arg0: i32) -> (i32, i32) {
    %c0_i32 = arith.constant 0 : i32
    %c0_i32_0 = arith.constant 0 : i32
    %c0_i32_1 = arith.constant 0 : i32
    return %c0_i32, %c0_i32_0 : i32, i32
  }
  func.func @transform_9(%arg0: i32) -> (i32, i32) {
    %c0_i32 = arith.constant 0 : i32
    %c0_i32_0 = arith.constant 0 : i32
    %c0_i32_1 = arith.constant 0 : i32
    return %c0_i32, %c0_i32_0 : i32, i32
  }
  func.func @transform_10(%arg0: i32) -> (i32, i32) {
    %c0_i32 = arith.constant 0 : i32
    %c0_i32_0 = arith.constant 0 : i32
    %c0_i32_1 = arith.constant 0 : i32
    return %c0_i32, %c0_i32_0 : i32, i32
  }
  func.func @transform_11(%arg0: i32) -> (i32, i32) {
    %c0_i32 = arith.constant 0 : i32
    %c0_i32_0 = arith.constant 0 : i32
    %c0_i32_1 = arith.constant 0 : i32
    return %c0_i32, %c0_i32_0 : i32, i32
  }
  func.func @transform_12(%arg0: i32) -> (i32, i32) {
    %c0_i32 = arith.constant 0 : i32
    %c0_i32_0 = arith.constant 0 : i32
    %c0_i32_1 = arith.constant 0 : i32
    return %c0_i32, %c0_i32_0 : i32, i32
  }
  func.func @transform_13(%arg0: i32) -> (i32, i32) {
    %c0_i32 = arith.constant 0 : i32
    %c0_i32_0 = arith.constant 0 : i32
    %c0_i32_1 = arith.constant 0 : i32
    return %c0_i32, %c0_i32_0 : i32, i32
  }
  func.func @transform_14(%arg0: i32) -> (i32, i32) {
    %c0_i32 = arith.constant 0 : i32
    %c0_i32_0 = arith.constant 0 : i32
    %c0_i32_1 = arith.constant 0 : i32
    return %c0_i32, %c0_i32_0 : i32, i32
  }
  func.func @transform_15(%arg0: i32) -> (i32, i32) {
    %c0_i32 = arith.constant 0 : i32
    %c0_i32_0 = arith.constant 0 : i32
    return %c0_i32, %arg0 : i32, i32
  }
}

</mosaic_0001>

<bundles_post_ra>
// kernel: tpu_custom_call.1
= control target key start
LH: loop header
LB: loop body
LE: loop exit
PB: predicated region body
PF: predicated region fallthrough
CT: control target
= control target key end

     0   :  { %s3062_s0 = inlined_call_operand.vmem [shape: f32[4,256], index: 0, kind: input, shape index: {}]   ;;  %s3063_s1 = inlined_call_operand.vmem [shape: f32[32,4], index: 1, kind: input, shape index: {}]   ;;  %s3064_s2 = inlined_call_operand.vmem [shape: f32[32,1], index: 2, kind: input, shape index: {}]   ;;  %s3065_s3 = inlined_call_operand.vmem [shape: f32[32,32], index: 3, kind: input, shape index: {}]   ;;  %s3066_s4 = inlined_call_operand.vmem [shape: f32[32,1], index: 4, kind: input, shape index: {}]   ;;  %s3067_s5 = inlined_call_operand.vmem [shape: f32[32,32], index: 5, kind: input, shape index: {}]   ;;  %s3068_s6 = inlined_call_operand.vmem [shape: f32[32,1], index: 6, kind: input, shape index: {}]   ;;  %s3069_s7 = inlined_call_operand.vmem [shape: f32[32,32], index: 7, kind: input, shape index: {}]   ;;  %s3070_s8 = inlined_call_operand.vmem [shape: f32[32,1], index: 8, kind: input, shape index: {}]   ;;  %s3071_s9 = inlined_call_operand.vmem [shape: f32[32,32], index: 9, kind: input, shape index: {}]   ;;  %s3072_s10 = inlined_call_operand.vmem [shape: f32[32,1], index: 10, kind: input, shape index: {}]   ;;  %s3073_s11 = inlined_call_operand.vmem [shape: f32[32,32], index: 11, kind: input, shape index: {}]   ;;  %s3074_s12 = inlined_call_operand.vmem [shape: f32[32,1], index: 12, kind: input, shape index: {}]   ;;  %s3075_s13 = inlined_call_operand.vmem [shape: f32[1,32], index: 13, kind: input, shape index: {}]   ;;  %s3076_s14 = inlined_call_operand.<no memory space> [shape: f32[1,1], index: 14, kind: input, shape index: {}]   ;;  %s3077_s15 = inlined_call_operand.hbm [shape: f32[1,256], index: 15, kind: output, shape index: {}]  }
   0x1   :  { %3079 = sst [smem:[#allocation8_spill]] %s3063_s1  ;;  %v20_v0 = vstv %s3076_s14 }
   0x2   :  { %3080 = sst [smem:[#allocation9_spill]] %s3064_s2  ;;  %21 = vst [vmem:[#allocation2] sm:$0x1] %v20_v0 }
   0x3   :  { %22 = vsyncpa [#allocation4], 0 }
   0x4   :  { %24 = vsyncpa [#allocation4 + $0x1], 0  ;;  %s2189_s20 = smov 0   ;;  %s2191_s21 = smov 0  }
   0x5   :  { %s2193_s22 = smov 0   ;;  %s2195_s23 = smov 0  }
   0x6 LB: > { %3081 = sst [smem:[#allocation6_spill]] %s2090_s22  ;;  %s2210_s14 = sadd.s32 4294967295, %s2094_s23   ;;  %s2094_s23 = sphi %s2195_s23, %s3099_s23   ;;  %s2090_s22 = sphi %s2193_s22, %s3096_s22   ;;  %s2086_s21 = sphi %s2191_s21, %s3098_s21   ;;  %s2082_s20 = sphi %s2189_s20, %s3097_s20  }
   0x7   : > { %s1878_s24 = sadd.s32 4294967294, %s2094_s23   ;;  %s2214_s25 = sadd.s32 1, %s2094_s23  }
   0x8   : > { %s357_s26 = sadd.s32 1, %s2090_s22  ;;  %s354_s27 = ssub.s32 %s2094_s23, %s2214_s25 }
   0x9   : > { %p367_p0 = scmp.ne.s32.totalorder %s2090_s22, %s2086_s21  ;;  %p355_p1 = scmp.eq.s32.totalorder %s354_s27, 0 }
   0xa   : > { %p368_p2 = scmp.eq.s32.totalorder %s2210_s14, 1  ;;  %p373_p3 = scmp.ne.s32.totalorder %s2086_s21, %s2082_s20 }
   0xb   : > { %p374_p4 = scmp.eq.s32.totalorder %s1878_s24, 1  ;;  %p1881_p7 = scmp.ge.s32.totalorder %s2094_s23, 1 }
   0xc   : > { %s2225_s28 = scalar_select %p355_p1, %s2090_s22, %s357_s26  }
   0xd   : > { %p2227_p5 = por %p368_p2, %p367_p0  ;;  %p2231_p6 = por %p374_p4, %p373_p3 }
   0xe   : > { %3082 = sst [smem:[#allocation7_spill]] %s2225_s28  ;;  %p441_p8 = scmp.lt.s32.totalorder %s2094_s23, 3 }
  0x10   : > { %p442_p9 = pnand %p1881_p7, %p441_p8 }
  0x11   : > { %s3085_s1 = sld [smem:[#allocation8_spill]] (!%p442_p9)  ;;  %p487_p10 = scmp.lt.s32.totalorder (!%p442_p9), %s2210_s14, 1 }
  0x12   : > { %445 = sbr.rel (%p442_p9) target bundleno = 1398 (0x576), region = 80  ;;  %s3086_s2 = sld [smem:[#allocation9_spill]] (!%p442_p9) }
  0x13   : > { %s2052_s24 = scalar_lea.hbm (!%p442_p9), %s3077_s15, 2 }
  0x17   : > { %v495_v1 = vld [vmem:[%s3085_s1 + $0x18] sm:$0xff]  ;;  %v494_v2 = vld [vmem:[%s3085_s1 + $0x10] sm:$0xff]  ;;  %v2096_v3 = vmov 2   ;;  %v2097_v4 = vmov 0   ;;  %v493_v5 = vld [vmem:[%s3085_s1 + $0x8] sm:$0xff]  ;;  %v2098_v6 = vmov 1  }
  0x18   : > { %1979 = vset.pattern.permute.xlu2 %v2096_v3  ;;  %1977 = vset.pattern.permute.xlu1 %v2097_v4  ;;  %v2099_v7 = vmov 3   ;;  %v492_v8 = vld [vmem:[%s3085_s1] sm:$0xff]  ;;  %v597_v9 = vld [vmem:[%s3086_s2 + $0x8] sm:$0xff]  ;;  %v599_v11 = vld [vmem:[%s3086_s2 + $0x18] sm:$0xff]  ;;  %s488_s22 = scalar_select %p487_p10, %s2210_s14, 1 }
  0x19   : > { %1975 = vset.pattern.permute.xlu0 %v2097_v4  ;;  %559 = vperm.xlu2 %1979, %v495_v1   ;;  %v1248_v10 = vld [vmem:[%s3066_s4] sm:$0xff]  ;;  %v1257_v12 = vld [vmem:[%s3068_s6 + $0x8] sm:$0xff]  ;;  %v598_v13 = vld [vmem:[%s3086_s2 + $0x10] sm:$0xff] }
  0x1a   : > { %513 = vperm.xlu0 %1975, %v495_v1   ;;  %508 = vperm.xlu1 %1977, %v494_v2   ;;  %v1465_v14 = vld [vmem:[%s3070_s8 + $0x10] sm:$0xff]  ;;  %v596_v15 = vld [vmem:[%s3086_s2] sm:$0xff]  ;;  %v1251_v16 = vld [vmem:[%s3066_s4 + $0x18] sm:$0xff]  ;;  %s1882_s16 = sshll.u32 %s488_s22, 2  ;;  %s1819_s22 = scalar_lea.hbm %s3077_s15, %s2210_s14 }
  0x1b   : > { %v1571_v17 = vld [vmem:[%s3072_s10 + $0x18] sm:$0xff]  ;;  %v1250_v18 = vld [vmem:[%s3066_s4 + $0x10] sm:$0xff]  ;;  %v1249_v19 = vld [vmem:[%s3066_s4 + $0x8] sm:$0xff]  ;;  %s490_s19 = scalar_lea.vmem %s3062_s0, %s1882_s16  ;;  %s1823_s27 = sshll.u32 %s1819_s22, 4  ;;  %s1824_s27 = int_to_ptr.hbm [resolvable:$true] %s1823_s27 }
  0x1c   : > { %v1568_v20 = vld [vmem:[%s3072_s10] sm:$0xff]  ;;  %v1259_v21 = vld [vmem:[%s3068_s6 + $0x18] sm:$0xff]  ;;  %v1258_v22 = vld [vmem:[%s3068_s6 + $0x10] sm:$0xff]  ;;  %s2046_s16 = sshra.s32 %s1824_s27, 4  ;;  %s2047_s16 = int_to_ptr.hbm [resolvable:$true] %s2046_s16 }
  0x1d   : > { %v1577_v23 = vld [vmem:[%s3074_s12 + $0x8] sm:$0xff]  ;;  %v1256_v24 = vld [vmem:[%s3068_s6] sm:$0xff]  ;;  %v1466_v25 = vld [vmem:[%s3070_s8 + $0x18] sm:$0xff]  ;;  %s2048_s17 = scalar_lea.hbm %s2047_s16, 1  ;;  %p2053_p0 = scmp.lt.s32.totalorder %s2047_s16, %s3077_s15 }
  0x1e   : > { %v1464_v26 = vld [vmem:[%s3070_s8 + $0x8] sm:$0xff]  ;;  %v1463_v28 = vld [vmem:[%s3070_s8] sm:$0xff]  ;;  %v1570_v29 = vld [vmem:[%s3072_s10 + $0x10] sm:$0xff]  ;;  %p2049_p11 = scmp.ne.s32.totalorder %s2047_s16, %s2048_s17  ;;  %p2054_p1 = scmp.lt.s32.totalorder %s2052_s24, %s2048_s17 }
  0x1f   : > { %v1569_v30 = vld [vmem:[%s3072_s10 + $0x8] sm:$0xff]  ;;  %v1579_v32 = vld [vmem:[%s3074_s12 + $0x18] sm:$0xff]  ;;  %v1578_v33 = vld [vmem:[%s3074_s12 + $0x10] sm:$0xff] }
  0x20   : > { %v1576_v37 = vld [vmem:[%s3074_s12] sm:$0xff]  ;;  %p2050_p12 = pnand %p2049_p11, %p2227_p5  ;;  %p2055_p2 = por %p2054_p1, %p2053_p0 }
  0x21   : > { %1980 = vset.pattern.permute.xlu2 %v2097_v4  ;;  %v1779_v38 = vld [vmem:[#allocation2] sm:$0x1] }
  0x22   : > { %1976 = vset.pattern.permute.xlu0 %v2098_v6  ;;  %1978 = vset.pattern.permute.xlu1 %v2098_v6  ;;  %v491_v39 = vld [vmem:[%s490_s19] sm:$0xf]  ;;  %s485_s19 = sand.u32 1, %s2086_s21   ;;  %p2051_p13 = pneg %p2050_p12 }
  0x23   : > { %534 = vperm.xlu0 %1976, %v495_v1   ;;  %530 = vperm.xlu1 %1978, %v494_v2   ;;  %v2335_v40 = vperm.slane %v491_v39, 1  ;;  %v2338_v43 = vperm.slane %v491_v39, 0  ;;  %v2342_v48 = vperm.slane %v491_v39, 2  ;;  %v2346_v53 = vperm.slane %v491_v39, 3  ;;  %s486_s28 = scalar_lea.vmem [#allocation3], %s485_s19  ;;  %s1811_s1 = scalar_lea.sflag [#allocation4], %s485_s19 }
  0x24   : > { %503 = vperm.xlu2 %1980, %v493_v5   ;;  %s1821_s26 = sshll.u32 %s486_s28, 4  ;;  %p2056_p3 = pnand %p2055_p2, %p2051_p13  ;;  %s1822_s26 = int_to_ptr.vmem [resolvable:$true] %s1821_s26 }
  0x2b   : > { %1982 = vset.pattern.permute.xlu0 %v2099_v7  ;;  %526 = vperm.xlu1 %1978, %v493_v5  }
  0x2c   : > { %1981 = vset.pattern.permute.xlu2 %v2096_v3  ;;  %584 = vperm.xlu0 %1982, %v495_v1  }
  0x2d   : > { %555 = vperm.xlu2 %1981, %v494_v2  }
  0x33   : > { %1983 = vset.pattern.permute.xlu1 %v2097_v4 }
  0x34   : > { %1987 = vset.pattern.permute.xlu0 %v2096_v3  ;;  %498 = vperm.xlu1 %1983, %v492_v8  }
  0x35   : > { %1984 = vset.pattern.permute.xlu2 %v2098_v6  ;;  %547 = vperm.xlu0 %1987, %v492_v8  }
  0x36   : > { %522 = vperm.xlu2 %1984, %v492_v8  }
  0x3c   : > { %1985 = vset.pattern.permute.xlu1 %v2096_v3 }
  0x3d   : > { %1990 = vset.pattern.permute.xlu0 %v2097_v4  ;;  %551 = vperm.xlu1 %1985, %v493_v5  }
  0x3e   : > { %1986 = vset.pattern.permute.xlu2 %v2099_v7  ;;  %607 = vperm.xlu0 %1990, %v597_v9  }
  0x3f   : > { %580 = vperm.xlu2 %1986, %v494_v2  }
  0x45   : > { %1988 = vset.pattern.permute.xlu1 %v2099_v7 }
  0x46   : > { %1262 = vperm.xlu0 %1990, %v1248_v10   ;;  %576 = vperm.xlu1 %1988, %v493_v5  }
  0x47   : > { %1989 = vset.pattern.permute.xlu2 %v2097_v4 }
  0x48   : > { %617 = vperm.xlu2 %1989, %v599_v11  }
  0x4e   : > { %1365 = vperm.xlu0 %1990, %v1257_v12   ;;  %572 = vperm.xlu1 %1988, %v492_v8  }
  0x50   : > { %612 = vperm.xlu2 %1989, %v598_v13  }
  0x56   : > { %1479 = vperm.xlu0 %1990, %v1465_v14   ;;  %1991 = vset.pattern.permute.xlu1 %v2097_v4 }
  0x57   : > { %602 = vperm.xlu1 %1991, %v596_v15  }
  0x58   : > { %1277 = vperm.xlu2 %1989, %v1251_v16  }
  0x5e   : > { %1597 = vperm.xlu0 %1990, %v1571_v17  }
  0x5f   : > { %1272 = vperm.xlu1 %1991, %v1250_v18  }
  0x60   : > { %1267 = vperm.xlu2 %1989, %v1249_v19  }
  0x66   : > { %1582 = vperm.xlu0 %1990, %v1568_v20  }
  0x67   : > { %1375 = vperm.xlu1 %1991, %v1259_v21  }
  0x68   : > { %1370 = vperm.xlu2 %1989, %v1258_v22  }
  0x6e   : > { %1684 = vperm.xlu0 %1990, %v1577_v23  }
  0x6f   : > { %1360 = vperm.xlu1 %1991, %v1256_v24  }
  0x70   : > { %1484 = vperm.xlu2 %1989, %v1466_v25   ;;  %v2100_v25 = vmov 2475754826  }
  0x73   : > { %v560_v27 = vpop.permute.xlu2 %559 }
  0x74   : > { %v566_v51 = vmul.f32 %v2342_v48, %v560_v27  ;;  %v2101_v27 = vmov 2131351028  }
  0x77   : > { %1474 = vperm.xlu1 %1991, %v1464_v26  }
  0x78   : > { %1469 = vperm.xlu2 %1989, %v1463_v28  }
  0x7e   : > { %v2319_v31 = vpop.permute.xlu2 %503 }
  0x7f   : > { %1592 = vperm.xlu1 %1991, %v1570_v29  }
  0x80   : > { %1587 = vperm.xlu2 %1989, %v1569_v30   ;;  %v2102_v30 = vmov 2102212464  }
  0x87   : > { %1694 = vperm.xlu1 %1991, %v1579_v32   ;;  %v556_v34 = vpop.permute.xlu2 %555 }
  0x88   : > { %1689 = vperm.xlu2 %1989, %v1578_v33   ;;  %v565_v59 = vmul.f32 %v2342_v48, %v556_v34  ;;  %v2103_v34 = vmov 920167782  }
  0x8c   : > { %v509_v35 = vpop.permute.xlu1 %508  ;;  %v514_v36 = vpop.permute.xlu0 %513 }
  0x8d   : > { %v520_v46 = vmul.f32 %v2338_v43, %v514_v36  ;;  %v519_v56 = vmul.f32 %v2338_v43, %v509_v35 }
  0x8f   : > { %1679 = vperm.xlu1 %1991, %v1576_v37   ;;  %v2104_v37 = vmov 1326507024  }
  0x90   : > { %1782 = vperm.xlu2 %1989, %v1779_v38   ;;  %v523_v41 = vpop.permute.xlu2 %522 }
  0x91   : > { %v538_v42 = vmul.f32 %v2335_v40, %v523_v41 }
  0x95   : > { %v535_v44 = vpop.permute.xlu0 %534  ;;  %v531_v45 = vpop.permute.xlu1 %530 }
  0x96   : > { %v541_v47 = vmul.f32 %v2335_v40, %v535_v44  ;;  %v540_v52 = vmul.f32 %v2335_v40, %v531_v45 }
  0x98   : > { %v545_v50 = vadd.f32 %v541_v47, %v520_v46  ;;  %v544_v60 = vadd.f32 %v540_v52, %v519_v56 }
  0x99   : > { %v581_v49 = vpop.permute.xlu2 %580 }
  0x9a   : > { %v570_v58 = vadd.f32 %v566_v51, %v545_v50  ;;  %v590_v0 = vmul.f32 %v2346_v53, %v581_v49  ;;  %v569_v2 = vadd.f32 %v565_v59, %v544_v60  ;;  %v518_v60 = vmul.f32 %v2338_v43, %v2319_v31 }
  0x9c   : > { %v594_v11 = vadd.f32 %v590_v0, %v569_v2 }
  0x9d   : > { %v2348_v54 = vpop.permute.xlu1 %526 }
  0x9e   : > { %v585_v55 = vpop.permute.xlu0 %584  ;;  %v539_v59 = vmul.f32 %v2335_v40, %v2348_v54 }
  0x9f   : > { %v591_v57 = vmul.f32 %v2346_v53, %v585_v55  ;;  %v2105_v55 = vmov 683565275  }
  0xa0   : > { %v543_v54 = vadd.f32 %v539_v59, %v518_v60 }
  0xa1   : > { %v595_v61 = vadd.f32 %v591_v57, %v570_v58 }
  0xa2   : > { %v618_v62 = vpop.permute.xlu2 %617 }
  0xa3   : > { %v2353_v63 = vadd.f32 %v618_v62, %v595_v61 }
  0xa5   : > { %v1092_v1 = vand.u32 2139095040, %v2353_v63  ;;  %v1089_v16 = vand.u32 2147483647, %v2353_v63 }
  0xa6   : > { %v499_v3 = vpop.permute.xlu1 %498 }
  0xa7   : > { %v1093_v5 = vshrl.u32 %v1092_v1, 23  ;;  %v517_v6 = vmul.f32 %v2338_v43, %v499_v3  ;;  %v548_v7 = vpop.permute.xlu0 %547  ;;  %v1096_v23 = vand.u32 8388607, %v1089_v16 }
  0xa8   : > { %v563_v8 = vmul.f32 %v2342_v48, %v548_v7 }
  0xa9   : > { %v1892_v9 = vadd.s32 4294967169, %v1093_v5  ;;  %v542_v10 = vadd.f32 %v538_v42, %v517_v6  ;;  %v1097_v46 = vor.u32 8388608, %v1096_v23 }
  0xaa   : > { %v613_v12 = vpop.permute.xlu2 %612 }
  0xab   : > { %v1099_v13 = vadd.s32 1, %v1892_v9  ;;  %v2359_v14 = vadd.f32 %v563_v8, %v542_v10  ;;  %v2361_v15 = vadd.f32 %v613_v12, %v594_v11  ;;  %v2400_v1 = vshll.u32 %v1097_v46, 8 }
  0xad   : > { %vm1100_vm0 = vcmp.gt.s32.totalorder %v1099_v13, 0  ;;  %v937_v18 = vand.u32 2139095040, %v2361_v15  ;;  %v934_v58 = vand.u32 2147483647, %v2361_v15  ;;  %v1138_v9 = vand.u32 65535, %v2400_v1 }
  0xae   : > { %v1101_v17 = vsel %vm1100_vm0, %v1099_v13, 0  ;;  %v2416_v10 = vshrl.u32 %v2400_v1, 16 }
  0xaf   : > { %v1103_v19 = vand.u32 31, %v1101_v17  ;;  %v552_v20 = vpop.permute.xlu1 %551  ;;  %v938_v22 = vshrl.u32 %v937_v18, 23  ;;  %v2367_v24 = vshrl.u32 %v1101_v17, 5  ;;  %v941_v40 = vand.u32 8388607, %v934_v58 }
  0xb0   : > { %v564_v3 = vmul.f32 %v2342_v48, %v552_v20 }
  0xb1   : > { %v1104_v21 = vsub.s32 32, %v1103_v19  ;;  %v1109_v26 = vshll.u32 %v2100_v25, %v1103_v19  ;;  %v1112_v29 = vshll.u32 %v2101_v27, %v1103_v19  ;;  %v1115_v33 = vshll.u32 %v2102_v30, %v1103_v19 }
  0xb2   : > { %v1118_v36 = vshll.u32 %v2103_v34, %v1103_v19  ;;  %v1889_v42 = vadd.s32 4294967169, %v938_v22  ;;  %vm1121_vm1 = vcmp.lt.s32.totalorder %v2367_v24, 1  ;;  %vm1124_vm2 = vcmp.lt.s32.totalorder %v2367_v24, 4 }
  0xb3   : > { %v1110_v28 = vshrl.u32 %v2101_v27, %v1104_v21  ;;  %v1113_v32 = vshrl.u32 %v2102_v30, %v1104_v21  ;;  %v1116_v35 = vshrl.u32 %v2103_v34, %v1104_v21  ;;  %v1119_v38 = vshrl.u32 %v2104_v37, %v1104_v21 }
  0xb4   : > { %v1107_v47 = vshrl.u32 %v2100_v25, %v1104_v21  ;;  %vm1123_vm3 = vcmp.lt.s32.totalorder %v2367_v24, 3  ;;  %v944_v51 = vadd.s32 1, %v1889_v42  ;;  %v1106_v56 = vshll.u32 %v2105_v55, %v1103_v19 }
  0xb5   : > { %v1111_v39 = vor.u32 %v1110_v28, %v1109_v26  ;;  %v1114_v41 = vor.u32 %v1113_v32, %v1112_v29  ;;  %v1117_v44 = vor.u32 %v1116_v35, %v1115_v33  ;;  %v1120_v45 = vor.u32 %v1119_v38, %v1118_v36 }
  0xb6   : > { %vm1122_vm4 = vcmp.lt.s32.totalorder %v2367_v24, 2  ;;  %vm945_vm5 = vcmp.gt.s32.totalorder %v944_v51, 0  ;;  %v1108_v61 = vor.u32 %v1107_v47, %v1106_v56  ;;  %v1105_v6 = vshrl.u32 %v2105_v55, %v1104_v21 }
  0xb7   : > { %v1133_v49 = vsel %vm1121_vm1, %v1111_v39, %v1114_v41  ;;  %v1134_v50 = vsel %vm1124_vm2, %v1120_v45, 1326507024  ;;  %v1130_v0 = vsel %vm1124_vm2, %v1117_v44, 920167782  ;;  %v946_v2 = vsel %vm945_vm5, %v944_v51, 0 }
  0xb8   : > { %v577_v52 = vpop.permute.xlu1 %576  ;;  %v1135_v57 = vsel %vm1123_vm3, %v1117_v44, %v1134_v50  ;;  %v1126_v31 = vsel %vm1124_vm2, %v1114_v41, 2102212464  ;;  %v1129_v7 = vsel %vm1121_vm1, %v1108_v61, %v1111_v39  ;;  %v1131_v8 = vsel %vm1123_vm3, %v1114_v41, %v1130_v0  ;;  %v608_v50 = vpop.permute.xlu0 %607 }
  0xb9   : > { %v2396_v62 = vsel %vm1122_vm4, %v1133_v49, %v1135_v57  ;;  %v589_v5 = vmul.f32 %v2346_v53, %v577_v52  ;;  %v948_v48 = vand.u32 31, %v946_v2  ;;  %v568_v11 = vadd.f32 %v564_v3, %v543_v54 }
  0xba   : > { %v1141_v43 = vshrl.u32 %v2396_v62, 16  ;;  %v1125_v12 = vsel %vm1121_vm1, %v1105_v6, %v1108_v61  ;;  %v1127_v13 = vsel %vm1123_vm3, %v1111_v39, %v1126_v31  ;;  %v942_v17 = vor.u32 8388608, %v941_v40 }
  0xbb   : > { %v949_v18 = vsub.s32 32, %v948_v48  ;;  %v1132_v19 = vsel %vm1122_vm4, %v1129_v7, %v1131_v8  ;;  %v2426_v21 = vshrl.u32 %v946_v2, 5  ;;  %v593_v22 = vadd.f32 %v589_v5, %v568_v11 }
  0xbc   : > { %v2424_v20 = vmul.u32 %v1141_v43, %v1138_v9  ;;  %v954_v26 = vshll.u32 %v2100_v25, %v948_v48  ;;  %v957_v29 = vshll.u32 %v2101_v27, %v948_v48  ;;  %v960_v32 = vshll.u32 %v2102_v30, %v948_v48 }
  0xbd   : > { %v955_v28 = vshrl.u32 %v2101_v27, %v949_v18  ;;  %v958_v33 = vshrl.u32 %v2102_v30, %v949_v18  ;;  %v961_v35 = vshrl.u32 %v2103_v34, %v949_v18  ;;  %v963_v36 = vshll.u32 %v2103_v34, %v948_v48 }
  0xbe   : > { %v964_v38 = vshrl.u32 %v2104_v37, %v949_v18  ;;  %v2438_v39 = vsel %vm1122_vm4, %v1125_v12, %v1127_v13  ;;  %v1140_v41 = vand.u32 65535, %v2396_v62  ;;  %v2441_v44 = vshll.u32 %v942_v17, 8 }
  0xbf   : > { %v956_v42 = vor.u32 %v955_v28, %v954_v26  ;;  %v1162_v45 = vand.u32 65535, %v1132_v19  ;;  %v959_v46 = vor.u32 %v958_v33, %v957_v29  ;;  %v962_v47 = vor.u32 %v961_v35, %v960_v32 }
  0xc0   : > { %v573_v23 = vpop.permute.xlu1 %572  ;;  %v965_v49 = vor.u32 %v964_v38, %v963_v36  ;;  %v1163_v51 = vshrl.u32 %v1132_v19, 16  ;;  %vm966_vm6 = vcmp.lt.s32.totalorder %v2426_v21, 1  ;;  %vm969_vm7 = vcmp.lt.s32.totalorder %v2426_v21, 4 }
  0xc1   : > { %v2445_v52 = vadd.f32 %v608_v50, %v593_v22  ;;  %v1146_v24 = vshll.u32 %v2424_v20, 16  ;;  %vm968_vm8 = vcmp.lt.s32.totalorder %v2426_v21, 3  ;;  %v978_v56 = vsel %vm966_vm6, %v956_v42, %v959_v46 }
  0xc2   : > { %v979_v57 = vsel %vm969_vm7, %v965_v49, 1326507024  ;;  %v1142_v59 = vmul.u32 %v1140_v41, %v1138_v9  ;;  %vm967_vm9 = vcmp.lt.s32.totalorder %v2426_v21, 2  ;;  %v2458_v62 = vmul.u32 %v1140_v41, %v2416_v10 }
  0xc3   : > { %v980_v60 = vsel %vm968_vm8, %v962_v47, %v979_v57  ;;  %v782_v61 = vand.u32 2139095040, %v2445_v52  ;;  %v952_v0 = vshrl.u32 %v2100_v25, %v949_v18  ;;  %v588_v3 = vmul.f32 %v2346_v53, %v573_v23 }
  0xc4   : > { %v2463_v2 = vsel %vm967_vm9, %v978_v56, %v980_v60  ;;  %v2466_v40 = vmul.u32 %v1163_v51, %v1138_v9  ;;  %v1182_v54 = vmul.u32 %v2400_v1, %v2438_v39  ;;  %vm1150_vm10 = vc.u32 %v1142_v59, %v1146_v24 }
  0xc5   : > { %v951_v31 = vshll.u32 %v2105_v55, %v948_v48  ;;  %v783_v5 = vshrl.u32 %v782_v61, 23  ;;  %v592_v7 = vadd.f32 %v588_v3, %v2359_v14  ;;  %v1152_v8 = vadd.s32 %v1146_v24, %v1142_v59 }
  0xc6   : > { %v2473_v11 = vand.u32 65535, %v2441_v44  ;;  %v2476_v12 = vshrl.u32 %v2441_v44, 16  ;;  %v986_v53 = vshrl.u32 %v2463_v2, 16  ;;  %v1145_v13 = vmul.u32 %v1141_v43, %v2416_v10 }
  0xc7   : > { %v1148_v17 = vshll.u32 %v2458_v62, 16  ;;  %v1164_v19 = vmul.u32 %v1162_v45, %v1138_v9  ;;  %v953_v22 = vor.u32 %v952_v0, %v951_v31  ;;  %v1151_v48 = vsel %vm1150_vm10, 1, %v2097_v4 }
  0xc8   : > { %v1886_v23 = vadd.s32 4294967169, %v783_v5  ;;  %v1168_v14 = vshll.u32 %v2466_v40, 16  ;;  %v2486_v28 = vmul.u32 %v1162_v45, %v2416_v10  ;;  %v1167_v29 = vmul.u32 %v1163_v51, %v2416_v10 }
  0xc9   : > { %v603_v6 = vpop.permute.xlu1 %602  ;;  %v950_v32 = vshrl.u32 %v2105_v55, %v949_v18  ;;  %v975_v43 = vsel %vm969_vm7, %v962_v47, 920167782  ;;  %v971_v9 = vsel %vm969_vm7, %v959_v46, 2102212464  ;;  %v2495_v33 = vmul.u32 %v986_v53, %v2473_v11 }
  0xca   : > { %v2482_v26 = vadd.f32 %v603_v6, %v592_v7  ;;  %v789_v35 = vadd.s32 1, %v1886_v23  ;;  %vm1154_vm11 = vc.u32 %v1152_v8, %v1148_v17  ;;  %v1153_v36 = vadd.s32 %v1151_v48, %v1145_v13 }
  0xcb   : > { %v970_v38 = vsel %vm966_vm6, %v950_v32, %v953_v22  ;;  %v974_v10 = vsel %vm966_vm6, %v953_v22, %v956_v42  ;;  %v976_v41 = vsel %vm968_vm8, %v959_v46, %v975_v43  ;;  %v985_v45 = vand.u32 65535, %v2463_v2 }
  0xcc   : > { %v627_v18 = vand.u32 2139095040, %v2482_v26  ;;  %vm790_vm12 = vcmp.gt.s32.totalorder %v789_v35, 0  ;;  %vm1172_vm13 = vc.u32 %v1164_v19, %v1168_v14  ;;  %v972_v47 = vsel %vm968_vm8, %v956_v42, %v971_v9 }
  0xcd   : > { %v1155_v50 = vsel %vm1154_vm11, 1, %v2097_v4  ;;  %v1173_v51 = vsel %vm1172_vm13, 1, %v2097_v4  ;;  %v991_v24 = vshll.u32 %v2495_v33, 16  ;;  %v791_v56 = vsel %vm790_vm12, %v789_v35, 0 }
  0xce   : > { %v628_v49 = vshrl.u32 %v627_v18, 23  ;;  %v1147_v57 = vshrl.u32 %v2424_v20, 16  ;;  %v1174_v59 = vadd.s32 %v1168_v14, %v1164_v19  ;;  %v977_v46 = vsel %vm967_vm9, %v974_v10, %v976_v41 }
  0xcf   : > { %v1170_v61 = vshll.u32 %v2486_v28, 16  ;;  %v1175_v0 = vadd.s32 %v1173_v51, %v1167_v29  ;;  %v2516_v42 = vsel %vm967_vm9, %v970_v38, %v972_v47  ;;  %v987_v2 = vmul.u32 %v985_v45, %v2473_v11 }
  0xd0   : > { %v1883_v60 = vadd.s32 4294967169, %v628_v49  ;;  %v1149_v3 = vshrl.u32 %v2458_v62, 16  ;;  %v1157_v31 = vadd.s32 %v1155_v50, %v1153_v36  ;;  %v2520_v5 = vand.u32 31, %v791_v56 }
  0xd1   : > { %v624_v20 = vand.u32 2147483647, %v2482_v26  ;;  %vm1176_vm14 = vc.u32 %v1174_v59, %v1170_v61  ;;  %vm995_vm15 = vc.u32 %v987_v2, %v991_v24  ;;  %v1007_v7 = vand.u32 65535, %v977_v46 }
  0xd2   : > { %v634_v6 = vadd.s32 1, %v1883_v60  ;;  %v1008_v8 = vshrl.u32 %v977_v46, 16  ;;  %v1177_v13 = vsel %vm1176_vm14, 1, %v2097_v4  ;;  %v2525_v21 = vmul.u32 %v985_v45, %v2476_v12 }
  0xd3   : > { %v1027_v17 = vmul.u32 %v2441_v44, %v2516_v42  ;;  %v1179_v62 = vadd.s32 %v1177_v13, %v1175_v0  ;;  %v990_v19 = vmul.u32 %v986_v53, %v2476_v12  ;;  %v1158_v48 = vadd.s32 %v1157_v31, %v1147_v57 }
  0xd4   : > { %vm635_vm0 = vcmp.gt.s32.totalorder %v634_v6, 0  ;;  %v1169_v23 = vshrl.u32 %v2466_v40, 16  ;;  %v996_v14 = vsel %vm995_vm15, 1, %v2097_v4  ;;  %v2533_v29 = vsub.s32 32, %v2520_v5 }
  0xd5   : > { %v636_v22 = vsel %vm635_vm0, %v634_v6, 0  ;;  %v631_v32 = vand.u32 8388607, %v624_v20  ;;  %v2538_v9 = vmul.u32 %v1007_v7, %v2473_v11  ;;  %v2541_v35 = vmul.u32 %v1008_v8, %v2473_v11 }
  0xd6   : > { %v638_v43 = vand.u32 31, %v636_v22  ;;  %v2544_v53 = vmul.u32 %v1007_v7, %v2476_v12  ;;  %v2547_v40 = vmul.u32 %v1008_v8, %v2476_v12  ;;  %v993_v36 = vshll.u32 %v2525_v21, 16 }
  0xd7   : > { %v997_v38 = vadd.s32 %v991_v24, %v987_v2  ;;  %v1180_v18 = vadd.s32 %v1179_v62, %v1169_v23  ;;  %v998_v41 = vadd.s32 %v996_v14, %v990_v19  ;;  %v2552_v45 = vshrl.u32 %v791_v56, 5 }
  0xd8   : > { %v2550_v10 = vsub.s32 32, %v638_v43  ;;  %v1159_v47 = vadd.s32 %v1158_v48, %v1149_v3  ;;  %v1171_v49 = vshrl.u32 %v2486_v28, 16  ;;  %v806_v11 = vshrl.u32 %v2103_v34, %v2533_v29 }
  0xd9   : > { %v632_v50 = vor.u32 8388608, %v631_v32  ;;  %v2557_v51 = vshrl.u32 %v636_v22, 5  ;;  %v1178_v12 = vadd.s32 %v1174_v59, %v1170_v61  ;;  %v650_v57 = vshll.u32 %v2102_v30, %v638_v43 }
  0xda   : > { %v651_v24 = vshrl.u32 %v2103_v34, %v2550_v10  ;;  %v653_v46 = vshll.u32 %v2103_v34, %v638_v43  ;;  %v654_v56 = vshrl.u32 %v2104_v37, %v2550_v10  ;;  %v645_v28 = vshrl.u32 %v2101_v27, %v2550_v10 }
  0xdb   : > { %v648_v60 = vshrl.u32 %v2102_v30, %v2550_v10  ;;  %v1181_v0 = vadd.s32 %v1180_v18, %v1171_v49  ;;  %vm999_vm1 = vc.u32 %v997_v38, %v993_v36  ;;  %v809_v59 = vshrl.u32 %v2104_v37, %v2533_v29 }
  0xdc   : > { %v652_v61 = vor.u32 %v651_v24, %v650_v57  ;;  %v655_v2 = vor.u32 %v654_v56, %v653_v46  ;;  %vm1184_vm2 = vc.u32 %v1159_v47, %v1178_v12  ;;  %v642_v3 = vshrl.u32 %v2100_v25, %v2550_v10 }
  0xdd   : > { %v644_v31 = vshll.u32 %v2100_v25, %v638_v43  ;;  %v647_v6 = vshll.u32 %v2101_v27, %v638_v43  ;;  %vm659_vm3 = vcmp.lt.s32.totalorder %v2557_v51, 4  ;;  %vm658_vm4 = vcmp.lt.s32.totalorder %v2557_v51, 3 }
  0xde   : > { %v669_v7 = vsel %vm659_vm3, %v655_v2, 1326507024  ;;  %v1185_v8 = vadd.s32 1, %v1181_v0  ;;  %v1000_v37 = vsel %vm999_vm1, 1, %v2097_v4  ;;  %v641_v13 = vshll.u32 %v2105_v55, %v638_v43 }
  0xdf   : > { %v2581_v62 = vor.u32 %v645_v28, %v644_v31  ;;  %v649_v19 = vor.u32 %v648_v60, %v647_v6  ;;  %v670_v22 = vsel %vm658_vm4, %v652_v61, %v669_v7  ;;  %v805_v48 = vshll.u32 %v2102_v30, %v2520_v5 }
  0xe0   : > { %v2587_v23 = vshll.u32 %v632_v50, 8  ;;  %v1186_v14 = vsel %vm1184_vm2, %v1185_v8, %v1181_v0  ;;  %v992_v32 = vshrl.u32 %v2495_v33, 16  ;;  %v808_v36 = vshll.u32 %v2103_v34, %v2520_v5 }
  0xe1   : > { %vm814_vm5 = vcmp.lt.s32.totalorder %v2552_v45, 4  ;;  %v643_v43 = vor.u32 %v642_v3, %v641_v13  ;;  %v1002_v38 = vadd.s32 %v1000_v37, %v998_v41  ;;  %vm656_vm6 = vcmp.lt.s32.totalorder %v2557_v51, 1 }
  0xe2   : > { %v665_v18 = vsel %vm659_vm3, %v652_v61, 920167782  ;;  %v1187_v49 = vadd.s32 %v1186_v14, %v1182_v54  ;;  %v1013_v50 = vshll.u32 %v2541_v35, 16  ;;  %v2600_v57 = vor.u32 %v806_v11, %v805_v48 }
  0xe3   : > { %v810_v33 = vor.u32 %v809_v59, %v808_v36  ;;  %v668_v34 = vsel %vm656_vm6, %v2581_v62, %v649_v19  ;;  %v994_v41 = vshrl.u32 %v2525_v21, 16  ;;  %vm657_vm7 = vcmp.lt.s32.totalorder %v2557_v51, 2 }
  0xe4   : > { %v2608_v24 = vand.u32 65535, %v2587_v23  ;;  %v2611_v46 = vshrl.u32 %v2587_v23, 16  ;;  %v2613_v1 = vadd.s32 %v1178_v12, %v1159_v47  ;;  %v664_v39 = vsel %vm656_vm6, %v643_v43, %v2581_v62 }
  0xe5   : > { %v666_v54 = vsel %vm658_vm4, %v649_v19, %v665_v18  ;;  %v1188_v11 = vadd.s32 536870912, %v1187_v49  ;;  %v1003_v56 = vadd.s32 %v1002_v38, %v992_v32  ;;  %v671_v21 = vsel %vm657_vm7, %v668_v34, %v670_v22 }
  0xe6   : > { %v1015_v28 = vshll.u32 %v2544_v53, 16  ;;  %vm1017_vm8 = vc.u32 %v2538_v9, %v1013_v50  ;;  %v1019_v60 = vadd.s32 %v1013_v50, %v2538_v9  ;;  %v820_v47 = vsel %vm814_vm5, %v2600_v57, 920167782 }
  0xe7   : > { %v2630_v12 = vsel %vm814_vm5, %v810_v33, 1326507024  ;;  %v2632_v0 = vshrl.u32 %v1188_v11, 30  ;;  %v1018_v59 = vsel %vm1017_vm8, 1, %v2097_v4  ;;  %v640_v61 = vshrl.u32 %v2105_v55, %v2550_v10 }
  0xe8   : > { %v2639_v2 = vsel %vm657_vm7, %v664_v39, %v666_v54  ;;  %v1020_v9 = vadd.s32 %v1018_v59, %v2547_v40  ;;  %vm1021_vm9 = vc.u32 %v1019_v60, %v1015_v28  ;;  %v676_v3 = vshrl.u32 %v671_v21, 16 }
  0xe9   : > { %v1190_v31 = vshll.u32 %v2632_v0, 30  ;;  %v2643_v6 = vadd.s32 %v1003_v56, %v994_v41  ;;  %v1022_v7 = vsel %vm1021_vm9, 1, %v2097_v4  ;;  %v2648_v8 = vsel %vm656_vm6, %v640_v61, %v643_v43 }
  0xea   : > { %v1014_v10 = vshrl.u32 %v2541_v35, 16  ;;  %v1024_v37 = vadd.s32 %v1022_v7, %v1020_v9  ;;  %v779_v13 = vand.u32 2147483647, %v2445_v52  ;;  %v2654_v40 = vsel %vm659_vm3, %v649_v19, 2102212464 }
  0xeb   : > { %v675_v22 = vand.u32 65535, %v671_v21  ;;  %v1191_v48 = vsub.s32 %v1187_v49, %v1190_v31  ;;  %v2656_v14 = vadd.s32 %v1019_v60, %v1015_v28  ;;  %v697_v32 = vand.u32 65535, %v2639_v2 }
  0xec   : > { %v698_v36 = vshrl.u32 %v2639_v2, 16  ;;  %v1016_v43 = vshrl.u32 %v2544_v53, 16  ;;  %v1025_v38 = vadd.s32 %v1024_v37, %v1014_v10  ;;  %v2662_v35 = vmul.u32 %v676_v3, %v2608_v24 }
  0xed   : > { %vm1192_vm10 = vcmp.lt.s32.totalorder %v1191_v48, 0  ;;  %v1193_v18 = vsub.s32 0, %v1191_v48  ;;  %vm1029_vm11 = vc.u32 %v2643_v6, %v2656_v14  ;;  %v786_v49 = vand.u32 8388607, %v779_v13 }
  0xee   : > { %v1026_v19 = vadd.s32 %v1025_v38, %v1016_v43  ;;  %v796_v50 = vshll.u32 %v2105_v55, %v2520_v5  ;;  %v797_v33 = vshrl.u32 %v2100_v25, %v2533_v29  ;;  %v799_v34 = vshll.u32 %v2100_v25, %v2520_v5 }
  0xef   : > { %v1194_v53 = vsel %vm1192_vm10, %v1193_v18, %v1191_v48  ;;  %v800_v41 = vshrl.u32 %v2101_v27, %v2533_v29  ;;  %v802_v39 = vshll.u32 %v2101_v27, %v2520_v5  ;;  %vm1091_vm12 = vcmp.lt.s32.totalorder %v2353_v63, 0 }
  0xf0   : > { %v1195_v54 = vclz %v1194_v53  ;;  %v1030_v11 = vadd.s32 1, %v1026_v19  ;;  %v2679_v56 = vor.u32 %v797_v33, %v796_v50  ;;  %v803_v21 = vshrl.u32 %v2102_v30, %v2533_v29 }
  0xf1   : > { %v2684_v28 = vmul.u32 %v675_v22, %v2608_v24  ;;  %v2687_v25 = vmul.u32 %v675_v22, %v2611_v46  ;;  %v2690_v60 = vmul.u32 %v676_v3, %v2611_v46  ;;  %v2692_v59 = vor.u32 %v800_v41, %v799_v34 }
  0xf2   : > { %v2695_v27 = vmul.u32 %v697_v32, %v2608_v24  ;;  %v1893_v5 = vadd.s32 4294967294, %v1195_v54  ;;  %v1031_v61 = vsel %vm1029_vm11, %v1030_v11, %v1026_v19  ;;  %v2700_v30 = vor.u32 %v803_v21, %v802_v39 }
  0xf3   : > { %v1032_v2 = vadd.s32 %v1031_v61, %v1027_v17  ;;  %v787_v9 = vor.u32 8388608, %v786_v49  ;;  %vm811_vm13 = vcmp.lt.s32.totalorder %v2552_v45, 1  ;;  %vm813_vm14 = vcmp.lt.s32.totalorder %v2552_v45, 3 }
  0xf4   : > { %v681_v3 = vshll.u32 %v2662_v35, 16  ;;  %vm2710_vm15 = vcmp.le.f32.partialorder %v1089_v16, 0.7853982  ;;  %vm1894_vm0 = vcmp.lt.s32.totalorder %v1893_v5, 0  ;;  %v819_v44 = vsel %vm811_vm13, %v2679_v56, %v2692_v59 }
  0xf5   : > { %v821_v42 = vsel %vm813_vm14, %v2700_v30, %v820_v47  ;;  %v1198_v17 = vsel %vm1894_vm0, 0, %v1893_v5  ;;  %v1213_v7 = vsub.s32 4, %v2632_v0  ;;  %v1033_v10 = vadd.s32 536870912, %v1032_v2 }
  0xf6   : > { %vm812_vm1 = vcmp.lt.s32.totalorder %v2552_v45, 2  ;;  %v2724_v16 = vmul.u32 %v698_v36, %v2608_v24  ;;  %v1199_v37 = vsub.s32 32, %v1198_v17  ;;  %v1203_v22 = vsub.s32 4294967266, %v1198_v17 }
  0xf7   : > { %v2728_v43 = vsel %vm812_vm1, %v819_v44, %v821_v42  ;;  %v2730_v38 = vshrl.u32 %v1033_v10, 30  ;;  %v823_v47 = vsel %vm811_vm13, %v2692_v59, %v2700_v30  ;;  %v825_v18 = vsel %vm813_vm14, %v2600_v57, %v2630_v12 }
  0xf8   : > { %v2740_v24 = vshll.u32 %v787_v9, 8  ;;  %v1200_v19 = vshll.u32 %v1191_v48, %v1198_v17  ;;  %v1201_v49 = vshrl.u32 %v2613_v1, %v1199_v37  ;;  %v1204_v50 = vadd.s32 127, %v1203_v22 }
  0xf9   : > { %v826_v33 = vsel %vm812_vm1, %v823_v47, %v825_v18  ;;  %vm685_vm2 = vc.u32 %v2684_v28, %v681_v3  ;;  %v2749_v53 = vmul.u32 %v697_v32, %v2611_v46  ;;  %v1214_v57 = vsel %vm1091_vm12, %v1213_v7, %v2632_v0 }
  0xfa   : > { %v1035_v12 = vshll.u32 %v2730_v38, 30  ;;  %v1202_v48 = vor.u32 %v1201_v49, %v1200_v19  ;;  %v1205_v34 = vshll.u32 %v1204_v50, 23  ;;  %v830_v1 = vand.u32 65535, %v826_v33 }
  0xfb   : > { %v831_v41 = vshrl.u32 %v826_v33, 16  ;;  %v2756_v39 = vmul.u32 %v698_v36, %v2611_v46  ;;  %v828_v11 = vand.u32 65535, %v2740_v24  ;;  %v853_v32 = vshrl.u32 %v2728_v43, 16 }
  0xfc   : > { %v2758_v54 = vsub.s32 %v1032_v2, %v1035_v12  ;;  %v683_v21 = vshll.u32 %v2687_v25, 16  ;;  %v2764_v5 = vsel %vm685_vm2, 1, %v2097_v4  ;;  %v1206_v0 = vor.u32 4788187, %v1205_v34 }
  0xfd   : > { %v829_v61 = vshrl.u32 %v2740_v24, 16  ;;  %v1216_v9 = vsel %vm2710_vm15, 0, %v1214_v57  ;;  %v833_v36 = vmul.u32 %v831_v41, %v828_v11  ;;  %v1209_v44 = vcvt.s32.f32 %v1202_v48 }
  0xfe   : > { %vm1037_vm3 = vcmp.lt.s32.totalorder %v2758_v54, 0  ;;  %v1038_v46 = vsub.s32 0, %v2758_v54  ;;  %v1207_v2 = vand.u32 2147483647, %v1206_v0  ;;  %v852_v17 = vand.u32 65535, %v2728_v43 }
  0xff   : > { %v834_v42 = vmul.u32 %v830_v1, %v829_v61  ;;  %v832_v10 = vmul.u32 %v830_v1, %v828_v11  ;;  %v836_v37 = vshll.u32 %v833_v36, 16  ;;  %v2773_v22 = vmul.u32 %v853_v32, %v828_v11 }
 0x100   : > { %v1039_v7 = vsel %vm1037_vm3, %v1038_v46, %v2758_v54  ;;  %v1210_v47 = vmul.f32 %v1209_v44, %v1207_v2  ;;  %v1028_v18 = vadd.s32 %v2656_v14, %v2643_v6  ;;  %v795_v49 = vshrl.u32 %v2105_v55, %v2533_v29 }
 0x101   : > { %v1040_v19 = vclz %v1039_v7  ;;  %v1233_v50 = vadd.s32 3, %v1216_v9  ;;  %v835_v33 = vmul.u32 %v831_v41, %v829_v61  ;;  %v838_v57 = vshll.u32 %v834_v42, 16 }
 0x102   : > { %vm840_vm6 = vc.u32 %v832_v10, %v836_v37  ;;  %v1211_v12 = vxor.u32 2147483648, %v1210_v47  ;;  %v842_v34 = vadd.s32 %v836_v37, %v832_v10  ;;  %v816_v1 = vsel %vm814_vm5, %v2700_v30, 2102212464 }
 0x103   : > { %v1890_v43 = vadd.s32 4294967294, %v1040_v19  ;;  %v841_v48 = vsel %vm840_vm6, 1, %v2097_v4  ;;  %v856_v46 = vmul.u32 %v852_v17, %v829_v61  ;;  %v858_v6 = vshll.u32 %v2773_v22, 16 }
 0x104   : > { %v843_v0 = vadd.s32 %v841_v48, %v835_v33  ;;  %v1212_v55 = vsel %vm1091_vm12, %v1211_v12, %v1210_v47  ;;  %vm844_vm9 = vc.u32 %v842_v34, %v838_v57  ;;  %v854_v29 = vmul.u32 %v852_v17, %v828_v11 }
 0x105   : > { %vm1891_vm8 = vcmp.lt.s32.totalorder %v1890_v43, 0  ;;  %v2789_v14 = vsel %vm2710_vm15, %v2353_v63, %v1212_v55  ;;  %v837_v9 = vshrl.u32 %v833_v36, 16  ;;  %v845_v2 = vsel %vm844_vm9, 1, %v2097_v4 }
 0x106   : > { %v1043_v41 = vsel %vm1891_vm8, 0, %v1890_v43  ;;  %v1217_v30 = vmul.f32 %v2789_v14, %v2789_v14  ;;  %v860_v10 = vshll.u32 %v856_v46, 16  ;;  %v847_v47 = vadd.s32 %v845_v2, %v843_v0 }
 0x107   : > { %v1044_v44 = vsub.s32 32, %v1043_v41  ;;  %v1048_v7 = vsub.s32 4294967266, %v1043_v41  ;;  %v1045_v37 = vshll.u32 %v2758_v54, %v1043_v41  ;;  %vm862_vm5 = vc.u32 %v854_v29, %v858_v6 }
 0x108   : > { %v864_v11 = vadd.s32 %v858_v6, %v854_v29  ;;  %vm936_vm10 = vcmp.lt.s32.totalorder %v2361_v15, 0  ;;  %v1218_v31 = vmul.f32 -0.001358992, %v1217_v30  ;;  %v1225_v17 = vmul.f32 -0.00019511016, %v1217_v30 }
 0x109   : > { %v1046_v19 = vshrl.u32 %v1028_v18, %v1044_v44  ;;  %v1049_v33 = vadd.s32 127, %v1048_v7  ;;  %v848_v36 = vadd.s32 %v847_v47, %v837_v9  ;;  %v857_v57 = vmul.u32 %v853_v32, %v829_v61 }
 0x10a   : > { %v863_v12 = vsel %vm862_vm5, 1, %v2097_v4  ;;  %vm866_vm11 = vc.u32 %v864_v11, %v860_v10  ;;  %v1219_v43 = vadd.f32 0.041655596, %v1218_v31  ;;  %v1226_v48 = vadd.f32 0.008332121, %v1225_v17 }
 0x10b   : > { %v1047_v34 = vor.u32 %v1046_v19, %v1045_v37  ;;  %v1050_v55 = vshll.u32 %v1049_v33, 23  ;;  %v815_v54 = vsel %vm811_vm13, %v795_v49, %v2679_v56  ;;  %v839_v0 = vshrl.u32 %v834_v42, 16 }
 0x10c   : > { %v865_v6 = vadd.s32 %v863_v12, %v857_v57  ;;  %v867_v29 = vsel %vm866_vm11, 1, %v2097_v4  ;;  %v1220_v41 = vmul.f32 %v1219_v43, %v1217_v30  ;;  %v1227_v18 = vmul.f32 %v1226_v48, %v1217_v30 }
 0x10d   : > { %vm2803_vm12 = vcmp.le.f32.partialorder %v934_v58, 0.7853982  ;;  %v1051_v61 = vor.u32 4788187, %v1050_v55  ;;  %v817_v9 = vsel %vm813_vm14, %v2692_v59, %v816_v1  ;;  %v1058_v2 = vsub.s32 4, %v2730_v38 }
 0x10e   : > { %v2811_v56 = vadd.s32 %v848_v36, %v839_v0  ;;  %v859_v42 = vshrl.u32 %v2773_v22, 16  ;;  %v869_v49 = vadd.s32 %v867_v29, %v865_v6  ;;  %v1221_v44 = vadd.f32 -0.4999988, %v1220_v41 }
 0x10f   : > { %v1228_v7 = vadd.f32 -0.16666654, %v1227_v18  ;;  %v1052_v37 = vand.u32 2147483647, %v1051_v61  ;;  %v1054_v47 = vcvt.s32.f32 %v1047_v34  ;;  %v687_v58 = vadd.s32 %v681_v3, %v2684_v28 }
 0x110   : > { %v1234_v31 = vand.u32 3, %v1233_v50  ;;  %v861_v17 = vshrl.u32 %v856_v46, 16  ;;  %v870_v19 = vadd.s32 %v869_v49, %v859_v42  ;;  %v1222_v33 = vmul.f32 %v1221_v44, %v1217_v30 }
 0x111   : > { %v1229_v59 = vmul.f32 %v1228_v7, %v1217_v30  ;;  %v1055_v1 = vmul.f32 %v1054_v47, %v1052_v37  ;;  %v2817_v57 = vadd.s32 %v864_v11, %v860_v10  ;;  %v688_v22 = vadd.s32 %v2764_v5, %v2690_v60 }
 0x112   : > { %vm1232_vm13 = vweird.f32 %v2353_v63  ;;  %v1059_v36 = vsel %vm936_vm10, %v1058_v2, %v2730_v38  ;;  %v818_v28 = vsel %vm812_vm1, %v815_v54, %v817_v9  ;;  %v871_v3 = vadd.s32 %v870_v19, %v861_v17 }
 0x113   : > { %v1223_v50 = vadd.f32 1.0, %v1222_v33  ;;  %v1230_v46 = vadd.f32 1.0, %v1229_v59  ;;  %v1056_v12 = vxor.u32 2147483648, %v1055_v1  ;;  %vm874_vm14 = vc.u32 %v2811_v56, %v2817_v57 }
 0x114   : > { %vm1235_vm15 = vcmp.lt.s32.totalorder %v1234_v31, 2  ;;  %vm1236_vm0 = vcmp.eq.s32.totalorder %v1234_v31, 0  ;;  %v875_v30 = vadd.s32 1, %v871_v3  ;;  %v703_v60 = vshll.u32 %v2724_v16, 16 }
 0x115   : > { %v1231_v5 = vmul.f32 %v1230_v46, %v2789_v14  ;;  %v1240_v10 = vxor.u32 2147483648, %v1223_v50  ;;  %v1057_v38 = vsel %vm936_vm10, %v1056_v12, %v1055_v1  ;;  %v872_v45 = vmul.u32 %v2740_v24, %v818_v28 }
 0x116   : > { %vm1239_vm1 = vcmp.eq.s32.totalorder %v1234_v31, 2  ;;  %v1060_v11 = vsel %vm2803_vm12, %v2361_v15, %v1057_v38  ;;  %v1061_v43 = vsel %vm2803_vm12, 0, %v1059_v36  ;;  %v876_v48 = vsel %vm874_vm14, %v875_v30, %v871_v3 }
 0x117   : > { %v1237_v34 = vxor.u32 2147483648, %v1231_v5  ;;  %v1062_v55 = vmul.f32 %v1060_v11, %v1060_v11  ;;  %v877_v54 = vadd.s32 %v876_v48, %v872_v45  ;;  %v705_v14 = vshll.u32 %v2749_v53, 16 }
 0x118   : > { %v1241_v0 = vsel %vm1239_vm1, %v1240_v10, %v1231_v5  ;;  %vm689_vm2 = vc.u32 %v687_v58, %v683_v21  ;;  %vm707_vm3 = vc.u32 %v2695_v27, %v703_v60  ;;  %v709_v24 = vadd.s32 %v703_v60, %v2695_v27 }
 0x119   : > { %v1238_v6 = vsel %vm1236_vm0, %v1223_v50, %v1237_v34  ;;  %v1063_v29 = vmul.f32 -0.001358992, %v1062_v55  ;;  %v1070_v41 = vmul.f32 -0.00019511016, %v1062_v55  ;;  %v878_v18 = vadd.s32 536870912, %v877_v54 }
 0x11a   : > { %v1242_v32 = vsel %vm1235_vm15, %v1238_v6, %v1241_v0  ;;  %v690_v61 = vsel %vm689_vm2, 1, %v2097_v4  ;;  %v708_v9 = vsel %vm707_vm3, 1, %v2097_v4  ;;  %vm711_vm6 = vc.u32 %v709_v24, %v705_v14 }
 0x11b   : > { %v2850_v2 = vsel %vm1232_vm13, nan, %v1242_v32  ;;  %v1064_v21 = vadd.f32 0.041655596, %v1063_v29  ;;  %v1071_v42 = vadd.f32 0.008332121, %v1070_v41  ;;  %v2852_v49 = vshrl.u32 %v878_v18, 30 }
 0x11c   : > { %1305 = vmatpush.msra.mxu0 %v2850_v2  ;;  %1918 = vmatpush.msra.mxu2 %v2850_v2  ;;  %v682_v27 = vshrl.u32 %v2662_v35, 16  ;;  %v692_v44 = vadd.s32 %v690_v61, %v688_v22  ;;  %v710_v7 = vadd.s32 %v708_v9, %v2756_v39  ;;  %v712_v37 = vsel %vm711_vm6, 1, %v2097_v4 }
 0x11d   : > { %v662_v63 = vsel %vm658_vm4, %v2581_v62, %v2654_v40  ;;  %1919 = vmatpush.msra.mxu3 %v2850_v2  ;;  %v1065_v47 = vmul.f32 %v1064_v21, %v1062_v55  ;;  %v1072_v58 = vmul.f32 %v1071_v42, %v1062_v55  ;;  %v880_v31 = vshll.u32 %v2852_v49, 30 }
 0x11e   : > { %v684_v17 = vshrl.u32 %v2687_v25, 16  ;;  %v693_v19 = vadd.s32 %v692_v44, %v682_v27  ;;  %v704_v35 = vshrl.u32 %v2724_v16, 16  ;;  %v714_v33 = vadd.s32 %v712_v37, %v710_v7 }
 0x11f   : > { %v1066_v39 = vadd.f32 -0.4999988, %v1065_v47  ;;  %v1073_v59 = vadd.f32 -0.16666654, %v1072_v58  ;;  %v1078_v4 = vadd.s32 3, %v1061_v43  ;;  %v881_v1 = vsub.s32 %v877_v54, %v880_v31 }
 0x120   : > { %v694_v22 = vadd.s32 %v693_v19, %v684_v17  ;;  %v706_v36 = vshrl.u32 %v2749_v53, 16  ;;  %v713_v62 = vadd.s32 %v709_v24, %v705_v14  ;;  %v715_v40 = vadd.s32 %v714_v33, %v704_v35 }
 0x121   : > { %v1067_v28 = vmul.f32 %v1066_v39, %v1062_v55  ;;  %v1074_v3 = vmul.f32 %v1073_v59, %v1062_v55  ;;  %vm882_vm4 = vcmp.lt.s32.totalorder %v881_v1, 0  ;;  %v883_v50 = vsub.s32 0, %v881_v1 }
 0x122   : > { %v716_v46 = vadd.s32 %v715_v40, %v706_v36  ;;  %v2868_v12 = vadd.s32 %v713_v62, %v694_v22  ;;  %vm719_vm8 = vc.u32 %v694_v22, %v713_v62  ;;  %v663_v25 = vsel %vm657_vm7, %v2648_v8, %v662_v63 }
 0x123   : > { %v1068_v16 = vadd.f32 1.0, %v1067_v28  ;;  %v1075_v30 = vadd.f32 1.0, %v1074_v3  ;;  %v884_v60 = vsel %vm882_vm4, %v883_v50, %v881_v1  ;;  %v1079_v5 = vand.u32 3, %v1078_v4 }
 0x124   : > { %v885_v10 = vclz %v884_v60  ;;  %v720_v53 = vadd.s32 1, %v716_v46  ;;  %v717_v43 = vmul.u32 %v2587_v23, %v663_v25  ;;  %vm1077_vm9 = vweird.f32 %v2361_v15 }
 0x125   : > { %v1076_v38 = vmul.f32 %v1075_v30, %v1060_v11  ;;  %v1085_v45 = vxor.u32 2147483648, %v1068_v16  ;;  %vm1081_vm5 = vcmp.eq.s32.totalorder %v1079_v5, 0  ;;  %vm1084_vm10 = vcmp.eq.s32.totalorder %v1079_v5, 2 }
 0x126   : > { %v1887_v48 = vadd.s32 4294967294, %v885_v10  ;;  %v721_v55 = vsel %vm719_vm8, %v720_v53, %v716_v46  ;;  %vm1080_vm7 = vcmp.lt.s32.totalorder %v1079_v5, 2  ;;  %v873_v11 = vadd.s32 %v2817_v57, %v2811_v56 }
 0x127   : > { %v1082_v34 = vxor.u32 2147483648, %v1076_v38  ;;  %v722_v51 = vadd.s32 %v721_v55, %v717_v43  ;;  %v1086_v54 = vsel %vm1084_vm10, %v1085_v45, %v1076_v38  ;;  %vm781_vm13 = vcmp.lt.s32.totalorder %v2445_v52, 0 }
 0x128   : > { %vm1888_vm11 = vcmp.lt.s32.totalorder %v1887_v48, 0  ;;  %vm2888_vm14 = vcmp.le.f32.partialorder %v779_v13, 0.7853982  ;;  %v903_v19 = vsub.s32 4, %v2852_v49  ;;  %vm626_vm0 = vcmp.lt.s32.totalorder %v2482_v26, 0 }
 0x129   : > { %v1083_v8 = vsel %vm1081_vm5, %v1068_v16, %v1082_v34  ;;  %v888_v14 = vsel %vm1888_vm11, 0, %v1887_v48  ;;  %v723_v29 = vadd.s32 536870912, %v722_v51  ;;  %vm2904_vm3 = vcmp.le.f32.partialorder %v624_v20, 0.7853982 }
 0x12a   : > { %v1087_v0 = vsel %vm1080_vm7, %v1083_v8, %v1086_v54  ;;  %v889_v24 = vsub.s32 32, %v888_v14  ;;  %v893_v6 = vsub.s32 4294967266, %v888_v14  ;;  %v890_v15 = vshll.u32 %v881_v1, %v888_v14 }
 0x12b   : > { %v2877_v23 = vsel %vm1077_vm9, nan, %v1087_v0  ;;  %v2882_v32 = vshrl.u32 %v723_v29, 30  ;;  %v904_v22 = vsel %vm781_vm13, %v903_v19, %v2852_v49  ;;  %vm922_vm4 = vweird.f32 %v2445_v52 }
 0x12c   : > { %1306 = vmatpush.msra.mxu0 %v2877_v23  ;;  %1920 = vmatpush.msra.mxu2 %v2877_v23  ;;  %v891_v41 = vshrl.u32 %v873_v11, %v889_v24  ;;  %v894_v18 = vadd.s32 127, %v893_v6  ;;  %v906_v50 = vsel %vm2888_vm14, 0, %v904_v22  ;;  %vm767_vm10 = vweird.f32 %v2482_v26  ;;  %v1245_v22 = vld [vmem:[%s3065_s3 + $0x8] sm:$0xff] }
 0x12d   : > { %1921 = vmatpush.msra.mxu3 %v2877_v23  ;;  %v725_v56 = vshll.u32 %v2882_v32, 30  ;;  %v923_v10 = vadd.s32 3, %v906_v50  ;;  %v748_v0 = vsub.s32 4, %v2882_v32  ;;  %vm1280_vm11 = vcmask 261120  }
 0x12e   : > { %v892_v61 = vor.u32 %v891_v41, %v890_v15  ;;  %v895_v9 = vshll.u32 %v894_v18, 23 }
 0x12f   : > { %v726_v21 = vsub.s32 %v722_v51, %v725_v56  ;;  %v924_v55 = vand.u32 3, %v923_v10 }
 0x130   : > { %v896_v57 = vor.u32 4788187, %v895_v9  ;;  %v899_v27 = vcvt.s32.f32 %v892_v61  ;;  %v749_v9 = vsel %vm626_vm0, %v748_v0, %v2882_v32 }
 0x131   : > { %vm727_vm12 = vcmp.lt.s32.totalorder %v726_v21, 0  ;;  %v728_v44 = vsub.s32 0, %v726_v21  ;;  %vm926_vm1 = vcmp.eq.s32.totalorder %v924_v55, 0  ;;  %vm929_vm2 = vcmp.eq.s32.totalorder %v924_v55, 2 }
 0x132   : > { %v897_v42 = vand.u32 2147483647, %v896_v57  ;;  %vm925_vm6 = vcmp.lt.s32.totalorder %v924_v55, 2  ;;  %v751_v57 = vsel %vm2904_vm3, 0, %v749_v9 }
 0x133   : > { %v729_v37 = vsel %vm727_vm12, %v728_v44, %v726_v21  ;;  %v768_v44 = vadd.s32 3, %v751_v57 }
 0x134   : > { %v900_v7 = vmul.f32 %v899_v27, %v897_v42  ;;  %v730_v47 = vclz %v729_v37 }
 0x136   : > { %v901_v63 = vxor.u32 2147483648, %v900_v7  ;;  %v1884_v17 = vadd.s32 4294967294, %v730_v47  ;;  %v769_v47 = vand.u32 3, %v768_v44 }
 0x138   : > { %v902_v31 = vsel %vm781_vm13, %v901_v63, %v900_v7  ;;  %vm1885_vm15 = vcmp.lt.s32.totalorder %v1884_v17, 0  ;;  %vm774_vm8 = vcmp.eq.s32.totalorder %v769_v47, 2  ;;  %vm771_vm9 = vcmp.eq.s32.totalorder %v769_v47, 0 }
 0x139   : > { %v905_v35 = vsel %vm2888_vm14, %v2445_v52, %v902_v31  ;;  %v733_v39 = vsel %vm1885_vm15, 0, %v1884_v17  ;;  %vm770_vm5 = vcmp.lt.s32.totalorder %v769_v47, 2 }
 0x13a   : > { %v907_v33 = vmul.f32 %v905_v35, %v905_v35  ;;  %v734_v1 = vsub.s32 32, %v733_v39  ;;  %v738_v13 = vsub.s32 4294967266, %v733_v39  ;;  %v735_v40 = vshll.u32 %v726_v21, %v733_v39 }
 0x13c   : > { %v908_v59 = vmul.f32 -0.001358992, %v907_v33  ;;  %v915_v4 = vmul.f32 -0.00019511016, %v907_v33  ;;  %v736_v28 = vshrl.u32 %v2868_v12, %v734_v1  ;;  %v739_v3 = vadd.s32 127, %v738_v13  ;;  %v1247_v13 = vld [vmem:[%s3065_s3 + $0x18] sm:$0xff] }
 0x13e   : > { %v909_v36 = vadd.f32 0.041655596, %v908_v59  ;;  %v916_v62 = vadd.f32 0.008332121, %v915_v4  ;;  %v737_v16 = vor.u32 %v736_v28, %v735_v40  ;;  %v740_v30 = vshll.u32 %v739_v3, 23  ;;  %v1244_v4 = vld [vmem:[%s3065_s3] sm:$0xff]  ;;  %v1263_v40 = vpop.permute.xlu0 %1262 }
 0x140   : > { %v910_v46 = vmul.f32 %v909_v36, %v907_v33  ;;  %v917_v25 = vmul.f32 %v916_v62, %v907_v33  ;;  %v741_v53 = vor.u32 4788187, %v740_v30  ;;  %v744_v43 = vcvt.s32.f32 %v737_v16  ;;  %v1278_v36 = vpop.permute.xlu2 %1277 }
 0x142   : > { %v911_v60 = vadd.f32 -0.4999988, %v910_v46  ;;  %v918_v5 = vadd.f32 -0.16666654, %v917_v25  ;;  %v742_v45 = vand.u32 2147483647, %v741_v53 }
 0x144   : > { %v912_v38 = vmul.f32 %v911_v60, %v907_v33  ;;  %v919_v49 = vmul.f32 %v918_v5, %v907_v33  ;;  %v745_v12 = vmul.f32 %v744_v43, %v742_v45 }
 0x146   : > { %v913_v48 = vadd.f32 1.0, %v912_v38  ;;  %v920_v34 = vadd.f32 1.0, %v919_v49  ;;  %v746_v54 = vxor.u32 2147483648, %v745_v12 }
 0x148   : > { %v921_v51 = vmul.f32 %v920_v34, %v905_v35  ;;  %v930_v8 = vxor.u32 2147483648, %v913_v48  ;;  %v747_v24 = vsel %vm626_vm0, %v746_v54, %v745_v12  ;;  %v1268_v3 = vpop.permute.xlu2 %1267 }
 0x149   : > { %v750_v15 = vsel %vm2904_vm3, %v2482_v26, %v747_v24  ;;  %v1246_v26 = vld [vmem:[%s3065_s3 + $0x10] sm:$0xff] }
 0x14a   : > { %v927_v14 = vxor.u32 2147483648, %v921_v51  ;;  %v931_v29 = vsel %vm929_vm2, %v930_v8, %v921_v51  ;;  %v752_v18 = vmul.f32 %v750_v15, %v750_v15 }
 0x14c   : > { %v928_v6 = vsel %vm926_vm1, %v913_v48, %v927_v14  ;;  %v753_v20 = vmul.f32 -0.001358992, %v752_v18  ;;  %v760_v56 = vmul.f32 -0.00019511016, %v752_v18  ;;  %v1273_v48 = vpop.permute.xlu1 %1272 }
 0x14d   : > { %v932_v41 = vsel %vm925_vm6, %v928_v6, %v931_v29 }
 0x14e   : > { %v2912_v61 = vsel %vm922_vm4, nan, %v932_v41  ;;  %v754_v21 = vadd.f32 0.041655596, %v753_v20  ;;  %v761_v42 = vadd.f32 0.008332121, %v760_v56 }
 0x14f   : > { %1307 = vmatpush.msra.mxu0 %v2912_v61  ;;  %1922 = vmatpush.msra.mxu2 %v2912_v61 }
 0x150   : > { %1923 = vmatpush.msra.mxu3 %v2912_v61  ;;  %v755_v52 = vmul.f32 %v754_v21, %v752_v18  ;;  %v762_v27 = vmul.f32 %v761_v42, %v752_v18 }
 0x152   : > { %v756_v7 = vadd.f32 -0.4999988, %v755_v52  ;;  %v763_v37 = vadd.f32 -0.16666654, %v762_v27 }
 0x154   : > { %v757_v63 = vmul.f32 %v756_v7, %v752_v18  ;;  %v764_v32 = vmul.f32 %v763_v37, %v752_v18 }
 0x156   : > { %v758_v58 = vadd.f32 1.0, %v757_v63  ;;  %v765_v31 = vadd.f32 1.0, %v764_v32 }
 0x158   : > { %v766_v17 = vmul.f32 %v765_v31, %v750_v15  ;;  %v775_v19 = vxor.u32 2147483648, %v758_v58  ;;  %v1253_v31 = vld [vmem:[%s3067_s5 + $0x8] sm:$0xff] }
 0x15a   : > { %v772_v35 = vxor.u32 2147483648, %v766_v17  ;;  %v776_v33 = vsel %vm774_vm8, %v775_v19, %v766_v17  ;;  %v1254_v17 = vld [vmem:[%s3067_s5 + $0x10] sm:$0xff]  ;;  %v1255_v19 = vld [vmem:[%s3067_s5 + $0x18] sm:$0xff] }
 0x15c   : > { %v773_v39 = vsel %vm771_vm9, %v758_v58, %v772_v35  ;;  %v1252_v58 = vld [vmem:[%s3067_s5] sm:$0xff]  ;;  %v1376_v35 = vpop.permute.xlu1 %1375 }
 0x15d   : > { %v777_v59 = vsel %vm770_vm5, %v773_v39, %v776_v33  ;;  %v1366_v39 = vpop.permute.xlu0 %1365 }
 0x15e   : > { %v2924_v1 = vsel %vm767_vm10, nan, %v777_v59 }
 0x15f   : > { %1308 = vmatpush.msra.mxu0 %v2924_v1  ;;  %1924 = vmatpush.msra.mxu2 %v2924_v1 }
 0x160   : > { %1925 = vmatpush.msra.mxu3 %v2924_v1  ;;  %1895 = vmatmul.msk.f32.vlgmr.msra.gmra.mxu0 %vm1280_vm11, %v1244_v4 }
 0x161   : > { %1896 = vmatmul.msk.f32.vlgmr.msra.gmra.mxu2 %vm1280_vm11, %v1245_v22  ;;  %1898 = vmatmul.msk.f32.vlgmr.msra.gmra.mxu3 %vm1280_vm11, %v1247_v13 }
 0x164   : > { %v1361_v4 = vpop.permute.xlu1 %1360 }
 0x169   : > { %1897 = vmatmul.msk.f32.gmra.mxu2 %vm1280_vm11, %v1246_v26 }
 0x1dd   : > { %v1310_v62 = vpop.f32.mrf.mxu0 }
 0x1de   : > { %v1311_v28 = vadd.f32 %v1310_v62, %v1263_v40  ;;  %v1371_v62 = vpop.permute.xlu2 %1370 }
 0x1e0   : > { %v1322_v50 = vmul.f32 %v1311_v28, %v1311_v28 }
 0x1e2   : > { %v1326_v60 = vmul.f32 %v1322_v50, %v1311_v28 }
 0x1e4   : > { %v1313_v46 = vpop.f32.mrf.mxu2  ;;  %v1319_v25 = vpop.f32.mrf.mxu3  ;;  %v1330_v43 = vmul.f32 0.044715, %v1326_v60 }
 0x1e5   : > { %v1314_v16 = vadd.f32 %v1313_v46, %v1268_v3  ;;  %v1320_v30 = vadd.f32 %v1319_v25, %v1278_v36 }
 0x1e6   : > { %v1334_v14 = vadd.f32 %v1330_v43, %v1311_v28 }
 0x1e7   : > { %v1323_v5 = vmul.f32 %v1314_v16, %v1314_v16  ;;  %v1325_v10 = vmul.f32 %v1320_v30, %v1320_v30 }
 0x1e8   : > { %v1338_v6 = vmul.f32 0.7978846, %v1334_v14 }
 0x1e9   : > { %v1327_v53 = vmul.f32 %v1323_v5, %v1314_v16  ;;  %v1329_v38 = vmul.f32 %v1325_v10, %v1320_v30 }
 0x1eb   : > { %v1333_v49 = vmul.f32 0.044715, %v1329_v38  ;;  %v1331_v45 = vmul.f32 0.044715, %v1327_v53 }
 0x1ec   : > { %v1316_v34 = vpop.f32.mrf.mxu2 }
 0x1ed   : > { %v1317_v55 = vadd.f32 %v1316_v34, %v1273_v48  ;;  %v1337_v12 = vadd.f32 %v1333_v49, %v1320_v30  ;;  %v1335_v51 = vadd.f32 %v1331_v45, %v1314_v16 }
 0x1ef   : > { %v1324_v8 = vmul.f32 %v1317_v55, %v1317_v55  ;;  %v1341_v54 = vmul.f32 0.7978846, %v1337_v12  ;;  %v1339_v11 = vmul.f32 0.7978846, %v1335_v51 }
 0x1f1   : > { %v1328_v0 = vmul.f32 %v1324_v8, %v1317_v55  ;;  %1992 = vtanh.f32 %v1341_v54 }
 0x1f2   : > { %1994 = vtanh.f32 %v1339_v11 }
 0x1f3   : > { %v1332_v24 = vmul.f32 0.044715, %v1328_v0  ;;  %1996 = vtanh.f32 %v1338_v6 }
 0x1f5   : > { %v1336_v29 = vadd.f32 %v1332_v24, %v1317_v55 }
 0x1f7   : > { %v1993_v15 = vpop.eup %1992  ;;  %v1340_v41 = vmul.f32 0.7978846, %v1336_v29 }
 0x1f8   : > { %v1349_v18 = vadd.f32 1.0, %v1993_v15  ;;  %v1995_v20 = vpop.eup %1994 }
 0x1f9   : > { %1998 = vtanh.f32 %v1340_v41  ;;  %v1997_v57 = vpop.eup %1996  ;;  %v1347_v21 = vadd.f32 1.0, %v1995_v20 }
 0x1fa   : > { %v1353_v9 = vmul.f32 0.5, %v1349_v18  ;;  %v1346_v27 = vadd.f32 1.0, %v1997_v57 }
 0x1fb   : > { %v1351_v7 = vmul.f32 0.5, %v1347_v21 }
 0x1fc   : > { %v1357_v56 = vmul.f32 %v1353_v9, %v1320_v30  ;;  %v1350_v63 = vmul.f32 0.5, %v1346_v27  ;;  %v1460_v27 = vld [vmem:[%s3069_s7 + $0x8] sm:$0xff] }
 0x1fd   : > { %v1355_v32 = vmul.f32 %v1351_v7, %v1314_v16  ;;  %v1462_v7 = vld [vmem:[%s3069_s7 + $0x18] sm:$0xff] }
 0x1fe   : > { %1402 = vmatpush.msra.mxu1 %v1357_v56  ;;  %v1354_v47 = vmul.f32 %v1350_v63, %v1311_v28  ;;  %v1485_v63 = vpop.permute.xlu2 %1484 }
 0x1ff   : > { %v1999_v42 = vpop.eup %1998 }
 0x200   : > { %v1348_v52 = vadd.f32 1.0, %v1999_v42 }
 0x202   : > { %v1352_v44 = vmul.f32 0.5, %v1348_v52  ;;  %v1459_v52 = vld [vmem:[%s3069_s7] sm:$0xff] }
 0x204   : > { %v1356_v37 = vmul.f32 %v1352_v44, %v1317_v55  ;;  %v1461_v44 = vld [vmem:[%s3069_s7 + $0x10] sm:$0xff] }
 0x206   : > { %1403 = vmatpush.msra.mxu1 %v1356_v37 }
 0x208   : > { %1404 = vmatpush.msra.mxu1 %v1355_v32 }
 0x20a   : > { %1405 = vmatpush.msra.mxu1 %v1354_v47  ;;  %v1475_v47 = vpop.permute.xlu1 %1474 }
 0x20b   : > { %1899 = vmatmul.msk.f32.vlgmr.msra.gmra.mxu1 %vm1280_vm11, %v1252_v58  ;;  %v1470_v58 = vpop.permute.xlu2 %1469 }
 0x213   : > { %1900 = vmatmul.msk.f32.gmra.mxu1 %vm1280_vm11, %v1253_v31 }
 0x21b   : > { %1901 = vmatmul.msk.f32.gmra.mxu1 %vm1280_vm11, %v1254_v17 }
 0x223   : > { %1902 = vmatmul.msk.f32.gmra.mxu1 %vm1280_vm11, %v1255_v19 }
 0x288   : > { %v1407_v33 = vpop.f32.mrf.mxu1 }
 0x289   : > { %v1408_v13 = vadd.f32 %v1407_v33, %v1361_v4 }
 0x28b   : > { %v1419_v36 = vadd.f32 %v1408_v13, %v2924_v1 }
 0x28d   : > { %v1423_v50 = vmul.f32 %v1419_v36, %v1419_v36 }
 0x28f   : > { %v1427_v30 = vmul.f32 %v1423_v50, %v1419_v36 }
 0x290   : > { %v1410_v59 = vpop.f32.mrf.mxu1 }
 0x291   : > { %v1411_v22 = vadd.f32 %v1410_v59, %v1366_v39  ;;  %v1431_v49 = vmul.f32 0.044715, %v1427_v30 }
 0x293   : > { %v1420_v26 = vadd.f32 %v1411_v22, %v2912_v61  ;;  %v1435_v48 = vadd.f32 %v1431_v49, %v1419_v36 }
 0x295   : > { %v1424_v28 = vmul.f32 %v1420_v26, %v1420_v26 }
 0x297   : > { %v1428_v16 = vmul.f32 %v1424_v28, %v1420_v26 }
 0x298   : > { %v1413_v40 = vpop.f32.mrf.mxu1 }
 0x299   : > { %v1414_v3 = vadd.f32 %v1413_v40, %v1371_v62  ;;  %v1432_v38 = vmul.f32 0.044715, %v1428_v16 }
 0x29b   : > { %v1421_v46 = vadd.f32 %v1414_v3, %v2877_v23  ;;  %v1436_v43 = vadd.f32 %v1432_v38, %v1420_v26  ;;  %v1439_v23 = vmul.f32 0.7978846, %v1435_v48 }
 0x29d   : > { %v1425_v25 = vmul.f32 %v1421_v46, %v1421_v46  ;;  %v1440_v51 = vmul.f32 0.7978846, %v1436_v43 }
 0x29f   : > { %v1429_v60 = vmul.f32 %v1425_v25, %v1421_v46 }
 0x2a0   : > { %v1416_v5 = vpop.f32.mrf.mxu1 }
 0x2a1   : > { %v1417_v10 = vadd.f32 %v1416_v5, %v1376_v35  ;;  %v1433_v53 = vmul.f32 0.044715, %v1429_v60  ;;  %v1480_v35 = vpop.permute.xlu0 %1479 }
 0x2a3   : > { %v1422_v61 = vadd.f32 %v1417_v10, %v2850_v2  ;;  %v1437_v45 = vadd.f32 %v1433_v53, %v1421_v46 }
 0x2a5   : > { %v1426_v1 = vmul.f32 %v1422_v61, %v1422_v61  ;;  %v1441_v55 = vmul.f32 0.7978846, %v1437_v45 }
 0x2a7   : > { %v1430_v34 = vmul.f32 %v1426_v1, %v1422_v61  ;;  %2000 = vtanh.f32 %v1441_v55 }
 0x2a8   : > { %2002 = vtanh.f32 %v1440_v51 }
 0x2a9   : > { %v1434_v12 = vmul.f32 0.044715, %v1430_v34  ;;  %2004 = vtanh.f32 %v1439_v23 }
 0x2ab   : > { %v1438_v8 = vadd.f32 %v1434_v12, %v1422_v61 }
 0x2ad   : > { %v1442_v54 = vmul.f32 0.7978846, %v1438_v8  ;;  %v2001_v14 = vpop.eup %2000 }
 0x2ae   : > { %v2003_v0 = vpop.eup %2002  ;;  %v1449_v24 = vadd.f32 1.0, %v2001_v14 }
 0x2af   : > { %2006 = vtanh.f32 %v1442_v54  ;;  %v2005_v11 = vpop.eup %2004  ;;  %v1448_v29 = vadd.f32 1.0, %v2003_v0 }
 0x2b0   : > { %v1453_v41 = vmul.f32 0.5, %v1449_v24  ;;  %v1447_v18 = vadd.f32 1.0, %v2005_v11 }
 0x2b1   : > { %v1452_v20 = vmul.f32 0.5, %v1448_v29  ;;  %v1566_v29 = vld [vmem:[%s3071_s9 + $0x10] sm:$0xff] }
 0x2b2   : > { %v1457_v56 = vmul.f32 %v1453_v41, %v1421_v46  ;;  %v1451_v57 = vmul.f32 0.5, %v1447_v18  ;;  %v1598_v18 = vpop.permute.xlu0 %1597 }
 0x2b3   : > { %v1456_v21 = vmul.f32 %v1452_v20, %v1420_v26  ;;  %v1588_v20 = vpop.permute.xlu2 %1587 }
 0x2b4   : > { %v1455_v42 = vmul.f32 %v1451_v57, %v1419_v36 }
 0x2b5   : > { %v2007_v2 = vpop.eup %2006 }
 0x2b6   : > { %v1450_v6 = vadd.f32 1.0, %v2007_v2  ;;  %v1564_v2 = vld [vmem:[%s3071_s9] sm:$0xff] }
 0x2b8   : > { %v1454_v15 = vmul.f32 0.5, %v1450_v6  ;;  %v1565_v6 = vld [vmem:[%s3071_s9 + $0x8] sm:$0xff] }
 0x2ba   : > { %v1458_v9 = vmul.f32 %v1454_v15, %v1422_v61  ;;  %v1567_v15 = vld [vmem:[%s3071_s9 + $0x18] sm:$0xff] }
 0x2bc   : > { %1511 = vmatpush.msrb.mxu2 %v1458_v9 }
 0x2be   : > { %1512 = vmatpush.msrb.mxu2 %v1457_v56  ;;  %v1583_v56 = vpop.permute.xlu0 %1582 }
 0x2c0   : > { %1513 = vmatpush.msrb.mxu2 %v1456_v21 }
 0x2c2   : > { %1514 = vmatpush.msrb.mxu2 %v1455_v42 }
 0x2c3   : > { %1903 = vmatmul.msk.f32.vlgmr.msrb.gmra.mxu2 %vm1280_vm11, %v1459_v52  ;;  %v1593_v52 = vpop.permute.xlu1 %1592 }
 0x2cb   : > { %1904 = vmatmul.msk.f32.gmra.mxu2 %vm1280_vm11, %v1460_v27 }
 0x2d3   : > { %1905 = vmatmul.msk.f32.gmra.mxu2 %vm1280_vm11, %v1461_v44 }
 0x2db   : > { %1906 = vmatmul.msk.f32.gmra.mxu2 %vm1280_vm11, %v1462_v7 }
 0x346   : > { %v1516_v37 = vpop.f32.mrf.mxu2 }
 0x347   : > { %v1517_v17 = vadd.f32 %v1516_v37, %v1470_v58 }
 0x349   : > { %v1528_v33 = vmul.f32 %v1517_v17, %v1517_v17 }
 0x34b   : > { %v1532_v13 = vmul.f32 %v1528_v33, %v1517_v17 }
 0x34d   : > { %v1536_v28 = vmul.f32 0.044715, %v1532_v13 }
 0x34e   : > { %v1519_v32 = vpop.f32.mrf.mxu2 }
 0x34f   : > { %v1520_v31 = vadd.f32 %v1519_v32, %v1475_v47  ;;  %v1540_v16 = vadd.f32 %v1536_v28, %v1517_v17 }
 0x351   : > { %v1529_v19 = vmul.f32 %v1520_v31, %v1520_v31  ;;  %v1544_v53 = vmul.f32 0.7978846, %v1540_v16 }
 0x353   : > { %v1533_v4 = vmul.f32 %v1529_v19, %v1520_v31 }
 0x355   : > { %v1537_v62 = vmul.f32 0.044715, %v1533_v4 }
 0x356   : > { %v1522_v39 = vpop.f32.mrf.mxu2 }
 0x357   : > { %v1523_v59 = vadd.f32 %v1522_v39, %v1480_v35  ;;  %v1541_v25 = vadd.f32 %v1537_v62, %v1520_v31 }
 0x359   : > { %v1530_v22 = vmul.f32 %v1523_v59, %v1523_v59  ;;  %v1545_v10 = vmul.f32 0.7978846, %v1541_v25 }
 0x35b   : > { %v1534_v26 = vmul.f32 %v1530_v22, %v1523_v59 }
 0x35d   : > { %v1538_v36 = vmul.f32 0.044715, %v1534_v26 }
 0x35e   : > { %v1525_v40 = vpop.f32.mrf.mxu2 }
 0x35f   : > { %v1526_v3 = vadd.f32 %v1525_v40, %v1485_v63  ;;  %v1542_v50 = vadd.f32 %v1538_v36, %v1523_v59 }
 0x361   : > { %v1531_v46 = vmul.f32 %v1526_v3, %v1526_v3  ;;  %v1546_v60 = vmul.f32 0.7978846, %v1542_v50 }
 0x363   : > { %v1535_v30 = vmul.f32 %v1531_v46, %v1526_v3  ;;  %2008 = vtanh.f32 %v1546_v60 }
 0x364   : > { %2010 = vtanh.f32 %v1545_v10 }
 0x365   : > { %v1539_v5 = vmul.f32 0.044715, %v1535_v30  ;;  %2012 = vtanh.f32 %v1544_v53 }
 0x367   : > { %v1543_v38 = vadd.f32 %v1539_v5, %v1526_v3 }
 0x369   : > { %v1547_v49 = vmul.f32 0.7978846, %v1543_v38  ;;  %v2009_v61 = vpop.eup %2008 }
 0x36a   : > { %v2011_v45 = vpop.eup %2010  ;;  %v1554_v43 = vadd.f32 1.0, %v2009_v61 }
 0x36b   : > { %2014 = vtanh.f32 %v1547_v49  ;;  %v2013_v1 = vpop.eup %2012  ;;  %v1553_v55 = vadd.f32 1.0, %v2011_v45 }
 0x36c   : > { %v1558_v51 = vmul.f32 0.5, %v1554_v43  ;;  %v1552_v23 = vadd.f32 1.0, %v2013_v1 }
 0x36d   : > { %v1557_v54 = vmul.f32 0.5, %v1553_v55  ;;  %v1574_v55 = vld [vmem:[%s3073_s11 + $0x10] sm:$0xff] }
 0x36e   : > { %v2981_v14 = vmul.f32 %v1558_v51, %v1523_v59  ;;  %v1556_v0 = vmul.f32 0.5, %v1552_v23  ;;  %v1695_v51 = vpop.permute.xlu1 %1694 }
 0x36f   : > { %v2984_v11 = vmul.f32 %v1557_v54, %v1520_v31  ;;  %v1685_v54 = vpop.permute.xlu0 %1684 }
 0x370   : > { %v2987_v24 = vmul.f32 %v1556_v0, %v1517_v17 }
 0x371   : > { %v2015_v48 = vpop.eup %2014 }
 0x372   : > { %v1555_v34 = vadd.f32 1.0, %v2015_v48  ;;  %v1572_v48 = vld [vmem:[%s3073_s11] sm:$0xff] }
 0x374   : > { %v1559_v12 = vmul.f32 0.5, %v1555_v34  ;;  %v1573_v34 = vld [vmem:[%s3073_s11 + $0x8] sm:$0xff] }
 0x376   : > { %v2978_v8 = vmul.f32 %v1559_v12, %v1526_v3  ;;  %v1575_v12 = vld [vmem:[%s3073_s11 + $0x18] sm:$0xff] }
 0x378   : > { %1624 = vmatpush.msrb.mxu3 %v2978_v8 }
 0x37a   : > { %1625 = vmatpush.msrb.mxu3 %v2981_v14 }
 0x37c   : > { %1626 = vmatpush.msrb.mxu3 %v2984_v11 }
 0x37e   : > { %1627 = vmatpush.msrb.mxu3 %v2987_v24 }
 0x37f   : > { %1907 = vmatmul.msk.f32.vlgmr.msrb.gmra.mxu3 %vm1280_vm11, %v1564_v2  ;;  %v1680_v2 = vpop.permute.xlu1 %1679 }
 0x387   : > { %1908 = vmatmul.msk.f32.gmra.mxu3 %vm1280_vm11, %v1565_v6 }
 0x38f   : > { %1909 = vmatmul.msk.f32.gmra.mxu3 %vm1280_vm11, %v1566_v29 }
 0x397   : > { %1910 = vmatmul.msk.f32.gmra.mxu3 %vm1280_vm11, %v1567_v15 }
 0x402   : > { %v1629_v41 = vpop.f32.mrf.mxu3 }
 0x403   : > { %v1630_v21 = vadd.f32 %v1629_v41, %v1583_v56 }
 0x405   : > { %v1641_v27 = vmul.f32 %v1630_v21, %v1630_v21 }
 0x407   : > { %v1645_v32 = vmul.f32 %v1641_v27, %v1630_v21 }
 0x409   : > { %v1649_v19 = vmul.f32 0.044715, %v1645_v32 }
 0x40a   : > { %v1632_v9 = vpop.f32.mrf.mxu3 }
 0x40b   : > { %v1633_v57 = vadd.f32 %v1632_v9, %v1588_v20  ;;  %v1653_v4 = vadd.f32 %v1649_v19, %v1630_v21 }
 0x40d   : > { %v1642_v42 = vmul.f32 %v1633_v57, %v1633_v57  ;;  %v1657_v62 = vmul.f32 0.7978846, %v1653_v4 }
 0x40f   : > { %v1646_v37 = vmul.f32 %v1642_v42, %v1633_v57 }
 0x411   : > { %v1650_v31 = vmul.f32 0.044715, %v1646_v37 }
 0x412   : > { %v1635_v44 = vpop.f32.mrf.mxu3 }
 0x413   : > { %v1636_v7 = vadd.f32 %v1635_v44, %v1593_v52  ;;  %v1654_v59 = vadd.f32 %v1650_v31, %v1633_v57 }
 0x415   : > { %v1643_v63 = vmul.f32 %v1636_v7, %v1636_v7  ;;  %v1658_v36 = vmul.f32 0.7978846, %v1654_v59 }
 0x417   : > { %v1647_v47 = vmul.f32 %v1643_v63, %v1636_v7 }
 0x419   : > { %v1651_v58 = vmul.f32 0.044715, %v1647_v47 }
 0x41a   : > { %v1638_v17 = vpop.f32.mrf.mxu3 }
 0x41b   : > { %v1639_v35 = vadd.f32 %v1638_v17, %v1598_v18  ;;  %v1655_v33 = vadd.f32 %v1651_v58, %v1636_v7  ;;  %v1690_v18 = vpop.permute.xlu2 %1689 }
 0x41d   : > { %v1644_v39 = vmul.f32 %v1639_v35, %v1639_v35  ;;  %v1659_v13 = vmul.f32 0.7978846, %v1655_v33 }
 0x41f   : > { %v1648_v22 = vmul.f32 %v1644_v39, %v1639_v35  ;;  %2016 = vtanh.f32 %v1659_v13 }
 0x420   : > { %2018 = vtanh.f32 %v1658_v36 }
 0x421   : > { %v1652_v26 = vmul.f32 0.044715, %v1648_v22  ;;  %2020 = vtanh.f32 %v1657_v62 }
 0x423   : > { %v1656_v40 = vadd.f32 %v1652_v26, %v1639_v35 }
 0x425   : > { %v1660_v28 = vmul.f32 0.7978846, %v1656_v40  ;;  %v2017_v3 = vpop.eup %2016 }
 0x426   : > { %v2019_v50 = vpop.eup %2018  ;;  %v1667_v25 = vadd.f32 1.0, %v2017_v3 }
 0x427   : > { %2022 = vtanh.f32 %v1660_v28  ;;  %v2021_v46 = vpop.eup %2020  ;;  %v1666_v60 = vadd.f32 1.0, %v2019_v50 }
 0x428   : > { %v1671_v10 = vmul.f32 0.5, %v1667_v25  ;;  %v1665_v53 = vadd.f32 1.0, %v2021_v46 }
 0x429   : > { %v1670_v49 = vmul.f32 0.5, %v1666_v60 }
 0x42a   : > { %v1675_v61 = vmul.f32 %v1671_v10, %v1636_v7  ;;  %v1669_v45 = vmul.f32 0.5, %v1665_v53  ;;  %v1778_v10 = vld [vmem:[%s3075_s13] sm:$0x1]  ;;  %v1783_v53 = vpop.permute.xlu2 %1782 }
 0x42b   : > { %v1674_v1 = vmul.f32 %v1670_v49, %v1633_v57 }
 0x42c   : > { %v1673_v43 = vmul.f32 %v1669_v45, %v1630_v21 }
 0x42d   : > { %v2023_v16 = vpop.eup %2022 }
 0x42e   : > { %v1668_v30 = vadd.f32 1.0, %v2023_v16 }
 0x430   : > { %v1672_v5 = vmul.f32 0.5, %v1668_v30 }
 0x432   : > { %v1676_v38 = vmul.f32 %v1672_v5, %v1639_v35 }
 0x434   : > { %1721 = vmatpush.msrb.mxu0 %v1676_v38  ;;  %v1785_v38 = vperm.slane %v1783_v53, 0 }
 0x436   : > { %1722 = vmatpush.msrb.mxu0 %v1675_v61 }
 0x438   : > { %1723 = vmatpush.msrb.mxu0 %v1674_v1 }
 0x43a   : > { %1724 = vmatpush.msrb.mxu0 %v1673_v43 }
 0x43b   : > { %1911 = vmatmul.msk.f32.vlgmr.msrb.gmra.mxu0 %vm1280_vm11, %v1572_v48 }
 0x443   : > { %1912 = vmatmul.msk.f32.gmra.mxu0 %vm1280_vm11, %v1573_v34 }
 0x44b   : > { %1913 = vmatmul.msk.f32.gmra.mxu0 %vm1280_vm11, %v1574_v55 }
 0x453   : > { %1914 = vmatmul.msk.f32.gmra.mxu0 %vm1280_vm11, %v1575_v12 }
 0x4b8   : > { %v1726_v23 = vpop.f32.mrf.mxu0 }
 0x4b9   : > { %v1727_v29 = vadd.f32 %v1726_v23, %v1680_v2 }
 0x4bb   : > { %v1738_v41 = vadd.f32 %v1727_v29, %v2987_v24 }
 0x4bd   : > { %v1742_v57 = vmul.f32 %v1738_v41, %v1738_v41 }
 0x4bf   : > { %v1746_v27 = vmul.f32 %v1742_v57, %v1738_v41 }
 0x4c0   : > { %v1729_v0 = vpop.f32.mrf.mxu0 }
 0x4c1   : > { %v1730_v6 = vadd.f32 %v1729_v0, %v1685_v54  ;;  %v1750_v47 = vmul.f32 0.044715, %v1746_v27 }
 0x4c3   : > { %v1739_v15 = vadd.f32 %v1730_v6, %v2984_v11  ;;  %v1754_v17 = vadd.f32 %v1750_v47, %v1738_v41 }
 0x4c5   : > { %v1743_v20 = vmul.f32 %v1739_v15, %v1739_v15 }
 0x4c7   : > { %v1747_v52 = vmul.f32 %v1743_v20, %v1739_v15 }
 0x4c8   : > { %v1732_v9 = vpop.f32.mrf.mxu0 }
 0x4c9   : > { %v1733_v56 = vadd.f32 %v1732_v9, %v1690_v18  ;;  %v1751_v32 = vmul.f32 0.044715, %v1747_v52 }
 0x4cb   : > { %v1740_v21 = vadd.f32 %v1733_v56, %v2981_v14  ;;  %v1755_v31 = vadd.f32 %v1751_v32, %v1739_v15  ;;  %v1758_v14 = vmul.f32 0.7978846, %v1754_v17 }
 0x4cd   : > { %v1744_v42 = vmul.f32 %v1740_v21, %v1740_v21  ;;  %v1759_v39 = vmul.f32 0.7978846, %v1755_v31 }
 0x4cf   : > { %v1748_v44 = vmul.f32 %v1744_v42, %v1740_v21 }
 0x4d0   : > { %v1735_v7 = vpop.f32.mrf.mxu0 }
 0x4d1   : > { %v1736_v37 = vadd.f32 %v1735_v7, %v1695_v51  ;;  %v1752_v63 = vmul.f32 0.044715, %v1748_v44 }
 0x4d3   : > { %v1741_v11 = vadd.f32 %v1736_v37, %v2978_v8  ;;  %v1756_v58 = vadd.f32 %v1752_v63, %v1740_v21 }
 0x4d5   : > { %v1745_v24 = vmul.f32 %v1741_v11, %v1741_v11  ;;  %v1760_v35 = vmul.f32 0.7978846, %v1756_v58 }
 0x4d7   : > { %v1749_v19 = vmul.f32 %v1745_v24, %v1741_v11  ;;  %2024 = vtanh.f32 %v1760_v35 }
 0x4d8   : > { %2026 = vtanh.f32 %v1759_v39 }
 0x4d9   : > { %v1753_v33 = vmul.f32 0.044715, %v1749_v19  ;;  %2028 = vtanh.f32 %v1758_v14 }
 0x4db   : > { %v1757_v59 = vadd.f32 %v1753_v33, %v1741_v11 }
 0x4dd   : > { %v1761_v4 = vmul.f32 0.7978846, %v1757_v59  ;;  %v2025_v22 = vpop.eup %2024 }
 0x4de   : > { %v2027_v13 = vpop.eup %2026  ;;  %v1768_v36 = vadd.f32 1.0, %v2025_v22 }
 0x4df   : > { %2030 = vtanh.f32 %v1761_v4  ;;  %v2029_v26 = vpop.eup %2028  ;;  %v1767_v40 = vadd.f32 1.0, %v2027_v13 }
 0x4e0   : > { %v1772_v3 = vmul.f32 0.5, %v1768_v36  ;;  %v1766_v50 = vadd.f32 1.0, %v2029_v26 }
 0x4e1   : > { %v1771_v25 = vmul.f32 0.5, %v1767_v40 }
 0x4e2   : > { %v1776_v16 = vmul.f32 %v1772_v3, %v1740_v21  ;;  %v1770_v30 = vmul.f32 0.5, %v1766_v50 }
 0x4e3   : > { %v1775_v60 = vmul.f32 %v1771_v25, %v1739_v15 }
 0x4e4   : > { %v1774_v5 = vmul.f32 %v1770_v30, %v1738_v41 }
 0x4e5   : > { %v2031_v8 = vpop.eup %2030 }
 0x4e6   : > { %v1769_v62 = vadd.f32 1.0, %v2031_v8 }
 0x4e8   : > { %v1773_v28 = vmul.f32 0.5, %v1769_v62 }
 0x4ea   : > { %v1777_v46 = vmul.f32 %v1773_v28, %v1741_v11 }
 0x4ec   : > { %1801 = vmatpush.msrb.mxu1 %v1777_v46 }
 0x4ee   : > { %1802 = vmatpush.msrb.mxu1 %v1776_v16 }
 0x4f0   : > { %1803 = vmatpush.msrb.mxu1 %v1775_v60 }
 0x4f2   : > { %1804 = vmatpush.msrb.mxu1 %v1774_v5 }
 0x4f3   : > { %1915 = vmatmul.msk.f32.vlgmr.msrb.gmra.mxu1 %vm1280_vm11, %v1778_v10 }
 0x570   : > { %v1806_v49 = vpop.f32.mrf.mxu1 }
 0x571   : > { %v1807_v61 = vadd.f32 %v1806_v49, %v1785_v38 }
 0x573   : > { %1809 = vst [vmem:[%s486_s28] sm:$0x1] %v1807_v61 }
 0x574   : > { %2059 = shalt.err (!%p2056_p3)
}
 0x575   : > { %1926 = dma.vmem_to_hbm [thread:$0]  (%p2227_p5), %s1822_s26, 16, %s1824_s27, %s1811_s1  }
 0x576 PF: > { %p1932_p4 = scmp.ge.s32.totalorder %s2094_s23, 2  ;;  %s1835_s19 = sand.u32 1, %s2082_s20  }
 0x577   : > { %s1836_s28 = scalar_lea.sflag [#allocation4], %s1835_s19 }
 0x578   : > { %p1929_p7 = pnand %p1932_p4, %p2231_p6 }
 0x57a   : > { %p1930_p8 = pneg %p1929_p7 }
 0x57c   : > { %2077 = dma.done.wait (%p1930_p8), %s1836_s28, 16  }
 0x57d   : > { %2079 = vsyncadd (%p1930_p8), %s1836_s28, 4294967280  ;;  %s3095_s16 = sld [smem:[#allocation6_spill]]  ;;  %p27_p9 = scmp.ge.s32.totalorder %s2214_s25, 4  }
 0x57e   : > { %s3096_s22 = sld [smem:[#allocation7_spill]]  ;;  %s3097_s20 = smov %s2086_s21 }
 0x57f   : > { %s3099_s23 = smov %s2214_s25  ;;  %29 = sbr.rel (!%p27_p9) target bundleno = 6 (0x6), region = 115 }
 0x583   : > { %s3098_s21 = smov %s3095_s16 }
 0x584   :  { %1841 = vsyncpa [#allocation4], 1 }
 0x585   :  { %1843 = vsyncpa [#allocation4 + $0x1], 1 }

// kernel: tpu_custom_call.1
= control target key start
LH: loop header
LB: loop body
LE: loop exit
PB: predicated region body
PF: predicated region fallthrough
CT: control target
= control target key end

     0   :  { %s3062_s0 = inlined_call_operand.vmem [shape: f32[4,256], index: 0, kind: input, shape index: {}]   ;;  %s3063_s1 = inlined_call_operand.vmem [shape: f32[32,4], index: 1, kind: input, shape index: {}]   ;;  %s3064_s2 = inlined_call_operand.vmem [shape: f32[32,1], index: 2, kind: input, shape index: {}]   ;;  %s3065_s3 = inlined_call_operand.vmem [shape: f32[32,32], index: 3, kind: input, shape index: {}]   ;;  %s3066_s4 = inlined_call_operand.vmem [shape: f32[32,1], index: 4, kind: input, shape index: {}]   ;;  %s3067_s5 = inlined_call_operand.vmem [shape: f32[32,32], index: 5, kind: input, shape index: {}]   ;;  %s3068_s6 = inlined_call_operand.vmem [shape: f32[32,1], index: 6, kind: input, shape index: {}]   ;;  %s3069_s7 = inlined_call_operand.vmem [shape: f32[32,32], index: 7, kind: input, shape index: {}]   ;;  %s3070_s8 = inlined_call_operand.vmem [shape: f32[32,1], index: 8, kind: input, shape index: {}]   ;;  %s3071_s9 = inlined_call_operand.vmem [shape: f32[32,32], index: 9, kind: input, shape index: {}]   ;;  %s3072_s10 = inlined_call_operand.vmem [shape: f32[32,1], index: 10, kind: input, shape index: {}]   ;;  %s3073_s11 = inlined_call_operand.vmem [shape: f32[32,32], index: 11, kind: input, shape index: {}]   ;;  %s3074_s12 = inlined_call_operand.vmem [shape: f32[32,1], index: 12, kind: input, shape index: {}]   ;;  %s3075_s13 = inlined_call_operand.vmem [shape: f32[1,32], index: 13, kind: input, shape index: {}]   ;;  %s3076_s14 = inlined_call_operand.<no memory space> [shape: f32[1,1], index: 14, kind: input, shape index: {}]   ;;  %s3077_s15 = inlined_call_operand.hbm [shape: f32[1,256], index: 15, kind: output, shape index: {}]  }
   0x1   :  { %3079 = sst [smem:[#allocation8_spill]] %s3063_s1  ;;  %v20_v0 = vstv %s3076_s14 }
   0x2   :  { %3080 = sst [smem:[#allocation9_spill]] %s3064_s2  ;;  %21 = vst [vmem:[#allocation2] sm:$0x1] %v20_v0 }
   0x3   :  { %22 = vsyncpa [#allocation4], 0 }
   0x4   :  { %24 = vsyncpa [#allocation4 + $0x1], 0  ;;  %s2189_s20 = smov 0   ;;  %s2191_s21 = smov 0  }
   0x5   :  { %s2193_s22 = smov 0   ;;  %s2195_s23 = smov 0  }
   0x6 LB: > { %3081 = sst [smem:[#allocation6_spill]] %s2090_s22  ;;  %s2210_s14 = sadd.s32 4294967295, %s2094_s23   ;;  %s2094_s23 = sphi %s2195_s23, %s3099_s23   ;;  %s2090_s22 = sphi %s2193_s22, %s3096_s22   ;;  %s2086_s21 = sphi %s2191_s21, %s3098_s21   ;;  %s2082_s20 = sphi %s2189_s20, %s3097_s20  }
   0x7   : > { %s1878_s24 = sadd.s32 4294967294, %s2094_s23   ;;  %s2214_s25 = sadd.s32 1, %s2094_s23  }
   0x8   : > { %s357_s26 = sadd.s32 1, %s2090_s22  ;;  %s354_s27 = ssub.s32 %s2094_s23, %s2214_s25 }
   0x9   : > { %p367_p0 = scmp.ne.s32.totalorder %s2090_s22, %s2086_s21  ;;  %p355_p1 = scmp.eq.s32.totalorder %s354_s27, 0 }
   0xa   : > { %p368_p2 = scmp.eq.s32.totalorder %s2210_s14, 1  ;;  %p373_p3 = scmp.ne.s32.totalorder %s2086_s21, %s2082_s20 }
   0xb   : > { %p374_p4 = scmp.eq.s32.totalorder %s1878_s24, 1  ;;  %p1881_p7 = scmp.ge.s32.totalorder %s2094_s23, 1 }
   0xc   : > { %s2225_s28 = scalar_select %p355_p1, %s2090_s22, %s357_s26  }
   0xd   : > { %p2227_p5 = por %p368_p2, %p367_p0  ;;  %p2231_p6 = por %p374_p4, %p373_p3 }
   0xe   : > { %3082 = sst [smem:[#allocation7_spill]] %s2225_s28  ;;  %p441_p8 = scmp.lt.s32.totalorder %s2094_s23, 3 }
  0x10   : > { %p442_p9 = pnand %p1881_p7, %p441_p8 }
  0x11   : > { %s3085_s1 = sld [smem:[#allocation8_spill]] (!%p442_p9)  ;;  %p487_p10 = scmp.lt.s32.totalorder (!%p442_p9), %s2210_s14, 1 }
  0x12   : > { %445 = sbr.rel (%p442_p9) target bundleno = 1398 (0x576), region = 80  ;;  %s3086_s2 = sld [smem:[#allocation9_spill]] (!%p442_p9) }
  0x13   : > { %s2052_s24 = scalar_lea.hbm (!%p442_p9), %s3077_s15, 2 }
  0x17   : > { %v495_v1 = vld [vmem:[%s3085_s1 + $0x18] sm:$0xff]  ;;  %v494_v2 = vld [vmem:[%s3085_s1 + $0x10] sm:$0xff]  ;;  %v2096_v3 = vmov 2   ;;  %v2097_v4 = vmov 0   ;;  %v493_v5 = vld [vmem:[%s3085_s1 + $0x8] sm:$0xff]  ;;  %v2098_v6 = vmov 1  }
  0x18   : > { %1979 = vset.pattern.permute.xlu2 %v2096_v3  ;;  %1977 = vset.pattern.permute.xlu1 %v2097_v4  ;;  %v2099_v7 = vmov 3   ;;  %v492_v8 = vld [vmem:[%s3085_s1] sm:$0xff]  ;;  %v597_v9 = vld [vmem:[%s3086_s2 + $0x8] sm:$0xff]  ;;  %v599_v11 = vld [vmem:[%s3086_s2 + $0x18] sm:$0xff]  ;;  %s488_s22 = scalar_select %p487_p10, %s2210_s14, 1 }
  0x19   : > { %1975 = vset.pattern.permute.xlu0 %v2097_v4  ;;  %559 = vperm.xlu2 %1979, %v495_v1   ;;  %v1248_v10 = vld [vmem:[%s3066_s4] sm:$0xff]  ;;  %v1257_v12 = vld [vmem:[%s3068_s6 + $0x8] sm:$0xff]  ;;  %v598_v13 = vld [vmem:[%s3086_s2 + $0x10] sm:$0xff] }
  0x1a   : > { %513 = vperm.xlu0 %1975, %v495_v1   ;;  %508 = vperm.xlu1 %1977, %v494_v2   ;;  %v1465_v14 = vld [vmem:[%s3070_s8 + $0x10] sm:$0xff]  ;;  %v596_v15 = vld [vmem:[%s3086_s2] sm:$0xff]  ;;  %v1251_v16 = vld [vmem:[%s3066_s4 + $0x18] sm:$0xff]  ;;  %s1882_s16 = sshll.u32 %s488_s22, 2  ;;  %s1819_s22 = scalar_lea.hbm %s3077_s15, %s2210_s14 }
  0x1b   : > { %v1571_v17 = vld [vmem:[%s3072_s10 + $0x18] sm:$0xff]  ;;  %v1250_v18 = vld [vmem:[%s3066_s4 + $0x10] sm:$0xff]  ;;  %v1249_v19 = vld [vmem:[%s3066_s4 + $0x8] sm:$0xff]  ;;  %s490_s19 = scalar_lea.vmem %s3062_s0, %s1882_s16  ;;  %s1823_s27 = sshll.u32 %s1819_s22, 4  ;;  %s1824_s27 = int_to_ptr.hbm [resolvable:$true] %s1823_s27 }
  0x1c   : > { %v1568_v20 = vld [vmem:[%s3072_s10] sm:$0xff]  ;;  %v1259_v21 = vld [vmem:[%s3068_s6 + $0x18] sm:$0xff]  ;;  %v1258_v22 = vld [vmem:[%s3068_s6 + $0x10] sm:$0xff]  ;;  %s2046_s16 = sshra.s32 %s1824_s27, 4  ;;  %s2047_s16 = int_to_ptr.hbm [resolvable:$true] %s2046_s16 }
  0x1d   : > { %v1577_v23 = vld [vmem:[%s3074_s12 + $0x8] sm:$0xff]  ;;  %v1256_v24 = vld [vmem:[%s3068_s6] sm:$0xff]  ;;  %v1466_v25 = vld [vmem:[%s3070_s8 + $0x18] sm:$0xff]  ;;  %s2048_s17 = scalar_lea.hbm %s2047_s16, 1  ;;  %p2053_p0 = scmp.lt.s32.totalorder %s2047_s16, %s3077_s15 }
  0x1e   : > { %v1464_v26 = vld [vmem:[%s3070_s8 + $0x8] sm:$0xff]  ;;  %v1463_v28 = vld [vmem:[%s3070_s8] sm:$0xff]  ;;  %v1570_v29 = vld [vmem:[%s3072_s10 + $0x10] sm:$0xff]  ;;  %p2049_p11 = scmp.ne.s32.totalorder %s2047_s16, %s2048_s17  ;;  %p2054_p1 = scmp.lt.s32.totalorder %s2052_s24, %s2048_s17 }
  0x1f   : > { %v1569_v30 = vld [vmem:[%s3072_s10 + $0x8] sm:$0xff]  ;;  %v1579_v32 = vld [vmem:[%s3074_s12 + $0x18] sm:$0xff]  ;;  %v1578_v33 = vld [vmem:[%s3074_s12 + $0x10] sm:$0xff] }
  0x20   : > { %v1576_v37 = vld [vmem:[%s3074_s12] sm:$0xff]  ;;  %p2050_p12 = pnand %p2049_p11, %p2227_p5  ;;  %p2055_p2 = por %p2054_p1, %p2053_p0 }
  0x21   : > { %1980 = vset.pattern.permute.xlu2 %v2097_v4  ;;  %v1779_v38 = vld [vmem:[#allocation2] sm:$0x1] }
  0x22   : > { %1976 = vset.pattern.permute.xlu0 %v2098_v6  ;;  %1978 = vset.pattern.permute.xlu1 %v2098_v6  ;;  %v491_v39 = vld [vmem:[%s490_s19] sm:$0xf]  ;;  %s485_s19 = sand.u32 1, %s2086_s21   ;;  %p2051_p13 = pneg %p2050_p12 }
  0x23   : > { %534 = vperm.xlu0 %1976, %v495_v1   ;;  %530 = vperm.xlu1 %1978, %v494_v2   ;;  %v2335_v40 = vperm.slane %v491_v39, 1  ;;  %v2338_v43 = vperm.slane %v491_v39, 0  ;;  %v2342_v48 = vperm.slane %v491_v39, 2  ;;  %v2346_v53 = vperm.slane %v491_v39, 3  ;;  %s486_s28 = scalar_lea.vmem [#allocation3], %s485_s19  ;;  %s1811_s1 = scalar_lea.sflag [#allocation4], %s485_s19 }
  0x24   : > { %503 = vperm.xlu2 %1980, %v493_v5   ;;  %s1821_s26 = sshll.u32 %s486_s28, 4  ;;  %p2056_p3 = pnand %p2055_p2, %p2051_p13  ;;  %s1822_s26 = int_to_ptr.vmem [resolvable:$true] %s1821_s26 }
  0x2b   : > { %1982 = vset.pattern.permute.xlu0 %v2099_v7  ;;  %526 = vperm.xlu1 %1978, %v493_v5  }
  0x2c   : > { %1981 = vset.pattern.permute.xlu2 %v2096_v3  ;;  %584 = vperm.xlu0 %1982, %v495_v1  }
  0x2d   : > { %555 = vperm.xlu2 %1981, %v494_v2  }
  0x33   : > { %1983 = vset.pattern.permute.xlu1 %v2097_v4 }
  0x34   : > { %1987 = vset.pattern.permute.xlu0 %v2096_v3  ;;  %498 = vperm.xlu1 %1983, %v492_v8  }
  0x35   : > { %1984 = vset.pattern.permute.xlu2 %v2098_v6  ;;  %547 = vperm.xlu0 %1987, %v492_v8  }
  0x36   : > { %522 = vperm.xlu2 %1984, %v492_v8  }
  0x3c   : > { %1985 = vset.pattern.permute.xlu1 %v2096_v3 }
  0x3d   : > { %1990 = vset.pattern.permute.xlu0 %v2097_v4  ;;  %551 = vperm.xlu1 %1985, %v493_v5  }
  0x3e   : > { %1986 = vset.pattern.permute.xlu2 %v2099_v7  ;;  %607 = vperm.xlu0 %1990, %v597_v9  }
  0x3f   : > { %580 = vperm.xlu2 %1986, %v494_v2  }
  0x45   : > { %1988 = vset.pattern.permute.xlu1 %v2099_v7 }
  0x46   : > { %1262 = vperm.xlu0 %1990, %v1248_v10   ;;  %576 = vperm.xlu1 %1988, %v493_v5  }
  0x47   : > { %1989 = vset.pattern.permute.xlu2 %v2097_v4 }
  0x48   : > { %617 = vperm.xlu2 %1989, %v599_v11  }
  0x4e   : > { %1365 = vperm.xlu0 %1990, %v1257_v12   ;;  %572 = vperm.xlu1 %1988, %v492_v8  }
  0x50   : > { %612 = vperm.xlu2 %1989, %v598_v13  }
  0x56   : > { %1479 = vperm.xlu0 %1990, %v1465_v14   ;;  %1991 = vset.pattern.permute.xlu1 %v2097_v4 }
  0x57   : > { %602 = vperm.xlu1 %1991, %v596_v15  }
  0x58   : > { %1277 = vperm.xlu2 %1989, %v1251_v16  }
  0x5e   : > { %1597 = vperm.xlu0 %1990, %v1571_v17  }
  0x5f   : > { %1272 = vperm.xlu1 %1991, %v1250_v18  }
  0x60   : > { %1267 = vperm.xlu2 %1989, %v1249_v19  }
  0x66   : > { %1582 = vperm.xlu0 %1990, %v1568_v20  }
  0x67   : > { %1375 = vperm.xlu1 %1991, %v1259_v21  }
  0x68   : > { %1370 = vperm.xlu2 %1989, %v1258_v22  }
  0x6e   : > { %1684 = vperm.xlu0 %1990, %v1577_v23  }
  0x6f   : > { %1360 = vperm.xlu1 %1991, %v1256_v24  }
  0x70   : > { %1484 = vperm.xlu2 %1989, %v1466_v25   ;;  %v2100_v25 = vmov 2475754826  }
  0x73   : > { %v560_v27 = vpop.permute.xlu2 %559 }
  0x74   : > { %v566_v51 = vmul.f32 %v2342_v48, %v560_v27  ;;  %v2101_v27 = vmov 2131351028  }
  0x77   : > { %1474 = vperm.xlu1 %1991, %v1464_v26  }
  0x78   : > { %1469 = vperm.xlu2 %1989, %v1463_v28  }
  0x7e   : > { %v2319_v31 = vpop.permute.xlu2 %503 }
  0x7f   : > { %1592 = vperm.xlu1 %1991, %v1570_v29  }
  0x80   : > { %1587 = vperm.xlu2 %1989, %v1569_v30   ;;  %v2102_v30 = vmov 2102212464  }
  0x87   : > { %1694 = vperm.xlu1 %1991, %v1579_v32   ;;  %v556_v34 = vpop.permute.xlu2 %555 }
  0x88   : > { %1689 = vperm.xlu2 %1989, %v1578_v33   ;;  %v565_v59 = vmul.f32 %v2342_v48, %v556_v34  ;;  %v2103_v34 = vmov 920167782  }
  0x8c   : > { %v509_v35 = vpop.permute.xlu1 %508  ;;  %v514_v36 = vpop.permute.xlu0 %513 }
  0x8d   : > { %v520_v46 = vmul.f32 %v2338_v43, %v514_v36  ;;  %v519_v56 = vmul.f32 %v2338_v43, %v509_v35 }
  0x8f   : > { %1679 = vperm.xlu1 %1991, %v1576_v37   ;;  %v2104_v37 = vmov 1326507024  }
  0x90   : > { %1782 = vperm.xlu2 %1989, %v1779_v38   ;;  %v523_v41 = vpop.permute.xlu2 %522 }
  0x91   : > { %v538_v42 = vmul.f32 %v2335_v40, %v523_v41 }
  0x95   : > { %v535_v44 = vpop.permute.xlu0 %534  ;;  %v531_v45 = vpop.permute.xlu1 %530 }
  0x96   : > { %v541_v47 = vmul.f32 %v2335_v40, %v535_v44  ;;  %v540_v52 = vmul.f32 %v2335_v40, %v531_v45 }
  0x98   : > { %v545_v50 = vadd.f32 %v541_v47, %v520_v46  ;;  %v544_v60 = vadd.f32 %v540_v52, %v519_v56 }
  0x99   : > { %v581_v49 = vpop.permute.xlu2 %580 }
  0x9a   : > { %v570_v58 = vadd.f32 %v566_v51, %v545_v50  ;;  %v590_v0 = vmul.f32 %v2346_v53, %v581_v49  ;;  %v569_v2 = vadd.f32 %v565_v59, %v544_v60  ;;  %v518_v60 = vmul.f32 %v2338_v43, %v2319_v31 }
  0x9c   : > { %v594_v11 = vadd.f32 %v590_v0, %v569_v2 }
  0x9d   : > { %v2348_v54 = vpop.permute.xlu1 %526 }
  0x9e   : > { %v585_v55 = vpop.permute.xlu0 %584  ;;  %v539_v59 = vmul.f32 %v2335_v40, %v2348_v54 }
  0x9f   : > { %v591_v57 = vmul.f32 %v2346_v53, %v585_v55  ;;  %v2105_v55 = vmov 683565275  }
  0xa0   : > { %v543_v54 = vadd.f32 %v539_v59, %v518_v60 }
  0xa1   : > { %v595_v61 = vadd.f32 %v591_v57, %v570_v58 }
  0xa2   : > { %v618_v62 = vpop.permute.xlu2 %617 }
  0xa3   : > { %v2353_v63 = vadd.f32 %v618_v62, %v595_v61 }
  0xa5   : > { %v1092_v1 = vand.u32 2139095040, %v2353_v63  ;;  %v1089_v16 = vand.u32 2147483647, %v2353_v63 }
  0xa6   : > { %v499_v3 = vpop.permute.xlu1 %498 }
  0xa7   : > { %v1093_v5 = vshrl.u32 %v1092_v1, 23  ;;  %v517_v6 = vmul.f32 %v2338_v43, %v499_v3  ;;  %v548_v7 = vpop.permute.xlu0 %547  ;;  %v1096_v23 = vand.u32 8388607, %v1089_v16 }
  0xa8   : > { %v563_v8 = vmul.f32 %v2342_v48, %v548_v7 }
  0xa9   : > { %v1892_v9 = vadd.s32 4294967169, %v1093_v5  ;;  %v542_v10 = vadd.f32 %v538_v42, %v517_v6  ;;  %v1097_v46 = vor.u32 8388608, %v1096_v23 }
  0xaa   : > { %v613_v12 = vpop.permute.xlu2 %612 }
  0xab   : > { %v1099_v13 = vadd.s32 1, %v1892_v9  ;;  %v2359_v14 = vadd.f32 %v563_v8, %v542_v10  ;;  %v2361_v15 = vadd.f32 %v613_v12, %v594_v11  ;;  %v2400_v1 = vshll.u32 %v1097_v46, 8 }
  0xad   : > { %vm1100_vm0 = vcmp.gt.s32.totalorder %v1099_v13, 0  ;;  %v937_v18 = vand.u32 2139095040, %v2361_v15  ;;  %v934_v58 = vand.u32 2147483647, %v2361_v15  ;;  %v1138_v9 = vand.u32 65535, %v2400_v1 }
  0xae   : > { %v1101_v17 = vsel %vm1100_vm0, %v1099_v13, 0  ;;  %v2416_v10 = vshrl.u32 %v2400_v1, 16 }
  0xaf   : > { %v1103_v19 = vand.u32 31, %v1101_v17  ;;  %v552_v20 = vpop.permute.xlu1 %551  ;;  %v938_v22 = vshrl.u32 %v937_v18, 23  ;;  %v2367_v24 = vshrl.u32 %v1101_v17, 5  ;;  %v941_v40 = vand.u32 8388607, %v934_v58 }
  0xb0   : > { %v564_v3 = vmul.f32 %v2342_v48, %v552_v20 }
  0xb1   : > { %v1104_v21 = vsub.s32 32, %v1103_v19  ;;  %v1109_v26 = vshll.u32 %v2100_v25, %v1103_v19  ;;  %v1112_v29 = vshll.u32 %v2101_v27, %v1103_v19  ;;  %v1115_v33 = vshll.u32 %v2102_v30, %v1103_v19 }
  0xb2   : > { %v1118_v36 = vshll.u32 %v2103_v34, %v1103_v19  ;;  %v1889_v42 = vadd.s32 4294967169, %v938_v22  ;;  %vm1121_vm1 = vcmp.lt.s32.totalorder %v2367_v24, 1  ;;  %vm1124_vm2 = vcmp.lt.s32.totalorder %v2367_v24, 4 }
  0xb3   : > { %v1110_v28 = vshrl.u32 %v2101_v27, %v1104_v21  ;;  %v1113_v32 = vshrl.u32 %v2102_v30, %v1104_v21  ;;  %v1116_v35 = vshrl.u32 %v2103_v34, %v1104_v21  ;;  %v1119_v38 = vshrl.u32 %v2104_v37, %v1104_v21 }
  0xb4   : > { %v1107_v47 = vshrl.u32 %v2100_v25, %v1104_v21  ;;  %vm1123_vm3 = vcmp.lt.s32.totalorder %v2367_v24, 3  ;;  %v944_v51 = vadd.s32 1, %v1889_v42  ;;  %v1106_v56 = vshll.u32 %v2105_v55, %v1103_v19 }
  0xb5   : > { %v1111_v39 = vor.u32 %v1110_v28, %v1109_v26  ;;  %v1114_v41 = vor.u32 %v1113_v32, %v1112_v29  ;;  %v1117_v44 = vor.u32 %v1116_v35, %v1115_v33  ;;  %v1120_v45 = vor.u32 %v1119_v38, %v1118_v36 }
  0xb6   : > { %vm1122_vm4 = vcmp.lt.s32.totalorder %v2367_v24, 2  ;;  %vm945_vm5 = vcmp.gt.s32.totalorder %v944_v51, 0  ;;  %v1108_v61 = vor.u32 %v1107_v47, %v1106_v56  ;;  %v1105_v6 = vshrl.u32 %v2105_v55, %v1104_v21 }
  0xb7   : > { %v1133_v49 = vsel %vm1121_vm1, %v1111_v39, %v1114_v41  ;;  %v1134_v50 = vsel %vm1124_vm2, %v1120_v45, 1326507024  ;;  %v1130_v0 = vsel %vm1124_vm2, %v1117_v44, 920167782  ;;  %v946_v2 = vsel %vm945_vm5, %v944_v51, 0 }
  0xb8   : > { %v577_v52 = vpop.permute.xlu1 %576  ;;  %v1135_v57 = vsel %vm1123_vm3, %v1117_v44, %v1134_v50  ;;  %v1126_v31 = vsel %vm1124_vm2, %v1114_v41, 2102212464  ;;  %v1129_v7 = vsel %vm1121_vm1, %v1108_v61, %v1111_v39  ;;  %v1131_v8 = vsel %vm1123_vm3, %v1114_v41, %v1130_v0  ;;  %v608_v50 = vpop.permute.xlu0 %607 }
  0xb9   : > { %v2396_v62 = vsel %vm1122_vm4, %v1133_v49, %v1135_v57  ;;  %v589_v5 = vmul.f32 %v2346_v53, %v577_v52  ;;  %v948_v48 = vand.u32 31, %v946_v2  ;;  %v568_v11 = vadd.f32 %v564_v3, %v543_v54 }
  0xba   : > { %v1141_v43 = vshrl.u32 %v2396_v62, 16  ;;  %v1125_v12 = vsel %vm1121_vm1, %v1105_v6, %v1108_v61  ;;  %v1127_v13 = vsel %vm1123_vm3, %v1111_v39, %v1126_v31  ;;  %v942_v17 = vor.u32 8388608, %v941_v40 }
  0xbb   : > { %v949_v18 = vsub.s32 32, %v948_v48  ;;  %v1132_v19 = vsel %vm1122_vm4, %v1129_v7, %v1131_v8  ;;  %v2426_v21 = vshrl.u32 %v946_v2, 5  ;;  %v593_v22 = vadd.f32 %v589_v5, %v568_v11 }
  0xbc   : > { %v2424_v20 = vmul.u32 %v1141_v43, %v1138_v9  ;;  %v954_v26 = vshll.u32 %v2100_v25, %v948_v48  ;;  %v957_v29 = vshll.u32 %v2101_v27, %v948_v48  ;;  %v960_v32 = vshll.u32 %v2102_v30, %v948_v48 }
  0xbd   : > { %v955_v28 = vshrl.u32 %v2101_v27, %v949_v18  ;;  %v958_v33 = vshrl.u32 %v2102_v30, %v949_v18  ;;  %v961_v35 = vshrl.u32 %v2103_v34, %v949_v18  ;;  %v963_v36 = vshll.u32 %v2103_v34, %v948_v48 }
  0xbe   : > { %v964_v38 = vshrl.u32 %v2104_v37, %v949_v18  ;;  %v2438_v39 = vsel %vm1122_vm4, %v1125_v12, %v1127_v13  ;;  %v1140_v41 = vand.u32 65535, %v2396_v62  ;;  %v2441_v44 = vshll.u32 %v942_v17, 8 }
  0xbf   : > { %v956_v42 = vor.u32 %v955_v28, %v954_v26  ;;  %v1162_v45 = vand.u32 65535, %v1132_v19  ;;  %v959_v46 = vor.u32 %v958_v33, %v957_v29  ;;  %v962_v47 = vor.u32 %v961_v35, %v960_v32 }
  0xc0   : > { %v573_v23 = vpop.permute.xlu1 %572  ;;  %v965_v49 = vor.u32 %v964_v38, %v963_v36  ;;  %v1163_v51 = vshrl.u32 %v1132_v19, 16  ;;  %vm966_vm6 = vcmp.lt.s32.totalorder %v2426_v21, 1  ;;  %vm969_vm7 = vcmp.lt.s32.totalorder %v2426_v21, 4 }
  0xc1   : > { %v2445_v52 = vadd.f32 %v608_v50, %v593_v22  ;;  %v1146_v24 = vshll.u32 %v2424_v20, 16  ;;  %vm968_vm8 = vcmp.lt.s32.totalorder %v2426_v21, 3  ;;  %v978_v56 = vsel %vm966_vm6, %v956_v42, %v959_v46 }
  0xc2   : > { %v979_v57 = vsel %vm969_vm7, %v965_v49, 1326507024  ;;  %v1142_v59 = vmul.u32 %v1140_v41, %v1138_v9  ;;  %vm967_vm9 = vcmp.lt.s32.totalorder %v2426_v21, 2  ;;  %v2458_v62 = vmul.u32 %v1140_v41, %v2416_v10 }
  0xc3   : > { %v980_v60 = vsel %vm968_vm8, %v962_v47, %v979_v57  ;;  %v782_v61 = vand.u32 2139095040, %v2445_v52  ;;  %v952_v0 = vshrl.u32 %v2100_v25, %v949_v18  ;;  %v588_v3 = vmul.f32 %v2346_v53, %v573_v23 }
  0xc4   : > { %v2463_v2 = vsel %vm967_vm9, %v978_v56, %v980_v60  ;;  %v2466_v40 = vmul.u32 %v1163_v51, %v1138_v9  ;;  %v1182_v54 = vmul.u32 %v2400_v1, %v2438_v39  ;;  %vm1150_vm10 = vc.u32 %v1142_v59, %v1146_v24 }
  0xc5   : > { %v951_v31 = vshll.u32 %v2105_v55, %v948_v48  ;;  %v783_v5 = vshrl.u32 %v782_v61, 23  ;;  %v592_v7 = vadd.f32 %v588_v3, %v2359_v14  ;;  %v1152_v8 = vadd.s32 %v1146_v24, %v1142_v59 }
  0xc6   : > { %v2473_v11 = vand.u32 65535, %v2441_v44  ;;  %v2476_v12 = vshrl.u32 %v2441_v44, 16  ;;  %v986_v53 = vshrl.u32 %v2463_v2, 16  ;;  %v1145_v13 = vmul.u32 %v1141_v43, %v2416_v10 }
  0xc7   : > { %v1148_v17 = vshll.u32 %v2458_v62, 16  ;;  %v1164_v19 = vmul.u32 %v1162_v45, %v1138_v9  ;;  %v953_v22 = vor.u32 %v952_v0, %v951_v31  ;;  %v1151_v48 = vsel %vm1150_vm10, 1, %v2097_v4 }
  0xc8   : > { %v1886_v23 = vadd.s32 4294967169, %v783_v5  ;;  %v1168_v14 = vshll.u32 %v2466_v40, 16  ;;  %v2486_v28 = vmul.u32 %v1162_v45, %v2416_v10  ;;  %v1167_v29 = vmul.u32 %v1163_v51, %v2416_v10 }
  0xc9   : > { %v603_v6 = vpop.permute.xlu1 %602  ;;  %v950_v32 = vshrl.u32 %v2105_v55, %v949_v18  ;;  %v975_v43 = vsel %vm969_vm7, %v962_v47, 920167782  ;;  %v971_v9 = vsel %vm969_vm7, %v959_v46, 2102212464  ;;  %v2495_v33 = vmul.u32 %v986_v53, %v2473_v11 }
  0xca   : > { %v2482_v26 = vadd.f32 %v603_v6, %v592_v7  ;;  %v789_v35 = vadd.s32 1, %v1886_v23  ;;  %vm1154_vm11 = vc.u32 %v1152_v8, %v1148_v17  ;;  %v1153_v36 = vadd.s32 %v1151_v48, %v1145_v13 }
  0xcb   : > { %v970_v38 = vsel %vm966_vm6, %v950_v32, %v953_v22  ;;  %v974_v10 = vsel %vm966_vm6, %v953_v22, %v956_v42  ;;  %v976_v41 = vsel %vm968_vm8, %v959_v46, %v975_v43  ;;  %v985_v45 = vand.u32 65535, %v2463_v2 }
  0xcc   : > { %v627_v18 = vand.u32 2139095040, %v2482_v26  ;;  %vm790_vm12 = vcmp.gt.s32.totalorder %v789_v35, 0  ;;  %vm1172_vm13 = vc.u32 %v1164_v19, %v1168_v14  ;;  %v972_v47 = vsel %vm968_vm8, %v956_v42, %v971_v9 }
  0xcd   : > { %v1155_v50 = vsel %vm1154_vm11, 1, %v2097_v4  ;;  %v1173_v51 = vsel %vm1172_vm13, 1, %v2097_v4  ;;  %v991_v24 = vshll.u32 %v2495_v33, 16  ;;  %v791_v56 = vsel %vm790_vm12, %v789_v35, 0 }
  0xce   : > { %v628_v49 = vshrl.u32 %v627_v18, 23  ;;  %v1147_v57 = vshrl.u32 %v2424_v20, 16  ;;  %v1174_v59 = vadd.s32 %v1168_v14, %v1164_v19  ;;  %v977_v46 = vsel %vm967_vm9, %v974_v10, %v976_v41 }
  0xcf   : > { %v1170_v61 = vshll.u32 %v2486_v28, 16  ;;  %v1175_v0 = vadd.s32 %v1173_v51, %v1167_v29  ;;  %v2516_v42 = vsel %vm967_vm9, %v970_v38, %v972_v47  ;;  %v987_v2 = vmul.u32 %v985_v45, %v2473_v11 }
  0xd0   : > { %v1883_v60 = vadd.s32 4294967169, %v628_v49  ;;  %v1149_v3 = vshrl.u32 %v2458_v62, 16  ;;  %v1157_v31 = vadd.s32 %v1155_v50, %v1153_v36  ;;  %v2520_v5 = vand.u32 31, %v791_v56 }
  0xd1   : > { %v624_v20 = vand.u32 2147483647, %v2482_v26  ;;  %vm1176_vm14 = vc.u32 %v1174_v59, %v1170_v61  ;;  %vm995_vm15 = vc.u32 %v987_v2, %v991_v24  ;;  %v1007_v7 = vand.u32 65535, %v977_v46 }
  0xd2   : > { %v634_v6 = vadd.s32 1, %v1883_v60  ;;  %v1008_v8 = vshrl.u32 %v977_v46, 16  ;;  %v1177_v13 = vsel %vm1176_vm14, 1, %v2097_v4  ;;  %v2525_v21 = vmul.u32 %v985_v45, %v2476_v12 }
  0xd3   : > { %v1027_v17 = vmul.u32 %v2441_v44, %v2516_v42  ;;  %v1179_v62 = vadd.s32 %v1177_v13, %v1175_v0  ;;  %v990_v19 = vmul.u32 %v986_v53, %v2476_v12  ;;  %v1158_v48 = vadd.s32 %v1157_v31, %v1147_v57 }
  0xd4   : > { %vm635_vm0 = vcmp.gt.s32.totalorder %v634_v6, 0  ;;  %v1169_v23 = vshrl.u32 %v2466_v40, 16  ;;  %v996_v14 = vsel %vm995_vm15, 1, %v2097_v4  ;;  %v2533_v29 = vsub.s32 32, %v2520_v5 }
  0xd5   : > { %v636_v22 = vsel %vm635_vm0, %v634_v6, 0  ;;  %v631_v32 = vand.u32 8388607, %v624_v20  ;;  %v2538_v9 = vmul.u32 %v1007_v7, %v2473_v11  ;;  %v2541_v35 = vmul.u32 %v1008_v8, %v2473_v11 }
  0xd6   : > { %v638_v43 = vand.u32 31, %v636_v22  ;;  %v2544_v53 = vmul.u32 %v1007_v7, %v2476_v12  ;;  %v2547_v40 = vmul.u32 %v1008_v8, %v2476_v12  ;;  %v993_v36 = vshll.u32 %v2525_v21, 16 }
  0xd7   : > { %v997_v38 = vadd.s32 %v991_v24, %v987_v2  ;;  %v1180_v18 = vadd.s32 %v1179_v62, %v1169_v23  ;;  %v998_v41 = vadd.s32 %v996_v14, %v990_v19  ;;  %v2552_v45 = vshrl.u32 %v791_v56, 5 }
  0xd8   : > { %v2550_v10 = vsub.s32 32, %v638_v43  ;;  %v1159_v47 = vadd.s32 %v1158_v48, %v1149_v3  ;;  %v1171_v49 = vshrl.u32 %v2486_v28, 16  ;;  %v806_v11 = vshrl.u32 %v2103_v34, %v2533_v29 }
  0xd9   : > { %v632_v50 = vor.u32 8388608, %v631_v32  ;;  %v2557_v51 = vshrl.u32 %v636_v22, 5  ;;  %v1178_v12 = vadd.s32 %v1174_v59, %v1170_v61  ;;  %v650_v57 = vshll.u32 %v2102_v30, %v638_v43 }
  0xda   : > { %v651_v24 = vshrl.u32 %v2103_v34, %v2550_v10  ;;  %v653_v46 = vshll.u32 %v2103_v34, %v638_v43  ;;  %v654_v56 = vshrl.u32 %v2104_v37, %v2550_v10  ;;  %v645_v28 = vshrl.u32 %v2101_v27, %v2550_v10 }
  0xdb   : > { %v648_v60 = vshrl.u32 %v2102_v30, %v2550_v10  ;;  %v1181_v0 = vadd.s32 %v1180_v18, %v1171_v49  ;;  %vm999_vm1 = vc.u32 %v997_v38, %v993_v36  ;;  %v809_v59 = vshrl.u32 %v2104_v37, %v2533_v29 }
  0xdc   : > { %v652_v61 = vor.u32 %v651_v24, %v650_v57  ;;  %v655_v2 = vor.u32 %v654_v56, %v653_v46  ;;  %vm1184_vm2 = vc.u32 %v1159_v47, %v1178_v12  ;;  %v642_v3 = vshrl.u32 %v2100_v25, %v2550_v10 }
  0xdd   : > { %v644_v31 = vshll.u32 %v2100_v25, %v638_v43  ;;  %v647_v6 = vshll.u32 %v2101_v27, %v638_v43  ;;  %vm659_vm3 = vcmp.lt.s32.totalorder %v2557_v51, 4  ;;  %vm658_vm4 = vcmp.lt.s32.totalorder %v2557_v51, 3 }
  0xde   : > { %v669_v7 = vsel %vm659_vm3, %v655_v2, 1326507024  ;;  %v1185_v8 = vadd.s32 1, %v1181_v0  ;;  %v1000_v37 = vsel %vm999_vm1, 1, %v2097_v4  ;;  %v641_v13 = vshll.u32 %v2105_v55, %v638_v43 }
  0xdf   : > { %v2581_v62 = vor.u32 %v645_v28, %v644_v31  ;;  %v649_v19 = vor.u32 %v648_v60, %v647_v6  ;;  %v670_v22 = vsel %vm658_vm4, %v652_v61, %v669_v7  ;;  %v805_v48 = vshll.u32 %v2102_v30, %v2520_v5 }
  0xe0   : > { %v2587_v23 = vshll.u32 %v632_v50, 8  ;;  %v1186_v14 = vsel %vm1184_vm2, %v1185_v8, %v1181_v0  ;;  %v992_v32 = vshrl.u32 %v2495_v33, 16  ;;  %v808_v36 = vshll.u32 %v2103_v34, %v2520_v5 }
  0xe1   : > { %vm814_vm5 = vcmp.lt.s32.totalorder %v2552_v45, 4  ;;  %v643_v43 = vor.u32 %v642_v3, %v641_v13  ;;  %v1002_v38 = vadd.s32 %v1000_v37, %v998_v41  ;;  %vm656_vm6 = vcmp.lt.s32.totalorder %v2557_v51, 1 }
  0xe2   : > { %v665_v18 = vsel %vm659_vm3, %v652_v61, 920167782  ;;  %v1187_v49 = vadd.s32 %v1186_v14, %v1182_v54  ;;  %v1013_v50 = vshll.u32 %v2541_v35, 16  ;;  %v2600_v57 = vor.u32 %v806_v11, %v805_v48 }
  0xe3   : > { %v810_v33 = vor.u32 %v809_v59, %v808_v36  ;;  %v668_v34 = vsel %vm656_vm6, %v2581_v62, %v649_v19  ;;  %v994_v41 = vshrl.u32 %v2525_v21, 16  ;;  %vm657_vm7 = vcmp.lt.s32.totalorder %v2557_v51, 2 }
  0xe4   : > { %v2608_v24 = vand.u32 65535, %v2587_v23  ;;  %v2611_v46 = vshrl.u32 %v2587_v23, 16  ;;  %v2613_v1 = vadd.s32 %v1178_v12, %v1159_v47  ;;  %v664_v39 = vsel %vm656_vm6, %v643_v43, %v2581_v62 }
  0xe5   : > { %v666_v54 = vsel %vm658_vm4, %v649_v19, %v665_v18  ;;  %v1188_v11 = vadd.s32 536870912, %v1187_v49  ;;  %v1003_v56 = vadd.s32 %v1002_v38, %v992_v32  ;;  %v671_v21 = vsel %vm657_vm7, %v668_v34, %v670_v22 }
  0xe6   : > { %v1015_v28 = vshll.u32 %v2544_v53, 16  ;;  %vm1017_vm8 = vc.u32 %v2538_v9, %v1013_v50  ;;  %v1019_v60 = vadd.s32 %v1013_v50, %v2538_v9  ;;  %v820_v47 = vsel %vm814_vm5, %v2600_v57, 920167782 }
  0xe7   : > { %v2630_v12 = vsel %vm814_vm5, %v810_v33, 1326507024  ;;  %v2632_v0 = vshrl.u32 %v1188_v11, 30  ;;  %v1018_v59 = vsel %vm1017_vm8, 1, %v2097_v4  ;;  %v640_v61 = vshrl.u32 %v2105_v55, %v2550_v10 }
  0xe8   : > { %v2639_v2 = vsel %vm657_vm7, %v664_v39, %v666_v54  ;;  %v1020_v9 = vadd.s32 %v1018_v59, %v2547_v40  ;;  %vm1021_vm9 = vc.u32 %v1019_v60, %v1015_v28  ;;  %v676_v3 = vshrl.u32 %v671_v21, 16 }
  0xe9   : > { %v1190_v31 = vshll.u32 %v2632_v0, 30  ;;  %v2643_v6 = vadd.s32 %v1003_v56, %v994_v41  ;;  %v1022_v7 = vsel %vm1021_vm9, 1, %v2097_v4  ;;  %v2648_v8 = vsel %vm656_vm6, %v640_v61, %v643_v43 }
  0xea   : > { %v1014_v10 = vshrl.u32 %v2541_v35, 16  ;;  %v1024_v37 = vadd.s32 %v1022_v7, %v1020_v9  ;;  %v779_v13 = vand.u32 2147483647, %v2445_v52  ;;  %v2654_v40 = vsel %vm659_vm3, %v649_v19, 2102212464 }
  0xeb   : > { %v675_v22 = vand.u32 65535, %v671_v21  ;;  %v1191_v48 = vsub.s32 %v1187_v49, %v1190_v31  ;;  %v2656_v14 = vadd.s32 %v1019_v60, %v1015_v28  ;;  %v697_v32 = vand.u32 65535, %v2639_v2 }
  0xec   : > { %v698_v36 = vshrl.u32 %v2639_v2, 16  ;;  %v1016_v43 = vshrl.u32 %v2544_v53, 16  ;;  %v1025_v38 = vadd.s32 %v1024_v37, %v1014_v10  ;;  %v2662_v35 = vmul.u32 %v676_v3, %v2608_v24 }
  0xed   : > { %vm1192_vm10 = vcmp.lt.s32.totalorder %v1191_v48, 0  ;;  %v1193_v18 = vsub.s32 0, %v1191_v48  ;;  %vm1029_vm11 = vc.u32 %v2643_v6, %v2656_v14  ;;  %v786_v49 = vand.u32 8388607, %v779_v13 }
  0xee   : > { %v1026_v19 = vadd.s32 %v1025_v38, %v1016_v43  ;;  %v796_v50 = vshll.u32 %v2105_v55, %v2520_v5  ;;  %v797_v33 = vshrl.u32 %v2100_v25, %v2533_v29  ;;  %v799_v34 = vshll.u32 %v2100_v25, %v2520_v5 }
  0xef   : > { %v1194_v53 = vsel %vm1192_vm10, %v1193_v18, %v1191_v48  ;;  %v800_v41 = vshrl.u32 %v2101_v27, %v2533_v29  ;;  %v802_v39 = vshll.u32 %v2101_v27, %v2520_v5  ;;  %vm1091_vm12 = vcmp.lt.s32.totalorder %v2353_v63, 0 }
  0xf0   : > { %v1195_v54 = vclz %v1194_v53  ;;  %v1030_v11 = vadd.s32 1, %v1026_v19  ;;  %v2679_v56 = vor.u32 %v797_v33, %v796_v50  ;;  %v803_v21 = vshrl.u32 %v2102_v30, %v2533_v29 }
  0xf1   : > { %v2684_v28 = vmul.u32 %v675_v22, %v2608_v24  ;;  %v2687_v25 = vmul.u32 %v675_v22, %v2611_v46  ;;  %v2690_v60 = vmul.u32 %v676_v3, %v2611_v46  ;;  %v2692_v59 = vor.u32 %v800_v41, %v799_v34 }
  0xf2   : > { %v2695_v27 = vmul.u32 %v697_v32, %v2608_v24  ;;  %v1893_v5 = vadd.s32 4294967294, %v1195_v54  ;;  %v1031_v61 = vsel %vm1029_vm11, %v1030_v11, %v1026_v19  ;;  %v2700_v30 = vor.u32 %v803_v21, %v802_v39 }
  0xf3   : > { %v1032_v2 = vadd.s32 %v1031_v61, %v1027_v17  ;;  %v787_v9 = vor.u32 8388608, %v786_v49  ;;  %vm811_vm13 = vcmp.lt.s32.totalorder %v2552_v45, 1  ;;  %vm813_vm14 = vcmp.lt.s32.totalorder %v2552_v45, 3 }
  0xf4   : > { %v681_v3 = vshll.u32 %v2662_v35, 16  ;;  %vm2710_vm15 = vcmp.le.f32.partialorder %v1089_v16, 0.7853982  ;;  %vm1894_vm0 = vcmp.lt.s32.totalorder %v1893_v5, 0  ;;  %v819_v44 = vsel %vm811_vm13, %v2679_v56, %v2692_v59 }
  0xf5   : > { %v821_v42 = vsel %vm813_vm14, %v2700_v30, %v820_v47  ;;  %v1198_v17 = vsel %vm1894_vm0, 0, %v1893_v5  ;;  %v1213_v7 = vsub.s32 4, %v2632_v0  ;;  %v1033_v10 = vadd.s32 536870912, %v1032_v2 }
  0xf6   : > { %vm812_vm1 = vcmp.lt.s32.totalorder %v2552_v45, 2  ;;  %v2724_v16 = vmul.u32 %v698_v36, %v2608_v24  ;;  %v1199_v37 = vsub.s32 32, %v1198_v17  ;;  %v1203_v22 = vsub.s32 4294967266, %v1198_v17 }
  0xf7   : > { %v2728_v43 = vsel %vm812_vm1, %v819_v44, %v821_v42  ;;  %v2730_v38 = vshrl.u32 %v1033_v10, 30  ;;  %v823_v47 = vsel %vm811_vm13, %v2692_v59, %v2700_v30  ;;  %v825_v18 = vsel %vm813_vm14, %v2600_v57, %v2630_v12 }
  0xf8   : > { %v2740_v24 = vshll.u32 %v787_v9, 8  ;;  %v1200_v19 = vshll.u32 %v1191_v48, %v1198_v17  ;;  %v1201_v49 = vshrl.u32 %v2613_v1, %v1199_v37  ;;  %v1204_v50 = vadd.s32 127, %v1203_v22 }
  0xf9   : > { %v826_v33 = vsel %vm812_vm1, %v823_v47, %v825_v18  ;;  %vm685_vm2 = vc.u32 %v2684_v28, %v681_v3  ;;  %v2749_v53 = vmul.u32 %v697_v32, %v2611_v46  ;;  %v1214_v57 = vsel %vm1091_vm12, %v1213_v7, %v2632_v0 }
  0xfa   : > { %v1035_v12 = vshll.u32 %v2730_v38, 30  ;;  %v1202_v48 = vor.u32 %v1201_v49, %v1200_v19  ;;  %v1205_v34 = vshll.u32 %v1204_v50, 23  ;;  %v830_v1 = vand.u32 65535, %v826_v33 }
  0xfb   : > { %v831_v41 = vshrl.u32 %v826_v33, 16  ;;  %v2756_v39 = vmul.u32 %v698_v36, %v2611_v46  ;;  %v828_v11 = vand.u32 65535, %v2740_v24  ;;  %v853_v32 = vshrl.u32 %v2728_v43, 16 }
  0xfc   : > { %v2758_v54 = vsub.s32 %v1032_v2, %v1035_v12  ;;  %v683_v21 = vshll.u32 %v2687_v25, 16  ;;  %v2764_v5 = vsel %vm685_vm2, 1, %v2097_v4  ;;  %v1206_v0 = vor.u32 4788187, %v1205_v34 }
  0xfd   : > { %v829_v61 = vshrl.u32 %v2740_v24, 16  ;;  %v1216_v9 = vsel %vm2710_vm15, 0, %v1214_v57  ;;  %v833_v36 = vmul.u32 %v831_v41, %v828_v11  ;;  %v1209_v44 = vcvt.s32.f32 %v1202_v48 }
  0xfe   : > { %vm1037_vm3 = vcmp.lt.s32.totalorder %v2758_v54, 0  ;;  %v1038_v46 = vsub.s32 0, %v2758_v54  ;;  %v1207_v2 = vand.u32 2147483647, %v1206_v0  ;;  %v852_v17 = vand.u32 65535, %v2728_v43 }
  0xff   : > { %v834_v42 = vmul.u32 %v830_v1, %v829_v61  ;;  %v832_v10 = vmul.u32 %v830_v1, %v828_v11  ;;  %v836_v37 = vshll.u32 %v833_v36, 16  ;;  %v2773_v22 = vmul.u32 %v853_v32, %v828_v11 }
 0x100   : > { %v1039_v7 = vsel %vm1037_vm3, %v1038_v46, %v2758_v54  ;;  %v1210_v47 = vmul.f32 %v1209_v44, %v1207_v2  ;;  %v1028_v18 = vadd.s32 %v2656_v14, %v2643_v6  ;;  %v795_v49 = vshrl.u32 %v2105_v55, %v2533_v29 }
 0x101   : > { %v1040_v19 = vclz %v1039_v7  ;;  %v1233_v50 = vadd.s32 3, %v1216_v9  ;;  %v835_v33 = vmul.u32 %v831_v41, %v829_v61  ;;  %v838_v57 = vshll.u32 %v834_v42, 16 }
 0x102   : > { %vm840_vm6 = vc.u32 %v832_v10, %v836_v37  ;;  %v1211_v12 = vxor.u32 2147483648, %v1210_v47  ;;  %v842_v34 = vadd.s32 %v836_v37, %v832_v10  ;;  %v816_v1 = vsel %vm814_vm5, %v2700_v30, 2102212464 }
 0x103   : > { %v1890_v43 = vadd.s32 4294967294, %v1040_v19  ;;  %v841_v48 = vsel %vm840_vm6, 1, %v2097_v4  ;;  %v856_v46 = vmul.u32 %v852_v17, %v829_v61  ;;  %v858_v6 = vshll.u32 %v2773_v22, 16 }
 0x104   : > { %v843_v0 = vadd.s32 %v841_v48, %v835_v33  ;;  %v1212_v55 = vsel %vm1091_vm12, %v1211_v12, %v1210_v47  ;;  %vm844_vm9 = vc.u32 %v842_v34, %v838_v57  ;;  %v854_v29 = vmul.u32 %v852_v17, %v828_v11 }
 0x105   : > { %vm1891_vm8 = vcmp.lt.s32.totalorder %v1890_v43, 0  ;;  %v2789_v14 = vsel %vm2710_vm15, %v2353_v63, %v1212_v55  ;;  %v837_v9 = vshrl.u32 %v833_v36, 16  ;;  %v845_v2 = vsel %vm844_vm9, 1, %v2097_v4 }
 0x106   : > { %v1043_v41 = vsel %vm1891_vm8, 0, %v1890_v43  ;;  %v1217_v30 = vmul.f32 %v2789_v14, %v2789_v14  ;;  %v860_v10 = vshll.u32 %v856_v46, 16  ;;  %v847_v47 = vadd.s32 %v845_v2, %v843_v0 }
 0x107   : > { %v1044_v44 = vsub.s32 32, %v1043_v41  ;;  %v1048_v7 = vsub.s32 4294967266, %v1043_v41  ;;  %v1045_v37 = vshll.u32 %v2758_v54, %v1043_v41  ;;  %vm862_vm5 = vc.u32 %v854_v29, %v858_v6 }
 0x108   : > { %v864_v11 = vadd.s32 %v858_v6, %v854_v29  ;;  %vm936_vm10 = vcmp.lt.s32.totalorder %v2361_v15, 0  ;;  %v1218_v31 = vmul.f32 -0.001358992, %v1217_v30  ;;  %v1225_v17 = vmul.f32 -0.00019511016, %v1217_v30 }
 0x109   : > { %v1046_v19 = vshrl.u32 %v1028_v18, %v1044_v44  ;;  %v1049_v33 = vadd.s32 127, %v1048_v7  ;;  %v848_v36 = vadd.s32 %v847_v47, %v837_v9  ;;  %v857_v57 = vmul.u32 %v853_v32, %v829_v61 }
 0x10a   : > { %v863_v12 = vsel %vm862_vm5, 1, %v2097_v4  ;;  %vm866_vm11 = vc.u32 %v864_v11, %v860_v10  ;;  %v1219_v43 = vadd.f32 0.041655596, %v1218_v31  ;;  %v1226_v48 = vadd.f32 0.008332121, %v1225_v17 }
 0x10b   : > { %v1047_v34 = vor.u32 %v1046_v19, %v1045_v37  ;;  %v1050_v55 = vshll.u32 %v1049_v33, 23  ;;  %v815_v54 = vsel %vm811_vm13, %v795_v49, %v2679_v56  ;;  %v839_v0 = vshrl.u32 %v834_v42, 16 }
 0x10c   : > { %v865_v6 = vadd.s32 %v863_v12, %v857_v57  ;;  %v867_v29 = vsel %vm866_vm11, 1, %v2097_v4  ;;  %v1220_v41 = vmul.f32 %v1219_v43, %v1217_v30  ;;  %v1227_v18 = vmul.f32 %v1226_v48, %v1217_v30 }
 0x10d   : > { %vm2803_vm12 = vcmp.le.f32.partialorder %v934_v58, 0.7853982  ;;  %v1051_v61 = vor.u32 4788187, %v1050_v55  ;;  %v817_v9 = vsel %vm813_vm14, %v2692_v59, %v816_v1  ;;  %v1058_v2 = vsub.s32 4, %v2730_v38 }
 0x10e   : > { %v2811_v56 = vadd.s32 %v848_v36, %v839_v0  ;;  %v859_v42 = vshrl.u32 %v2773_v22, 16  ;;  %v869_v49 = vadd.s32 %v867_v29, %v865_v6  ;;  %v1221_v44 = vadd.f32 -0.4999988, %v1220_v41 }
 0x10f   : > { %v1228_v7 = vadd.f32 -0.16666654, %v1227_v18  ;;  %v1052_v37 = vand.u32 2147483647, %v1051_v61  ;;  %v1054_v47 = vcvt.s32.f32 %v1047_v34  ;;  %v687_v58 = vadd.s32 %v681_v3, %v2684_v28 }
 0x110   : > { %v1234_v31 = vand.u32 3, %v1233_v50  ;;  %v861_v17 = vshrl.u32 %v856_v46, 16  ;;  %v870_v19 = vadd.s32 %v869_v49, %v859_v42  ;;  %v1222_v33 = vmul.f32 %v1221_v44, %v1217_v30 }
 0x111   : > { %v1229_v59 = vmul.f32 %v1228_v7, %v1217_v30  ;;  %v1055_v1 = vmul.f32 %v1054_v47, %v1052_v37  ;;  %v2817_v57 = vadd.s32 %v864_v11, %v860_v10  ;;  %v688_v22 = vadd.s32 %v2764_v5, %v2690_v60 }
 0x112   : > { %vm1232_vm13 = vweird.f32 %v2353_v63  ;;  %v1059_v36 = vsel %vm936_vm10, %v1058_v2, %v2730_v38  ;;  %v818_v28 = vsel %vm812_vm1, %v815_v54, %v817_v9  ;;  %v871_v3 = vadd.s32 %v870_v19, %v861_v17 }
 0x113   : > { %v1223_v50 = vadd.f32 1.0, %v1222_v33  ;;  %v1230_v46 = vadd.f32 1.0, %v1229_v59  ;;  %v1056_v12 = vxor.u32 2147483648, %v1055_v1  ;;  %vm874_vm14 = vc.u32 %v2811_v56, %v2817_v57 }
 0x114   : > { %vm1235_vm15 = vcmp.lt.s32.totalorder %v1234_v31, 2  ;;  %vm1236_vm0 = vcmp.eq.s32.totalorder %v1234_v31, 0  ;;  %v875_v30 = vadd.s32 1, %v871_v3  ;;  %v703_v60 = vshll.u32 %v2724_v16, 16 }
 0x115   : > { %v1231_v5 = vmul.f32 %v1230_v46, %v2789_v14  ;;  %v1240_v10 = vxor.u32 2147483648, %v1223_v50  ;;  %v1057_v38 = vsel %vm936_vm10, %v1056_v12, %v1055_v1  ;;  %v872_v45 = vmul.u32 %v2740_v24, %v818_v28 }
 0x116   : > { %vm1239_vm1 = vcmp.eq.s32.totalorder %v1234_v31, 2  ;;  %v1060_v11 = vsel %vm2803_vm12, %v2361_v15, %v1057_v38  ;;  %v1061_v43 = vsel %vm2803_vm12, 0, %v1059_v36  ;;  %v876_v48 = vsel %vm874_vm14, %v875_v30, %v871_v3 }
 0x117   : > { %v1237_v34 = vxor.u32 2147483648, %v1231_v5  ;;  %v1062_v55 = vmul.f32 %v1060_v11, %v1060_v11  ;;  %v877_v54 = vadd.s32 %v876_v48, %v872_v45  ;;  %v705_v14 = vshll.u32 %v2749_v53, 16 }
 0x118   : > { %v1241_v0 = vsel %vm1239_vm1, %v1240_v10, %v1231_v5  ;;  %vm689_vm2 = vc.u32 %v687_v58, %v683_v21  ;;  %vm707_vm3 = vc.u32 %v2695_v27, %v703_v60  ;;  %v709_v24 = vadd.s32 %v703_v60, %v2695_v27 }
 0x119   : > { %v1238_v6 = vsel %vm1236_vm0, %v1223_v50, %v1237_v34  ;;  %v1063_v29 = vmul.f32 -0.001358992, %v1062_v55  ;;  %v1070_v41 = vmul.f32 -0.00019511016, %v1062_v55  ;;  %v878_v18 = vadd.s32 536870912, %v877_v54 }
 0x11a   : > { %v1242_v32 = vsel %vm1235_vm15, %v1238_v6, %v1241_v0  ;;  %v690_v61 = vsel %vm689_vm2, 1, %v2097_v4  ;;  %v708_v9 = vsel %vm707_vm3, 1, %v2097_v4  ;;  %vm711_vm6 = vc.u32 %v709_v24, %v705_v14 }
 0x11b   : > { %v2850_v2 = vsel %vm1232_vm13, nan, %v1242_v32  ;;  %v1064_v21 = vadd.f32 0.041655596, %v1063_v29  ;;  %v1071_v42 = vadd.f32 0.008332121, %v1070_v41  ;;  %v2852_v49 = vshrl.u32 %v878_v18, 30 }
 0x11c   : > { %1305 = vmatpush.msra.mxu0 %v2850_v2  ;;  %1918 = vmatpush.msra.mxu2 %v2850_v2  ;;  %v682_v27 = vshrl.u32 %v2662_v35, 16  ;;  %v692_v44 = vadd.s32 %v690_v61, %v688_v22  ;;  %v710_v7 = vadd.s32 %v708_v9, %v2756_v39  ;;  %v712_v37 = vsel %vm711_vm6, 1, %v2097_v4 }
 0x11d   : > { %v662_v63 = vsel %vm658_vm4, %v2581_v62, %v2654_v40  ;;  %1919 = vmatpush.msra.mxu3 %v2850_v2  ;;  %v1065_v47 = vmul.f32 %v1064_v21, %v1062_v55  ;;  %v1072_v58 = vmul.f32 %v1071_v42, %v1062_v55  ;;  %v880_v31 = vshll.u32 %v2852_v49, 30 }
 0x11e   : > { %v684_v17 = vshrl.u32 %v2687_v25, 16  ;;  %v693_v19 = vadd.s32 %v692_v44, %v682_v27  ;;  %v704_v35 = vshrl.u32 %v2724_v16, 16  ;;  %v714_v33 = vadd.s32 %v712_v37, %v710_v7 }
 0x11f   : > { %v1066_v39 = vadd.f32 -0.4999988, %v1065_v47  ;;  %v1073_v59 = vadd.f32 -0.16666654, %v1072_v58  ;;  %v1078_v4 = vadd.s32 3, %v1061_v43  ;;  %v881_v1 = vsub.s32 %v877_v54, %v880_v31 }
 0x120   : > { %v694_v22 = vadd.s32 %v693_v19, %v684_v17  ;;  %v706_v36 = vshrl.u32 %v2749_v53, 16  ;;  %v713_v62 = vadd.s32 %v709_v24, %v705_v14  ;;  %v715_v40 = vadd.s32 %v714_v33, %v704_v35 }
 0x121   : > { %v1067_v28 = vmul.f32 %v1066_v39, %v1062_v55  ;;  %v1074_v3 = vmul.f32 %v1073_v59, %v1062_v55  ;;  %vm882_vm4 = vcmp.lt.s32.totalorder %v881_v1, 0  ;;  %v883_v50 = vsub.s32 0, %v881_v1 }
 0x122   : > { %v716_v46 = vadd.s32 %v715_v40, %v706_v36  ;;  %v2868_v12 = vadd.s32 %v713_v62, %v694_v22  ;;  %vm719_vm8 = vc.u32 %v694_v22, %v713_v62  ;;  %v663_v25 = vsel %vm657_vm7, %v2648_v8, %v662_v63 }
 0x123   : > { %v1068_v16 = vadd.f32 1.0, %v1067_v28  ;;  %v1075_v30 = vadd.f32 1.0, %v1074_v3  ;;  %v884_v60 = vsel %vm882_vm4, %v883_v50, %v881_v1  ;;  %v1079_v5 = vand.u32 3, %v1078_v4 }
 0x124   : > { %v885_v10 = vclz %v884_v60  ;;  %v720_v53 = vadd.s32 1, %v716_v46  ;;  %v717_v43 = vmul.u32 %v2587_v23, %v663_v25  ;;  %vm1077_vm9 = vweird.f32 %v2361_v15 }
 0x125   : > { %v1076_v38 = vmul.f32 %v1075_v30, %v1060_v11  ;;  %v1085_v45 = vxor.u32 2147483648, %v1068_v16  ;;  %vm1081_vm5 = vcmp.eq.s32.totalorder %v1079_v5, 0  ;;  %vm1084_vm10 = vcmp.eq.s32.totalorder %v1079_v5, 2 }
 0x126   : > { %v1887_v48 = vadd.s32 4294967294, %v885_v10  ;;  %v721_v55 = vsel %vm719_vm8, %v720_v53, %v716_v46  ;;  %vm1080_vm7 = vcmp.lt.s32.totalorder %v1079_v5, 2  ;;  %v873_v11 = vadd.s32 %v2817_v57, %v2811_v56 }
 0x127   : > { %v1082_v34 = vxor.u32 2147483648, %v1076_v38  ;;  %v722_v51 = vadd.s32 %v721_v55, %v717_v43  ;;  %v1086_v54 = vsel %vm1084_vm10, %v1085_v45, %v1076_v38  ;;  %vm781_vm13 = vcmp.lt.s32.totalorder %v2445_v52, 0 }
 0x128   : > { %vm1888_vm11 = vcmp.lt.s32.totalorder %v1887_v48, 0  ;;  %vm2888_vm14 = vcmp.le.f32.partialorder %v779_v13, 0.7853982  ;;  %v903_v19 = vsub.s32 4, %v2852_v49  ;;  %vm626_vm0 = vcmp.lt.s32.totalorder %v2482_v26, 0 }
 0x129   : > { %v1083_v8 = vsel %vm1081_vm5, %v1068_v16, %v1082_v34  ;;  %v888_v14 = vsel %vm1888_vm11, 0, %v1887_v48  ;;  %v723_v29 = vadd.s32 536870912, %v722_v51  ;;  %vm2904_vm3 = vcmp.le.f32.partialorder %v624_v20, 0.7853982 }
 0x12a   : > { %v1087_v0 = vsel %vm1080_vm7, %v1083_v8, %v1086_v54  ;;  %v889_v24 = vsub.s32 32, %v888_v14  ;;  %v893_v6 = vsub.s32 4294967266, %v888_v14  ;;  %v890_v15 = vshll.u32 %v881_v1, %v888_v14 }
 0x12b   : > { %v2877_v23 = vsel %vm1077_vm9, nan, %v1087_v0  ;;  %v2882_v32 = vshrl.u32 %v723_v29, 30  ;;  %v904_v22 = vsel %vm781_vm13, %v903_v19, %v2852_v49  ;;  %vm922_vm4 = vweird.f32 %v2445_v52 }
 0x12c   : > { %1306 = vmatpush.msra.mxu0 %v2877_v23  ;;  %1920 = vmatpush.msra.mxu2 %v2877_v23  ;;  %v891_v41 = vshrl.u32 %v873_v11, %v889_v24  ;;  %v894_v18 = vadd.s32 127, %v893_v6  ;;  %v906_v50 = vsel %vm2888_vm14, 0, %v904_v22  ;;  %vm767_vm10 = vweird.f32 %v2482_v26  ;;  %v1245_v22 = vld [vmem:[%s3065_s3 + $0x8] sm:$0xff] }
 0x12d   : > { %1921 = vmatpush.msra.mxu3 %v2877_v23  ;;  %v725_v56 = vshll.u32 %v2882_v32, 30  ;;  %v923_v10 = vadd.s32 3, %v906_v50  ;;  %v748_v0 = vsub.s32 4, %v2882_v32  ;;  %vm1280_vm11 = vcmask 261120  }
 0x12e   : > { %v892_v61 = vor.u32 %v891_v41, %v890_v15  ;;  %v895_v9 = vshll.u32 %v894_v18, 23 }
 0x12f   : > { %v726_v21 = vsub.s32 %v722_v51, %v725_v56  ;;  %v924_v55 = vand.u32 3, %v923_v10 }
 0x130   : > { %v896_v57 = vor.u32 4788187, %v895_v9  ;;  %v899_v27 = vcvt.s32.f32 %v892_v61  ;;  %v749_v9 = vsel %vm626_vm0, %v748_v0, %v2882_v32 }
 0x131   : > { %vm727_vm12 = vcmp.lt.s32.totalorder %v726_v21, 0  ;;  %v728_v44 = vsub.s32 0, %v726_v21  ;;  %vm926_vm1 = vcmp.eq.s32.totalorder %v924_v55, 0  ;;  %vm929_vm2 = vcmp.eq.s32.totalorder %v924_v55, 2 }
 0x132   : > { %v897_v42 = vand.u32 2147483647, %v896_v57  ;;  %vm925_vm6 = vcmp.lt.s32.totalorder %v924_v55, 2  ;;  %v751_v57 = vsel %vm2904_vm3, 0, %v749_v9 }
 0x133   : > { %v729_v37 = vsel %vm727_vm12, %v728_v44, %v726_v21  ;;  %v768_v44 = vadd.s32 3, %v751_v57 }
 0x134   : > { %v900_v7 = vmul.f32 %v899_v27, %v897_v42  ;;  %v730_v47 = vclz %v729_v37 }
 0x136   : > { %v901_v63 = vxor.u32 2147483648, %v900_v7  ;;  %v1884_v17 = vadd.s32 4294967294, %v730_v47  ;;  %v769_v47 = vand.u32 3, %v768_v44 }
 0x138   : > { %v902_v31 = vsel %vm781_vm13, %v901_v63, %v900_v7  ;;  %vm1885_vm15 = vcmp.lt.s32.totalorder %v1884_v17, 0  ;;  %vm774_vm8 = vcmp.eq.s32.totalorder %v769_v47, 2  ;;  %vm771_vm9 = vcmp.eq.s32.totalorder %v769_v47, 0 }
 0x139   : > { %v905_v35 = vsel %vm2888_vm14, %v2445_v52, %v902_v31  ;;  %v733_v39 = vsel %vm1885_vm15, 0, %v1884_v17  ;;  %vm770_vm5 = vcmp.lt.s32.totalorder %v769_v47, 2 }
 0x13a   : > { %v907_v33 = vmul.f32 %v905_v35, %v905_v35  ;;  %v734_v1 = vsub.s32 32, %v733_v39  ;;  %v738_v13 = vsub.s32 4294967266, %v733_v39  ;;  %v735_v40 = vshll.u32 %v726_v21, %v733_v39 }
 0x13c   : > { %v908_v59 = vmul.f32 -0.001358992, %v907_v33  ;;  %v915_v4 = vmul.f32 -0.00019511016, %v907_v33  ;;  %v736_v28 = vshrl.u32 %v2868_v12, %v734_v1  ;;  %v739_v3 = vadd.s32 127, %v738_v13  ;;  %v1247_v13 = vld [vmem:[%s3065_s3 + $0x18] sm:$0xff] }
 0x13e   : > { %v909_v36 = vadd.f32 0.041655596, %v908_v59  ;;  %v916_v62 = vadd.f32 0.008332121, %v915_v4  ;;  %v737_v16 = vor.u32 %v736_v28, %v735_v40  ;;  %v740_v30 = vshll.u32 %v739_v3, 23  ;;  %v1244_v4 = vld [vmem:[%s3065_s3] sm:$0xff]  ;;  %v1263_v40 = vpop.permute.xlu0 %1262 }
 0x140   : > { %v910_v46 = vmul.f32 %v909_v36, %v907_v33  ;;  %v917_v25 = vmul.f32 %v916_v62, %v907_v33  ;;  %v741_v53 = vor.u32 4788187, %v740_v30  ;;  %v744_v43 = vcvt.s32.f32 %v737_v16  ;;  %v1278_v36 = vpop.permute.xlu2 %1277 }
 0x142   : > { %v911_v60 = vadd.f32 -0.4999988, %v910_v46  ;;  %v918_v5 = vadd.f32 -0.16666654, %v917_v25  ;;  %v742_v45 = vand.u32 2147483647, %v741_v53 }
 0x144   : > { %v912_v38 = vmul.f32 %v911_v60, %v907_v33  ;;  %v919_v49 = vmul.f32 %v918_v5, %v907_v33  ;;  %v745_v12 = vmul.f32 %v744_v43, %v742_v45 }
 0x146   : > { %v913_v48 = vadd.f32 1.0, %v912_v38  ;;  %v920_v34 = vadd.f32 1.0, %v919_v49  ;;  %v746_v54 = vxor.u32 2147483648, %v745_v12 }
 0x148   : > { %v921_v51 = vmul.f32 %v920_v34, %v905_v35  ;;  %v930_v8 = vxor.u32 2147483648, %v913_v48  ;;  %v747_v24 = vsel %vm626_vm0, %v746_v54, %v745_v12  ;;  %v1268_v3 = vpop.permute.xlu2 %1267 }
 0x149   : > { %v750_v15 = vsel %vm2904_vm3, %v2482_v26, %v747_v24  ;;  %v1246_v26 = vld [vmem:[%s3065_s3 + $0x10] sm:$0xff] }
 0x14a   : > { %v927_v14 = vxor.u32 2147483648, %v921_v51  ;;  %v931_v29 = vsel %vm929_vm2, %v930_v8, %v921_v51  ;;  %v752_v18 = vmul.f32 %v750_v15, %v750_v15 }
 0x14c   : > { %v928_v6 = vsel %vm926_vm1, %v913_v48, %v927_v14  ;;  %v753_v20 = vmul.f32 -0.001358992, %v752_v18  ;;  %v760_v56 = vmul.f32 -0.00019511016, %v752_v18  ;;  %v1273_v48 = vpop.permute.xlu1 %1272 }
 0x14d   : > { %v932_v41 = vsel %vm925_vm6, %v928_v6, %v931_v29 }
 0x14e   : > { %v2912_v61 = vsel %vm922_vm4, nan, %v932_v41  ;;  %v754_v21 = vadd.f32 0.041655596, %v753_v20  ;;  %v761_v42 = vadd.f32 0.008332121, %v760_v56 }
 0x14f   : > { %1307 = vmatpush.msra.mxu0 %v2912_v61  ;;  %1922 = vmatpush.msra.mxu2 %v2912_v61 }
 0x150   : > { %1923 = vmatpush.msra.mxu3 %v2912_v61  ;;  %v755_v52 = vmul.f32 %v754_v21, %v752_v18  ;;  %v762_v27 = vmul.f32 %v761_v42, %v752_v18 }
 0x152   : > { %v756_v7 = vadd.f32 -0.4999988, %v755_v52  ;;  %v763_v37 = vadd.f32 -0.16666654, %v762_v27 }
 0x154   : > { %v757_v63 = vmul.f32 %v756_v7, %v752_v18  ;;  %v764_v32 = vmul.f32 %v763_v37, %v752_v18 }
 0x156   : > { %v758_v58 = vadd.f32 1.0, %v757_v63  ;;  %v765_v31 = vadd.f32 1.0, %v764_v32 }
 0x158   : > { %v766_v17 = vmul.f32 %v765_v31, %v750_v15  ;;  %v775_v19 = vxor.u32 2147483648, %v758_v58  ;;  %v1253_v31 = vld [vmem:[%s3067_s5 + $0x8] sm:$0xff] }
 0x15a   : > { %v772_v35 = vxor.u32 2147483648, %v766_v17  ;;  %v776_v33 = vsel %vm774_vm8, %v775_v19, %v766_v17  ;;  %v1254_v17 = vld [vmem:[%s3067_s5 + $0x10] sm:$0xff]  ;;  %v1255_v19 = vld [vmem:[%s3067_s5 + $0x18] sm:$0xff] }
 0x15c   : > { %v773_v39 = vsel %vm771_vm9, %v758_v58, %v772_v35  ;;  %v1252_v58 = vld [vmem:[%s3067_s5] sm:$0xff]  ;;  %v1376_v35 = vpop.permute.xlu1 %1375 }
 0x15d   : > { %v777_v59 = vsel %vm770_vm5, %v773_v39, %v776_v33  ;;  %v1366_v39 = vpop.permute.xlu0 %1365 }
 0x15e   : > { %v2924_v1 = vsel %vm767_vm10, nan, %v777_v59 }
 0x15f   : > { %1308 = vmatpush.msra.mxu0 %v2924_v1  ;;  %1924 = vmatpush.msra.mxu2 %v2924_v1 }
 0x160   : > { %1925 = vmatpush.msra.mxu3 %v2924_v1  ;;  %1895 = vmatmul.msk.f32.vlgmr.msra.gmra.mxu0 %vm1280_vm11, %v1244_v4 }
 0x161   : > { %1896 = vmatmul.msk.f32.vlgmr.msra.gmra.mxu2 %vm1280_vm11, %v1245_v22  ;;  %1898 = vmatmul.msk.f32.vlgmr.msra.gmra.mxu3 %vm1280_vm11, %v1247_v13 }
 0x164   : > { %v1361_v4 = vpop.permute.xlu1 %1360 }
 0x169   : > { %1897 = vmatmul.msk.f32.gmra.mxu2 %vm1280_vm11, %v1246_v26 }
 0x1dd   : > { %v1310_v62 = vpop.f32.mrf.mxu0 }
 0x1de   : > { %v1311_v28 = vadd.f32 %v1310_v62, %v1263_v40  ;;  %v1371_v62 = vpop.permute.xlu2 %1370 }
 0x1e0   : > { %v1322_v50 = vmul.f32 %v1311_v28, %v1311_v28 }
 0x1e2   : > { %v1326_v60 = vmul.f32 %v1322_v50, %v1311_v28 }
 0x1e4   : > { %v1313_v46 = vpop.f32.mrf.mxu2  ;;  %v1319_v25 = vpop.f32.mrf.mxu3  ;;  %v1330_v43 = vmul.f32 0.044715, %v1326_v60 }
 0x1e5   : > { %v1314_v16 = vadd.f32 %v1313_v46, %v1268_v3  ;;  %v1320_v30 = vadd.f32 %v1319_v25, %v1278_v36 }
 0x1e6   : > { %v1334_v14 = vadd.f32 %v1330_v43, %v1311_v28 }
 0x1e7   : > { %v1323_v5 = vmul.f32 %v1314_v16, %v1314_v16  ;;  %v1325_v10 = vmul.f32 %v1320_v30, %v1320_v30 }
 0x1e8   : > { %v1338_v6 = vmul.f32 0.7978846, %v1334_v14 }
 0x1e9   : > { %v1327_v53 = vmul.f32 %v1323_v5, %v1314_v16  ;;  %v1329_v38 = vmul.f32 %v1325_v10, %v1320_v30 }
 0x1eb   : > { %v1333_v49 = vmul.f32 0.044715, %v1329_v38  ;;  %v1331_v45 = vmul.f32 0.044715, %v1327_v53 }
 0x1ec   : > { %v1316_v34 = vpop.f32.mrf.mxu2 }
 0x1ed   : > { %v1317_v55 = vadd.f32 %v1316_v34, %v1273_v48  ;;  %v1337_v12 = vadd.f32 %v1333_v49, %v1320_v30  ;;  %v1335_v51 = vadd.f32 %v1331_v45, %v1314_v16 }
 0x1ef   : > { %v1324_v8 = vmul.f32 %v1317_v55, %v1317_v55  ;;  %v1341_v54 = vmul.f32 0.7978846, %v1337_v12  ;;  %v1339_v11 = vmul.f32 0.7978846, %v1335_v51 }
 0x1f1   : > { %v1328_v0 = vmul.f32 %v1324_v8, %v1317_v55  ;;  %1992 = vtanh.f32 %v1341_v54 }
 0x1f2   : > { %1994 = vtanh.f32 %v1339_v11 }
 0x1f3   : > { %v1332_v24 = vmul.f32 0.044715, %v1328_v0  ;;  %1996 = vtanh.f32 %v1338_v6 }
 0x1f5   : > { %v1336_v29 = vadd.f32 %v1332_v24, %v1317_v55 }
 0x1f7   : > { %v1993_v15 = vpop.eup %1992  ;;  %v1340_v41 = vmul.f32 0.7978846, %v1336_v29 }
 0x1f8   : > { %v1349_v18 = vadd.f32 1.0, %v1993_v15  ;;  %v1995_v20 = vpop.eup %1994 }
 0x1f9   : > { %1998 = vtanh.f32 %v1340_v41  ;;  %v1997_v57 = vpop.eup %1996  ;;  %v1347_v21 = vadd.f32 1.0, %v1995_v20 }
 0x1fa   : > { %v1353_v9 = vmul.f32 0.5, %v1349_v18  ;;  %v1346_v27 = vadd.f32 1.0, %v1997_v57 }
 0x1fb   : > { %v1351_v7 = vmul.f32 0.5, %v1347_v21 }
 0x1fc   : > { %v1357_v56 = vmul.f32 %v1353_v9, %v1320_v30  ;;  %v1350_v63 = vmul.f32 0.5, %v1346_v27  ;;  %v1460_v27 = vld [vmem:[%s3069_s7 + $0x8] sm:$0xff] }
 0x1fd   : > { %v1355_v32 = vmul.f32 %v1351_v7, %v1314_v16  ;;  %v1462_v7 = vld [vmem:[%s3069_s7 + $0x18] sm:$0xff] }
 0x1fe   : > { %1402 = vmatpush.msra.mxu1 %v1357_v56  ;;  %v1354_v47 = vmul.f32 %v1350_v63, %v1311_v28  ;;  %v1485_v63 = vpop.permute.xlu2 %1484 }
 0x1ff   : > { %v1999_v42 = vpop.eup %1998 }
 0x200   : > { %v1348_v52 = vadd.f32 1.0, %v1999_v42 }
 0x202   : > { %v1352_v44 = vmul.f32 0.5, %v1348_v52  ;;  %v1459_v52 = vld [vmem:[%s3069_s7] sm:$0xff] }
 0x204   : > { %v1356_v37 = vmul.f32 %v1352_v44, %v1317_v55  ;;  %v1461_v44 = vld [vmem:[%s3069_s7 + $0x10] sm:$0xff] }
 0x206   : > { %1403 = vmatpush.msra.mxu1 %v1356_v37 }
 0x208   : > { %1404 = vmatpush.msra.mxu1 %v1355_v32 }
 0x20a   : > { %1405 = vmatpush.msra.mxu1 %v1354_v47  ;;  %v1475_v47 = vpop.permute.xlu1 %1474 }
 0x20b   : > { %1899 = vmatmul.msk.f32.vlgmr.msra.gmra.mxu1 %vm1280_vm11, %v1252_v58  ;;  %v1470_v58 = vpop.permute.xlu2 %1469 }
 0x213   : > { %1900 = vmatmul.msk.f32.gmra.mxu1 %vm1280_vm11, %v1253_v31 }
 0x21b   : > { %1901 = vmatmul.msk.f32.gmra.mxu1 %vm1280_vm11, %v1254_v17 }
 0x223   : > { %1902 = vmatmul.msk.f32.gmra.mxu1 %vm1280_vm11, %v1255_v19 }
 0x288   : > { %v1407_v33 = vpop.f32.mrf.mxu1 }
 0x289   : > { %v1408_v13 = vadd.f32 %v1407_v33, %v1361_v4 }
 0x28b   : > { %v1419_v36 = vadd.f32 %v1408_v13, %v2924_v1 }
 0x28d   : > { %v1423_v50 = vmul.f32 %v1419_v36, %v1419_v36 }
 0x28f   : > { %v1427_v30 = vmul.f32 %v1423_v50, %v1419_v36 }
 0x290   : > { %v1410_v59 = vpop.f32.mrf.mxu1 }
 0x291   : > { %v1411_v22 = vadd.f32 %v1410_v59, %v1366_v39  ;;  %v1431_v49 = vmul.f32 0.044715, %v1427_v30 }
 0x293   : > { %v1420_v26 = vadd.f32 %v1411_v22, %v2912_v61  ;;  %v1435_v48 = vadd.f32 %v1431_v49, %v1419_v36 }
 0x295   : > { %v1424_v28 = vmul.f32 %v1420_v26, %v1420_v26 }
 0x297   : > { %v1428_v16 = vmul.f32 %v1424_v28, %v1420_v26 }
 0x298   : > { %v1413_v40 = vpop.f32.mrf.mxu1 }
 0x299   : > { %v1414_v3 = vadd.f32 %v1413_v40, %v1371_v62  ;;  %v1432_v38 = vmul.f32 0.044715, %v1428_v16 }
 0x29b   : > { %v1421_v46 = vadd.f32 %v1414_v3, %v2877_v23  ;;  %v1436_v43 = vadd.f32 %v1432_v38, %v1420_v26  ;;  %v1439_v23 = vmul.f32 0.7978846, %v1435_v48 }
 0x29d   : > { %v1425_v25 = vmul.f32 %v1421_v46, %v1421_v46  ;;  %v1440_v51 = vmul.f32 0.7978846, %v1436_v43 }
 0x29f   : > { %v1429_v60 = vmul.f32 %v1425_v25, %v1421_v46 }
 0x2a0   : > { %v1416_v5 = vpop.f32.mrf.mxu1 }
 0x2a1   : > { %v1417_v10 = vadd.f32 %v1416_v5, %v1376_v35  ;;  %v1433_v53 = vmul.f32 0.044715, %v1429_v60  ;;  %v1480_v35 = vpop.permute.xlu0 %1479 }
 0x2a3   : > { %v1422_v61 = vadd.f32 %v1417_v10, %v2850_v2  ;;  %v1437_v45 = vadd.f32 %v1433_v53, %v1421_v46 }
 0x2a5   : > { %v1426_v1 = vmul.f32 %v1422_v61, %v1422_v61  ;;  %v1441_v55 = vmul.f32 0.7978846, %v1437_v45 }
 0x2a7   : > { %v1430_v34 = vmul.f32 %v1426_v1, %v1422_v61  ;;  %2000 = vtanh.f32 %v1441_v55 }
 0x2a8   : > { %2002 = vtanh.f32 %v1440_v51 }
 0x2a9   : > { %v1434_v12 = vmul.f32 0.044715, %v1430_v34  ;;  %2004 = vtanh.f32 %v1439_v23 }
 0x2ab   : > { %v1438_v8 = vadd.f32 %v1434_v12, %v1422_v61 }
 0x2ad   : > { %v1442_v54 = vmul.f32 0.7978846, %v1438_v8  ;;  %v2001_v14 = vpop.eup %2000 }
 0x2ae   : > { %v2003_v0 = vpop.eup %2002  ;;  %v1449_v24 = vadd.f32 1.0, %v2001_v14 }
 0x2af   : > { %2006 = vtanh.f32 %v1442_v54  ;;  %v2005_v11 = vpop.eup %2004  ;;  %v1448_v29 = vadd.f32 1.0, %v2003_v0 }
 0x2b0   : > { %v1453_v41 = vmul.f32 0.5, %v1449_v24  ;;  %v1447_v18 = vadd.f32 1.0, %v2005_v11 }
 0x2b1   : > { %v1452_v20 = vmul.f32 0.5, %v1448_v29  ;;  %v1566_v29 = vld [vmem:[%s3071_s9 + $0x10] sm:$0xff] }
 0x2b2   : > { %v1457_v56 = vmul.f32 %v1453_v41, %v1421_v46  ;;  %v1451_v57 = vmul.f32 0.5, %v1447_v18  ;;  %v1598_v18 = vpop.permute.xlu0 %1597 }
 0x2b3   : > { %v1456_v21 = vmul.f32 %v1452_v20, %v1420_v26  ;;  %v1588_v20 = vpop.permute.xlu2 %1587 }
 0x2b4   : > { %v1455_v42 = vmul.f32 %v1451_v57, %v1419_v36 }
 0x2b5   : > { %v2007_v2 = vpop.eup %2006 }
 0x2b6   : > { %v1450_v6 = vadd.f32 1.0, %v2007_v2  ;;  %v1564_v2 = vld [vmem:[%s3071_s9] sm:$0xff] }
 0x2b8   : > { %v1454_v15 = vmul.f32 0.5, %v1450_v6  ;;  %v1565_v6 = vld [vmem:[%s3071_s9 + $0x8] sm:$0xff] }
 0x2ba   : > { %v1458_v9 = vmul.f32 %v1454_v15, %v1422_v61  ;;  %v1567_v15 = vld [vmem:[%s3071_s9 + $0x18] sm:$0xff] }
 0x2bc   : > { %1511 = vmatpush.msrb.mxu2 %v1458_v9 }
 0x2be   : > { %1512 = vmatpush.msrb.mxu2 %v1457_v56  ;;  %v1583_v56 = vpop.permute.xlu0 %1582 }
 0x2c0   : > { %1513 = vmatpush.msrb.mxu2 %v1456_v21 }
 0x2c2   : > { %1514 = vmatpush.msrb.mxu2 %v1455_v42 }
 0x2c3   : > { %1903 = vmatmul.msk.f32.vlgmr.msrb.gmra.mxu2 %vm1280_vm11, %v1459_v52  ;;  %v1593_v52 = vpop.permute.xlu1 %1592 }
 0x2cb   : > { %1904 = vmatmul.msk.f32.gmra.mxu2 %vm1280_vm11, %v1460_v27 }
 0x2d3   : > { %1905 = vmatmul.msk.f32.gmra.mxu2 %vm1280_vm11, %v1461_v44 }
 0x2db   : > { %1906 = vmatmul.msk.f32.gmra.mxu2 %vm1280_vm11, %v1462_v7 }
 0x346   : > { %v1516_v37 = vpop.f32.mrf.mxu2 }
 0x347   : > { %v1517_v17 = vadd.f32 %v1516_v37, %v1470_v58 }
 0x349   : > { %v1528_v33 = vmul.f32 %v1517_v17, %v1517_v17 }
 0x34b   : > { %v1532_v13 = vmul.f32 %v1528_v33, %v1517_v17 }
 0x34d   : > { %v1536_v28 = vmul.f32 0.044715, %v1532_v13 }
 0x34e   : > { %v1519_v32 = vpop.f32.mrf.mxu2 }
 0x34f   : > { %v1520_v31 = vadd.f32 %v1519_v32, %v1475_v47  ;;  %v1540_v16 = vadd.f32 %v1536_v28, %v1517_v17 }
 0x351   : > { %v1529_v19 = vmul.f32 %v1520_v31, %v1520_v31  ;;  %v1544_v53 = vmul.f32 0.7978846, %v1540_v16 }
 0x353   : > { %v1533_v4 = vmul.f32 %v1529_v19, %v1520_v31 }
 0x355   : > { %v1537_v62 = vmul.f32 0.044715, %v1533_v4 }
 0x356   : > { %v1522_v39 = vpop.f32.mrf.mxu2 }
 0x357   : > { %v1523_v59 = vadd.f32 %v1522_v39, %v1480_v35  ;;  %v1541_v25 = vadd.f32 %v1537_v62, %v1520_v31 }
 0x359   : > { %v1530_v22 = vmul.f32 %v1523_v59, %v1523_v59  ;;  %v1545_v10 = vmul.f32 0.7978846, %v1541_v25 }
 0x35b   : > { %v1534_v26 = vmul.f32 %v1530_v22, %v1523_v59 }
 0x35d   : > { %v1538_v36 = vmul.f32 0.044715, %v1534_v26 }
 0x35e   : > { %v1525_v40 = vpop.f32.mrf.mxu2 }
 0x35f   : > { %v1526_v3 = vadd.f32 %v1525_v40, %v1485_v63  ;;  %v1542_v50 = vadd.f32 %v1538_v36, %v1523_v59 }
 0x361   : > { %v1531_v46 = vmul.f32 %v1526_v3, %v1526_v3  ;;  %v1546_v60 = vmul.f32 0.7978846, %v1542_v50 }
 0x363   : > { %v1535_v30 = vmul.f32 %v1531_v46, %v1526_v3  ;;  %2008 = vtanh.f32 %v1546_v60 }
 0x364   : > { %2010 = vtanh.f32 %v1545_v10 }
 0x365   : > { %v1539_v5 = vmul.f32 0.044715, %v1535_v30  ;;  %2012 = vtanh.f32 %v1544_v53 }
 0x367   : > { %v1543_v38 = vadd.f32 %v1539_v5, %v1526_v3 }
 0x369   : > { %v1547_v49 = vmul.f32 0.7978846, %v1543_v38  ;;  %v2009_v61 = vpop.eup %2008 }
 0x36a   : > { %v2011_v45 = vpop.eup %2010  ;;  %v1554_v43 = vadd.f32 1.0, %v2009_v61 }
 0x36b   : > { %2014 = vtanh.f32 %v1547_v49  ;;  %v2013_v1 = vpop.eup %2012  ;;  %v1553_v55 = vadd.f32 1.0, %v2011_v45 }
 0x36c   : > { %v1558_v51 = vmul.f32 0.5, %v1554_v43  ;;  %v1552_v23 = vadd.f32 1.0, %v2013_v1 }
 0x36d   : > { %v1557_v54 = vmul.f32 0.5, %v1553_v55  ;;  %v1574_v55 = vld [vmem:[%s3073_s11 + $0x10] sm:$0xff] }
 0x36e   : > { %v2981_v14 = vmul.f32 %v1558_v51, %v1523_v59  ;;  %v1556_v0 = vmul.f32 0.5, %v1552_v23  ;;  %v1695_v51 = vpop.permute.xlu1 %1694 }
 0x36f   : > { %v2984_v11 = vmul.f32 %v1557_v54, %v1520_v31  ;;  %v1685_v54 = vpop.permute.xlu0 %1684 }
 0x370   : > { %v2987_v24 = vmul.f32 %v1556_v0, %v1517_v17 }
 0x371   : > { %v2015_v48 = vpop.eup %2014 }
 0x372   : > { %v1555_v34 = vadd.f32 1.0, %v2015_v48  ;;  %v1572_v48 = vld [vmem:[%s3073_s11] sm:$0xff] }
 0x374   : > { %v1559_v12 = vmul.f32 0.5, %v1555_v34  ;;  %v1573_v34 = vld [vmem:[%s3073_s11 + $0x8] sm:$0xff] }
 0x376   : > { %v2978_v8 = vmul.f32 %v1559_v12, %v1526_v3  ;;  %v1575_v12 = vld [vmem:[%s3073_s11 + $0x18] sm:$0xff] }
 0x378   : > { %1624 = vmatpush.msrb.mxu3 %v2978_v8 }
 0x37a   : > { %1625 = vmatpush.msrb.mxu3 %v2981_v14 }
 0x37c   : > { %1626 = vmatpush.msrb.mxu3 %v2984_v11 }
 0x37e   : > { %1627 = vmatpush.msrb.mxu3 %v2987_v24 }
 0x37f   : > { %1907 = vmatmul.msk.f32.vlgmr.msrb.gmra.mxu3 %vm1280_vm11, %v1564_v2  ;;  %v1680_v2 = vpop.permute.xlu1 %1679 }
 0x387   : > { %1908 = vmatmul.msk.f32.gmra.mxu3 %vm1280_vm11, %v1565_v6 }
 0x38f   : > { %1909 = vmatmul.msk.f32.gmra.mxu3 %vm1280_vm11, %v1566_v29 }
 0x397   : > { %1910 = vmatmul.msk.f32.gmra.mxu3 %vm1280_vm11, %v1567_v15 }
 0x402   : > { %v1629_v41 = vpop.f32.mrf.mxu3 }
 0x403   : > { %v1630_v21 = vadd.f32 %v1629_v41, %v1583_v56 }
 0x405   : > { %v1641_v27 = vmul.f32 %v1630_v21, %v1630_v21 }
 0x407   : > { %v1645_v32 = vmul.f32 %v1641_v27, %v1630_v21 }
 0x409   : > { %v1649_v19 = vmul.f32 0.044715, %v1645_v32 }
 0x40a   : > { %v1632_v9 = vpop.f32.mrf.mxu3 }
 0x40b   : > { %v1633_v57 = vadd.f32 %v1632_v9, %v1588_v20  ;;  %v1653_v4 = vadd.f32 %v1649_v19, %v1630_v21 }
 0x40d   : > { %v1642_v42 = vmul.f32 %v1633_v57, %v1633_v57  ;;  %v1657_v62 = vmul.f32 0.7978846, %v1653_v4 }
 0x40f   : > { %v1646_v37 = vmul.f32 %v1642_v42, %v1633_v57 }
 0x411   : > { %v1650_v31 = vmul.f32 0.044715, %v1646_v37 }
 0x412   : > { %v1635_v44 = vpop.f32.mrf.mxu3 }
 0x413   : > { %v1636_v7 = vadd.f32 %v1635_v44, %v1593_v52  ;;  %v1654_v59 = vadd.f32 %v1650_v31, %v1633_v57 }
 0x415   : > { %v1643_v63 = vmul.f32 %v1636_v7, %v1636_v7  ;;  %v1658_v36 = vmul.f32 0.7978846, %v1654_v59 }
 0x417   : > { %v1647_v47 = vmul.f32 %v1643_v63, %v1636_v7 }
 0x419   : > { %v1651_v58 = vmul.f32 0.044715, %v1647_v47 }
 0x41a   : > { %v1638_v17 = vpop.f32.mrf.mxu3 }
 0x41b   : > { %v1639_v35 = vadd.f32 %v1638_v17, %v1598_v18  ;;  %v1655_v33 = vadd.f32 %v1651_v58, %v1636_v7  ;;  %v1690_v18 = vpop.permute.xlu2 %1689 }
 0x41d   : > { %v1644_v39 = vmul.f32 %v1639_v35, %v1639_v35  ;;  %v1659_v13 = vmul.f32 0.7978846, %v1655_v33 }
 0x41f   : > { %v1648_v22 = vmul.f32 %v1644_v39, %v1639_v35  ;;  %2016 = vtanh.f32 %v1659_v13 }
 0x420   : > { %2018 = vtanh.f32 %v1658_v36 }
 0x421   : > { %v1652_v26 = vmul.f32 0.044715, %v1648_v22  ;;  %2020 = vtanh.f32 %v1657_v62 }
 0x423   : > { %v1656_v40 = vadd.f32 %v1652_v26, %v1639_v35 }
 0x425   : > { %v1660_v28 = vmul.f32 0.7978846, %v1656_v40  ;;  %v2017_v3 = vpop.eup %2016 }
 0x426   : > { %v2019_v50 = vpop.eup %2018  ;;  %v1667_v25 = vadd.f32 1.0, %v2017_v3 }
 0x427   : > { %2022 = vtanh.f32 %v1660_v28  ;;  %v2021_v46 = vpop.eup %2020  ;;  %v1666_v60 = vadd.f32 1.0, %v2019_v50 }
 0x428   : > { %v1671_v10 = vmul.f32 0.5, %v1667_v25  ;;  %v1665_v53 = vadd.f32 1.0, %v2021_v46 }
 0x429   : > { %v1670_v49 = vmul.f32 0.5, %v1666_v60 }
 0x42a   : > { %v1675_v61 = vmul.f32 %v1671_v10, %v1636_v7  ;;  %v1669_v45 = vmul.f32 0.5, %v1665_v53  ;;  %v1778_v10 = vld [vmem:[%s3075_s13] sm:$0x1]  ;;  %v1783_v53 = vpop.permute.xlu2 %1782 }
 0x42b   : > { %v1674_v1 = vmul.f32 %v1670_v49, %v1633_v57 }
 0x42c   : > { %v1673_v43 = vmul.f32 %v1669_v45, %v1630_v21 }
 0x42d   : > { %v2023_v16 = vpop.eup %2022 }
 0x42e   : > { %v1668_v30 = vadd.f32 1.0, %v2023_v16 }
 0x430   : > { %v1672_v5 = vmul.f32 0.5, %v1668_v30 }
 0x432   : > { %v1676_v38 = vmul.f32 %v1672_v5, %v1639_v35 }
 0x434   : > { %1721 = vmatpush.msrb.mxu0 %v1676_v38  ;;  %v1785_v38 = vperm.slane %v1783_v53, 0 }
 0x436   : > { %1722 = vmatpush.msrb.mxu0 %v1675_v61 }
 0x438   : > { %1723 = vmatpush.msrb.mxu0 %v1674_v1 }
 0x43a   : > { %1724 = vmatpush.msrb.mxu0 %v1673_v43 }
 0x43b   : > { %1911 = vmatmul.msk.f32.vlgmr.msrb.gmra.mxu0 %vm1280_vm11, %v1572_v48 }
 0x443   : > { %1912 = vmatmul.msk.f32.gmra.mxu0 %vm1280_vm11, %v1573_v34 }
 0x44b   : > { %1913 = vmatmul.msk.f32.gmra.mxu0 %vm1280_vm11, %v1574_v55 }
 0x453   : > { %1914 = vmatmul.msk.f32.gmra.mxu0 %vm1280_vm11, %v1575_v12 }
 0x4b8   : > { %v1726_v23 = vpop.f32.mrf.mxu0 }
 0x4b9   : > { %v1727_v29 = vadd.f32 %v1726_v23, %v1680_v2 }
 0x4bb   : > { %v1738_v41 = vadd.f32 %v1727_v29, %v2987_v24 }
 0x4bd   : > { %v1742_v57 = vmul.f32 %v1738_v41, %v1738_v41 }
 0x4bf   : > { %v1746_v27 = vmul.f32 %v1742_v57, %v1738_v41 }
 0x4c0   : > { %v1729_v0 = vpop.f32.mrf.mxu0 }
 0x4c1   : > { %v1730_v6 = vadd.f32 %v1729_v0, %v1685_v54  ;;  %v1750_v47 = vmul.f32 0.044715, %v1746_v27 }
 0x4c3   : > { %v1739_v15 = vadd.f32 %v1730_v6, %v2984_v11  ;;  %v1754_v17 = vadd.f32 %v1750_v47, %v1738_v41 }
 0x4c5   : > { %v1743_v20 = vmul.f32 %v1739_v15, %v1739_v15 }
 0x4c7   : > { %v1747_v52 = vmul.f32 %v1743_v20, %v1739_v15 }
 0x4c8   : > { %v1732_v9 = vpop.f32.mrf.mxu0 }
 0x4c9   : > { %v1733_v56 = vadd.f32 %v1732_v9, %v1690_v18  ;;  %v1751_v32 = vmul.f32 0.044715, %v1747_v52 }
 0x4cb   : > { %v1740_v21 = vadd.f32 %v1733_v56, %v2981_v14  ;;  %v1755_v31 = vadd.f32 %v1751_v32, %v1739_v15  ;;  %v1758_v14 = vmul.f32 0.7978846, %v1754_v17 }
 0x4cd   : > { %v1744_v42 = vmul.f32 %v1740_v21, %v1740_v21  ;;  %v1759_v39 = vmul.f32 0.7978846, %v1755_v31 }
 0x4cf   : > { %v1748_v44 = vmul.f32 %v1744_v42, %v1740_v21 }
 0x4d0   : > { %v1735_v7 = vpop.f32.mrf.mxu0 }
 0x4d1   : > { %v1736_v37 = vadd.f32 %v1735_v7, %v1695_v51  ;;  %v1752_v63 = vmul.f32 0.044715, %v1748_v44 }
 0x4d3   : > { %v1741_v11 = vadd.f32 %v1736_v37, %v2978_v8  ;;  %v1756_v58 = vadd.f32 %v1752_v63, %v1740_v21 }
 0x4d5   : > { %v1745_v24 = vmul.f32 %v1741_v11, %v1741_v11  ;;  %v1760_v35 = vmul.f32 0.7978846, %v1756_v58 }
 0x4d7   : > { %v1749_v19 = vmul.f32 %v1745_v24, %v1741_v11  ;;  %2024 = vtanh.f32 %v1760_v35 }
 0x4d8   : > { %2026 = vtanh.f32 %v1759_v39 }
 0x4d9   : > { %v1753_v33 = vmul.f32 0.044715, %v1749_v19  ;;  %2028 = vtanh.f32 %v1758_v14 }
 0x4db   : > { %v1757_v59 = vadd.f32 %v1753_v33, %v1741_v11 }
 0x4dd   : > { %v1761_v4 = vmul.f32 0.7978846, %v1757_v59  ;;  %v2025_v22 = vpop.eup %2024 }
 0x4de   : > { %v2027_v13 = vpop.eup %2026  ;;  %v1768_v36 = vadd.f32 1.0, %v2025_v22 }
 0x4df   : > { %2030 = vtanh.f32 %v1761_v4  ;;  %v2029_v26 = vpop.eup %2028  ;;  %v1767_v40 = vadd.f32 1.0, %v2027_v13 }
 0x4e0   : > { %v1772_v3 = vmul.f32 0.5, %v1768_v36  ;;  %v1766_v50 = vadd.f32 1.0, %v2029_v26 }
 0x4e1   : > { %v1771_v25 = vmul.f32 0.5, %v1767_v40 }
 0x4e2   : > { %v1776_v16 = vmul.f32 %v1772_v3, %v1740_v21  ;;  %v1770_v30 = vmul.f32 0.5, %v1766_v50 }
 0x4e3   : > { %v1775_v60 = vmul.f32 %v1771_v25, %v1739_v15 }
 0x4e4   : > { %v1774_v5 = vmul.f32 %v1770_v30, %v1738_v41 }
 0x4e5   : > { %v2031_v8 = vpop.eup %2030 }
 0x4e6   : > { %v1769_v62 = vadd.f32 1.0, %v2031_v8 }
 0x4e8   : > { %v1773_v28 = vmul.f32 0.5, %v1769_v62 }
 0x4ea   : > { %v1777_v46 = vmul.f32 %v1773_v28, %v1741_v11 }
 0x4ec   : > { %1801 = vmatpush.msrb.mxu1 %v1777_v46 }
 0x4ee   : > { %1802 = vmatpush.msrb.mxu1 %v1776_v16 }
 0x4f0   : > { %1803 = vmatpush.msrb.mxu1 %v1775_v60 }
 0x4f2   : > { %1804 = vmatpush.msrb.mxu1 %v1774_v5 }
 0x4f3   : > { %1915 = vmatmul.msk.f32.vlgmr.msrb.gmra.mxu1 %vm1280_vm11, %v1778_v10 }
 0x570   : > { %v1806_v49 = vpop.f32.mrf.mxu1 }
 0x571   : > { %v1807_v61 = vadd.f32 %v1806_v49, %v1785_v38 }
 0x573   : > { %1809 = vst [vmem:[%s486_s28] sm:$0x1] %v1807_v61 }
 0x574   : > { %2059 = shalt.err (!%p2056_p3)
}
 0x575   : > { %1926 = dma.vmem_to_hbm [thread:$0]  (%p2227_p5), %s1822_s26, 16, %s1824_s27, %s1811_s1  }
 0x576 PF: > { %p1932_p4 = scmp.ge.s32.totalorder %s2094_s23, 2  ;;  %s1835_s19 = sand.u32 1, %s2082_s20  }
 0x577   : > { %s1836_s28 = scalar_lea.sflag [#allocation4], %s1835_s19 }
 0x578   : > { %p1929_p7 = pnand %p1932_p4, %p2231_p6 }
 0x57a   : > { %p1930_p8 = pneg %p1929_p7 }
 0x57c   : > { %2077 = dma.done.wait (%p1930_p8), %s1836_s28, 16  }
 0x57d   : > { %2079 = vsyncadd (%p1930_p8), %s1836_s28, 4294967280  ;;  %s3095_s16 = sld [smem:[#allocation6_spill]]  ;;  %p27_p9 = scmp.ge.s32.totalorder %s2214_s25, 4  }
 0x57e   : > { %s3096_s22 = sld [smem:[#allocation7_spill]]  ;;  %s3097_s20 = smov %s2086_s21 }
 0x57f   : > { %s3099_s23 = smov %s2214_s25  ;;  %29 = sbr.rel (!%p27_p9) target bundleno = 6 (0x6), region = 115 }
 0x583   : > { %s3098_s21 = smov %s3095_s16 }
 0x584   :  { %1841 = vsyncpa [#allocation4], 1 }
 0x585   :  { %1843 = vsyncpa [#allocation4 + $0x1], 1 }

</bundles_post_ra>
